<compile_context>
chip_gen: v5e
topology: v5e:2x2
jax: 0.10.0
libtpu: 0.0.40
codegen_flags: <defaults>
</compile_context>

<pallas_src>
import math

import jax
import jax.numpy as jnp
from jax.experimental import pallas as pl
from jax.experimental.pallas import tpu as pltpu


# ----------------------------------------------------------------------------------
# (A) IMGPositionEmbeddingSine
# ----------------------------------------------------------------------------------

def _pos_kernel(coord_ref, const_ref, out_ref):
    # coord_ref : (4, t_hw)   rows = [y_embed, x_embed, 1, 0]   (lane-dense)
    # const_ref : (2F, 4)     rows c = [y_coef_c, x_coef_c, phase_c, 0]  (resident)
    # out_ref   : (2F, t_hw)  channels-first output tile
    #
    # One MXU dot builds the whole affine argument (coord * inv_dim_t + phase) for both
    # the pos_y and pos_x channel halves at once; the VPU only runs the sin polynomial.
    arg = jnp.dot(const_ref[...], coord_ref[...],
                  preferred_element_type=jnp.float32,
                  precision=jax.lax.Precision.HIGHEST)
    out_ref[...] = jnp.sin(arg).astype(out_ref.dtype)


def _pick_lane_tile(hw, two_f, out_itemsize):
    """Lane-tile size: multiple of 128, VMEM-budgeted per generation, >=4 tiles for big maps."""
    if hw <= 512:
        return hw  # block == full array dim (always legal)
    try:
        vmem_cap = pltpu.get_tpu_info().vmem_capacity_bytes
    except Exception:  # pragma: no cover - conservative fallback
        vmem_cap = 128 * 1024 * 1024
    # v7x has 64 MiB VMEM per TensorCore -> cap per-buffer output blocks tighter there.
    per_buf_budget = (4 << 20) if vmem_cap <= (64 << 20) else (6 << 20)
    budget_lanes = max(512, (per_buf_budget // (two_f * out_itemsize)) // 128 * 128)
    # Guarantee >= 4 lane tiles so both v7x TCs get grid steps and the pipeline overlaps.
    quarter = max(128, (hw // 4) // 128 * 128)
    cap = int(min(budget_lanes, quarter, 4096))
    # Prefer a tile that divides HW evenly -> no masked vst on the tail block.
    for cand in range(cap, 127, -128):
        if hw % cand == 0:
            return cand
    return cap


def img_position_embedding_sine(x, mask, d_model=64, temperature=10000,
                                normalize=True, scale=None, out_dtype=jnp.float32):
    """Mirrors IMGPositionEmbeddingSine.forward.

    x:    (B, C, H, W)   -- only consulted for consistency (values unused, as in torch)
    mask: (B, H, W) bool -- True where padded
    returns pos: (B, d_model, H, W), channels-first, dtype `out_dtype` (f32 default).
    """
    if scale is not None and normalize is False:
        raise ValueError("normalize should be True if scale is passed")
    if scale is None:
        scale = 2 * math.pi
    num_pos_feats = d_model // 2
    F = num_pos_feats

    B, H, W = mask.shape
    HW = H * W

    # ---- tiny (B, H, W) prologue: cumulative coordinate maps (<1% of output bytes) ----
    not_mask = (~mask).astype(jnp.float32)
    y_embed = jnp.cumsum(not_mask, axis=1)
    x_embed = jnp.cumsum(not_mask, axis=2)
    if normalize:
        eps = 1e-6
        y_embed = (y_embed - 0.5) / (y_embed[:, -1:, :] + eps) * scale
        x_embed = (x_embed - 0.5) / (x_embed[:, :, -1:] + eps) * scale

    # Single merged coordinate input: (B, 4, HW) = [y, x, 1, 0] -> one DMA per grid step.
    coords = jnp.concatenate(
        [y_embed.reshape(B, 1, HW).astype(jnp.float32),
         x_embed.reshape(B, 1, HW).astype(jnp.float32),
         jnp.ones((B, 1, HW), jnp.float32),
         jnp.zeros((B, 1, HW), jnp.float32)],
        axis=1)

    # ---- constant matrix (2F, 4), computed once, resident in VMEM across the grid ----
    k = jnp.arange(F, dtype=jnp.float32)
    inv_dim_t = jnp.power(jnp.float32(temperature), -2.0 * jnp.floor(k / 2.0) / F)
    phase = jnp.where((jnp.arange(F) % 2) == 0, 0.0, math.pi / 2.0).astype(jnp.float32)
    zf = jnp.zeros((F,), jnp.float32)
    const = jnp.concatenate(
        [jnp.stack([inv_dim_t, zf, phase, zf], axis=1),   # channels [0, F): pos_y
         jnp.stack([zf, inv_dim_t, phase, zf], axis=1)],  # channels [F, 2F): pos_x
        axis=0)                                            # (2F, 4)

    out_itemsize = jnp.dtype(out_dtype).itemsize
    t_hw = _pick_lane_tile(HW, 2 * F, out_itemsize)
    n_hw = pl.cdiv(HW, t_hw)
    block_bytes = 2 * F * t_hw * out_itemsize
    vmem_limit = int(min(48 << 20, max(32 << 20, 4 * block_bytes + (8 << 20))))

    out_flat = pl.pallas_call(
        _pos_kernel,
        out_shape=jax.ShapeDtypeStruct((B, 2 * F, HW), out_dtype),
        grid_spec=pltpu.PrefetchScalarGridSpec(
            num_scalar_prefetch=0,
            grid=(B, n_hw),
            in_specs=[
                pl.BlockSpec((None, 4, t_hw), lambda b, j: (b, 0, j)),   # coords
                pl.BlockSpec((2 * F, 4), lambda b, j: (0, 0)),           # constants
            ],
            out_specs=pl.BlockSpec((None, 2 * F, t_hw), lambda b, j: (b, 0, j)),
        ),
        compiler_params=pltpu.CompilerParams(
            dimension_semantics=("parallel", "parallel"),
            vmem_limit_bytes=vmem_limit),
    )(coords, const)

    # (B, 2F, H*W) -> (B, 2F, H, W): contiguous metadata reshape, no transpose.
    return out_flat.reshape(B, 2 * F, H, W)


def _pos_reference(mask, d_model, temperature, scale):
    """Pure-JAX reference implementing the torch forward verbatim (normalize=True path)."""
    num_pos_feats = d_model // 2
    not_mask = (~mask).astype(jnp.float32)
    y_embed = jnp.cumsum(not_mask, axis=1)
    x_embed = jnp.cumsum(not_mask, axis=2)
    eps = 1e-6
    y_embed = (y_embed - 0.5) / (y_embed[:, -1:, :] + eps) * scale
    x_embed = (x_embed - 0.5) / (x_embed[:, :, -1:] + eps) * scale
    dim_t = jnp.arange(num_pos_feats, dtype=jnp.float32)
    dim_t = temperature ** (2 * jnp.floor(dim_t / 2) / num_pos_feats)
    pos_x = x_embed[:, :, :, None] / dim_t
    pos_y = y_embed[:, :, :, None] / dim_t
    pos_x = jnp.stack((jnp.sin(pos_x[:, :, :, 0::2]),
                       jnp.cos(pos_x[:, :, :, 1::2])), axis=4).reshape(*pos_x.shape[:3], -1)
    pos_y = jnp.stack((jnp.sin(pos_y[:, :, :, 0::2]),
                       jnp.cos(pos_y[:, :, :, 1::2])), axis=4).reshape(*pos_y.shape[:3], -1)
    pos = jnp.concatenate((pos_y, pos_x), axis=3)
    return jnp.transpose(pos, (0, 3, 1, 2))


# ----------------------------------------------------------------------------------
# (B) DeformableTransformerExtraDecoder: per-layer reference-point scaling
# ----------------------------------------------------------------------------------

def _ref_points_kernel(ref_ref, vr_ref, out_ref):
    # ref_ref : (Lq, P)    reference points for this batch element
    # vr_ref  : (L,  P)    per-level valid ratios (already duplicated to P=4 if needed)
    # out_ref : (Lq, L, P)
    out_ref[...] = ref_ref[...][:, None, :] * vr_ref[...][None, :, :]


def reference_points_input(reference_points, src_valid_ratios):
    """reference_points: (B, Lq, 2|4); src_valid_ratios: (B, L, 2) -> (B, Lq, L, 2|4)."""
    B, Lq, P = reference_points.shape
    L = src_valid_ratios.shape[1]
    if P == 4:
        vr = jnp.concatenate([src_valid_ratios, src_valid_ratios], axis=-1)
    else:
        assert P == 2
        vr = src_valid_ratios
    vr = vr.astype(reference_points.dtype)

    return pl.pallas_call(
        _ref_points_kernel,
        out_shape=jax.ShapeDtypeStruct((B, Lq, L, P), reference_points.dtype),
        grid_spec=pltpu.PrefetchScalarGridSpec(
            num_scalar_prefetch=0,
            grid=(B,),
            in_specs=[
                pl.BlockSpec((None, Lq, P), lambda b: (b, 0, 0)),
                pl.BlockSpec((None, L, P), lambda b: (b, 0, 0)),
            ],
            out_specs=pl.BlockSpec((None, Lq, L, P), lambda b: (b, 0, 0, 0)),
        ),
        compiler_params=pltpu.CompilerParams(dimension_semantics=("parallel",)),
    )(reference_points, vr)


def deformable_transformer_extra_decoder_forward(
        layers, tgt, reference_points, src, src_spatial_shapes,
        src_level_start_index, src_valid_ratios, extra_memory,
        query_pos=None, src_padding_mask=None, return_intermediate=False):
    """Mirrors DeformableTransformerExtraDecoder.forward; `layers` are opaque callables."""
    output = tgt
    intermediate, intermediate_rp = [], []
    for layer in layers:
        rp_input = reference_points_input(reference_points, src_valid_ratios)
        # TODO(synk): decoder_layer is an arbitrary submodule not defined in the spec; it is
        # called as an opaque JAX callable here and is not kernelized.
        output = layer(output, query_pos, rp_input, src, src_spatial_shapes,
                       src_level_start_index, extra_memory, src_padding_mask)
        if return_intermediate:
            intermediate.append(output)
            intermediate_rp.append(reference_points)
    if return_intermediate:
        return jnp.stack(intermediate), jnp.stack(intermediate_rp)
    return output, reference_points


# ----------------------------------------------------------------------------------
if __name__ == "__main__":
    key = jax.random.PRNGKey(0)
    kx, km, kr, kv = jax.random.split(key, 4)

    # --- (A) position embedding: B=2, C=4, H=W=16, d_model=64 (small test shapes) ---
    B, C, H, W = 2, 4, 16, 16
    d_model = 64
    x = jax.random.normal(kx, (B, C, H, W), dtype=jnp.float32)
    mask = jax.random.bernoulli(km, 0.2, (B, H, W))  # True = padded

    pos = jax.block_until_ready(img_position_embedding_sine(x, mask, d_model=d_model))
    ref = _pos_reference(mask, d_model, 10000, 2 * math.pi)
    assert pos.shape == (B, d_model, H, W), pos.shape
    assert jnp.allclose(pos, ref, rtol=1e-4, atol=2e-3), float(jnp.max(jnp.abs(pos - ref)))

    # --- (B) reference-point scaling from DeformableTransformerExtraDecoder.forward ---
    Lq, L = 8, 4
    rp2 = jax.random.uniform(kr, (B, Lq, 2), dtype=jnp.float32)
    vr = jax.random.uniform(kv, (B, L, 2), dtype=jnp.float32)

    out2 = jax.block_until_ready(reference_points_input(rp2, vr))
    ref2 = rp2[:, :, None, :] * vr[:, None, :, :]
    assert out2.shape == (B, Lq, L, 2)
    assert jnp.allclose(out2, ref2, rtol=1e-6, atol=1e-6), float(jnp.max(jnp.abs(out2 - ref2)))

    rp4 = jax.random.uniform(kr, (B, Lq, 4), dtype=jnp.float32)
    out4 = jax.block_until_ready(reference_points_input(rp4, vr))
    ref4 = rp4[:, :, None, :] * jnp.concatenate([vr, vr], -1)[:, None, :, :]
    assert out4.shape == (B, Lq, L, 4)
    assert jnp.allclose(out4, ref4, rtol=1e-6, atol=1e-6), float(jnp.max(jnp.abs(out4 - ref4)))

    print("KERNEL_OK")
</pallas_src>

<mosaic_0001>
module attributes {stable_mosaic.version = 11 : i64} {
  func.func @_pos_kernel(%arg0: i32, %arg1: i32, %arg2: memref<1x4x256xf32, #tpu.memory_space<vmem>>, %arg3: memref<64x4xf32, #tpu.memory_space<vmem>>, %arg4: memref<1x64x256xf32, #tpu.memory_space<vmem>>) attributes {dimension_semantics = [#tpu.dimension_semantics<parallel>, #tpu.dimension_semantics<parallel>], iteration_bounds = array<i64: 2, 1>, scalar_prefetch = 0 : i64, scratch_operands = 0 : i64, tpu.core_type = #tpu.core_type<tc>, window_params = [{transform_indices = @transform_0, window_bounds = array<i64: 1, 4, 256>}, {pipeline_mode = #tpu.pipeline_mode<synchronous>, transform_indices = @transform_1, window_bounds = array<i64: 64, 4>}, {transform_indices = @transform_2, window_bounds = array<i64: 1, 64, 256>}]} {
    %c0 = arith.constant 0 : index
    %c0_0 = arith.constant 0 : index
    %0 = vector.load %arg3[%c0, %c0_0] : memref<64x4xf32, #tpu.memory_space<vmem>>, vector<64x4xf32>
    %c0_1 = arith.constant 0 : index
    %c0_2 = arith.constant 0 : index
    %c0_3 = arith.constant 0 : index
    %1 = vector.load %arg2[%c0_1, %c0_2, %c0_3] : memref<1x4x256xf32, #tpu.memory_space<vmem>>, vector<1x4x256xf32>
    %2 = vector.shape_cast %1 : vector<1x4x256xf32> to vector<4x256xf32>
    %cst = arith.constant dense<0.000000e+00> : vector<64x256xf32>
    %3 = tpu.matmul %0, %2, %cst {dimension_numbers = #tpu.dot_dimension_numbers<[1], [0], [0], [1], [0, 0, 1, 1], [], []>, precision = #tpu.contract_precision<fp32>} : vector<64x4xf32>, vector<4x256xf32>, vector<64x256xf32> -> vector<64x256xf32>
    %4 = math.sin %3 : vector<64x256xf32>
    %c0_4 = arith.constant 0 : index
    %c0_5 = arith.constant 0 : index
    %c0_6 = arith.constant 0 : index
    %5 = vector.load %arg4[%c0_4, %c0_5, %c0_6] : memref<1x64x256xf32, #tpu.memory_space<vmem>>, vector<1x64x256xf32>
    %6 = vector.shape_cast %5 : vector<1x64x256xf32> to vector<64x256xf32>
    %7 = vector.shape_cast %4 : vector<64x256xf32> to vector<1x64x256xf32>
    tpu.vector_store %arg4[%c0_4, %c0_5, %c0_6], %7 {strides = array<i32>} : memref<1x64x256xf32, #tpu.memory_space<vmem>>, vector<1x64x256xf32>,
    return
  }
  func.func @transform_0(%arg0: i32, %arg1: i32) -> (i32, i32, i32) {
    %c0_i32 = arith.constant 0 : i32
    %c0_i32_0 = arith.constant 0 : i32
    return %arg0, %c0_i32, %arg1 : i32, i32, i32
  }
  func.func @transform_1(%arg0: i32, %arg1: i32) -> (i32, i32) {
    %c0_i32 = arith.constant 0 : i32
    %c0_i32_0 = arith.constant 0 : i32
    %c0_i32_1 = arith.constant 0 : i32
    return %c0_i32, %c0_i32_0 : i32, i32
  }
  func.func @transform_2(%arg0: i32, %arg1: i32) -> (i32, i32, i32) {
    %c0_i32 = arith.constant 0 : i32
    %c0_i32_0 = arith.constant 0 : i32
    return %arg0, %c0_i32, %arg1 : i32, i32, i32
  }
}

</mosaic_0001>

<bundles_post_ra>
// kernel: tpu_custom_call.1
= control target key start
LH: loop header
LB: loop body
LE: loop exit
PB: predicated region body
PF: predicated region fallthrough
CT: control target
= control target key end

     0   :  { %7 = vsyncpa [#allocation3], 0  ;;  %s5917_s0 = inlined_call_operand.vmem [shape: f32[2,4,256], index: 0, kind: input, shape index: {}]   ;;  %s5918_s1 = inlined_call_operand.vmem [shape: f32[64,4], index: 1, kind: input, shape index: {}]   ;;  %s5919_s2 = inlined_call_operand.hbm [shape: f32[2,64,256], index: 2, kind: output, shape index: {}]  }
   0x1   :  { %9 = vsyncpa [#allocation3 + $0x1], 0  ;;  %s3766_s9 = smov 0   ;;  %s3768_s10 = smov 0  }
   0x2   :  { %s3770_s11 = smov 0   ;;  %s3772_s12 = smov 0  }
   0x3   :  { %s3774_s13 = smov 0   ;;  %s3776_s14 = smov 0  }
   0x4 LB: > { %s3535_s15 = sadd.s32 4294967295, %s3740_s14   ;;  %s3536_s16 = sadd.s32 4294967294, %s3740_s14   ;;  %s3740_s14 = sphi %s3776_s14, %s15_s14   ;;  %s3736_s13 = sphi %s3774_s13, %s5954_s13   ;;  %s3732_s12 = sphi %s3772_s12, %s5953_s12   ;;  %s3728_s11 = sphi %s3770_s11, %s5952_s11   ;;  %s3724_s10 = sphi %s3768_s10, %s5951_s10   ;;  %s3720_s9 = sphi %s3766_s9, %s5950_s9  }
   0x5   : > { %s27_s17 = sadd.s32 1, %s3736_s13  ;;  %s85_s18 = sadd.s32 1, %s3728_s11 }
   0x6   : > { %p29_p0 = scmp.ge.s32.totalorder %s27_s17, 2  ;;  %p95_p1 = scmp.ne.s32.totalorder %s3728_s11, %s3724_s10 }
   0x7   : > { %p96_p2 = scmp.eq.s32.totalorder %s3535_s15, 1  ;;  %p101_p3 = scmp.ne.s32.totalorder %s3724_s10, %s3720_s9 }
   0x8   : > { %s5956_s17 = smov (%p29_p0, %s27_s17), 0  ;;  %p102_p5 = scmp.eq.s32.totalorder %s3536_s16, 1 }
   0x9   : > { %p3806_p4 = por %p96_p2, %p95_p1  ;;  %s80_s20 = ssub.s32 %s3736_s13, %s5956_s17 }
   0xa   : > { %p3539_p6 = scmp.ge.s32.totalorder %s3740_s14, 1  ;;  %p83_p7 = scmp.eq.s32.totalorder %s80_s20, 0 }
   0xb   : > { %p3813_p8 = por %p102_p5, %p101_p3  ;;  %p136_p9 = scmp.lt.s32.totalorder %s3740_s14, 3 }
   0xc   : > { %s3819_s22 = scalar_select %p83_p7, %s3728_s11, %s85_s18  }
   0xd   : > { %p137_p10 = pnand %p3539_p6, %p136_p9 }
   0xe   : > { %p163_p11 = scmp.lt.s32.totalorder (!%p137_p10), %s3732_s12, 1  ;;  %s159_s26 = sand.u32 (!%p137_p10), 1, %s3724_s10  }
   0xf   : > { %140 = sbr.rel (%p137_p10) target bundleno = 894 (0x37e), region = 28  ;;  %s3597_s29 = sshll.u32 (!%p137_p10), %s3732_s12, 7 }
  0x10   : > { %s3452_s4 = scalar_lea.hbm (!%p137_p10), %s5919_s2, %s3597_s29  ;;  %s3682_s18 = scalar_lea.hbm (!%p137_p10), %s5919_s2, 256 }
  0x11   : > { %s3455_s6 = sshll.u32 (!%p137_p10), %s3452_s4, 4  ;;  %s3456_s6 = int_to_ptr.hbm [resolvable:$true] %s3455_s6 }
  0x12   : > { %s3676_s7 = sshra.s32 (!%p137_p10), %s3456_s6, 4  ;;  %s3677_s7 = int_to_ptr.hbm [resolvable:$true] %s3676_s7 }
  0x13   : > { %s3678_s8 = scalar_lea.hbm (!%p137_p10), %s3677_s7, 128  ;;  %p3683_p1 = scmp.lt.s32.totalorder (!%p137_p10), %s3677_s7, %s5919_s2 }
  0x14   : > { %v173_v0 = vld [vmem:[%s5918_s1] sm:$0xff]  ;;  %vm186_vm0 = vcmask 31744   ;;  %v174_v2 = vld [vmem:[%s5918_s1 + $0x8] sm:$0xff]  ;;  %s164_s27 = scalar_select %p163_p11, %s3732_s12, 1  ;;  %v175_v9 = vld [vmem:[%s5918_s1 + $0x10] sm:$0xff]  ;;  %vm211_vm1 = vcmask 1043456  }
  0x15   : > { %v188_v1 = vsel %vm186_vm0, %v173_v0, 0  ;;  %v191_v5 = vsel %vm186_vm0, %v174_v2, 0  ;;  %v194_v10 = vsel %vm186_vm0, %v175_v9, 0  ;;  %v176_v22 = vld [vmem:[%s5918_s1 + $0x18] sm:$0xff]  ;;  %v177_v37 = vld [vmem:[%s5918_s1 + $0x20] sm:$0xff]  ;;  %v178_v44 = vld [vmem:[%s5918_s1 + $0x28] sm:$0xff]  ;;  %p3679_p12 = scmp.ne.s32.totalorder %s3677_s7, %s3678_s8  ;;  %p3684_p2 = scmp.lt.s32.totalorder %s3682_s18, %s3678_s8 }
  0x16   : > { %v3830_v3 = vand.u32 4294901760, %v188_v1  ;;  %s3596_s28 = sshll.u32 %s164_s27, 3  ;;  %v3842_v8 = vand.u32 4294901760, %v191_v5  ;;  %v3853_v13 = vand.u32 4294901760, %v194_v10  ;;  %v197_v29 = vsel %vm186_vm0, %v176_v22, 0  ;;  %v179_v51 = vld [vmem:[%s5918_s1 + $0x30] sm:$0xff] }
  0x17   : > { %s170_s3 = scalar_lea.vmem %s5917_s0, %s3596_s28  ;;  %v3877_v34 = vand.u32 4294901760, %v197_v29  ;;  %v200_v40 = vsel %vm186_vm0, %v177_v37, 0  ;;  %v203_v47 = vsel %vm186_vm0, %v178_v44, 0  ;;  %v206_v54 = vsel %vm186_vm0, %v179_v51, 0  ;;  %v180_v58 = vld [vmem:[%s5918_s1 + $0x38] sm:$0xff]  ;;  %s3540_s27 = sshll.u32 %s159_s26, 7 }
  0x18   : > { %v3833_v4 = vsub.f32 %v188_v1, %v3830_v3  ;;  %v181_v6 = vld [vmem:[%s170_s3] sm:$0xff]  ;;  %v3851_v12 = vsub.f32 %v191_v5, %v3842_v8  ;;  %v3868_v26 = vsub.f32 %v194_v10, %v3853_v13  ;;  %v3897_v43 = vand.u32 4294901760, %v200_v40  ;;  %s4373_s28 = scalar_lea.vmem [#allocation2], %s3540_s27  ;;  %s3439_s12 = scalar_lea.sflag [#allocation3], %s159_s26 }
  0x19   : > { %183 = vst [vmem:[#allocation1] ss:$2 sm:$0xff] %v181_v6  ;;  %v3887_v39 = vsub.f32 %v197_v29, %v3877_v34  ;;  %v3915_v50 = vand.u32 4294901760, %v203_v47  ;;  %v3932_v57 = vand.u32 4294901760, %v206_v54  ;;  %v209_v61 = vsel %vm186_vm0, %v180_v58, 0  ;;  %s3453_s5 = sshll.u32 %s4373_s28, 4  ;;  %p3680_p13 = pnand %p3679_p12, %p3806_p4  ;;  %s3454_s5 = int_to_ptr.vmem [resolvable:$true] %s3453_s5 }
  0x1a   : > { %v3840_v7 = vand.u32 4294901760, %v3833_v4  ;;  %v3858_v19 = vand.u32 4294901760, %v3851_v12  ;;  %v3875_v33 = vand.u32 4294901760, %v3868_v26  ;;  %v3907_v46 = vsub.f32 %v200_v40, %v3897_v43  ;;  %p3685_p3 = por %p3684_p2, %p3683_p1 }
  0x1b   : > { %v3895_v42 = vand.u32 4294901760, %v3887_v39  ;;  %v3924_v53 = vsub.f32 %v203_v47, %v3915_v50  ;;  %v3941_v60 = vsub.f32 %v206_v54, %v3932_v57  ;;  %v3949_v0 = vand.u32 4294901760, %v209_v61  ;;  %p3681_p0 = pneg %p3680_p13 }
  0x1c   : > { %v236_v11 = vsub.f32 %v3833_v4, %v3840_v7  ;;  %v244_v25 = vsub.f32 %v3851_v12, %v3858_v19  ;;  %v252_v38 = vsub.f32 %v3868_v26, %v3875_v33  ;;  %v3913_v49 = vand.u32 4294901760, %v3907_v46 }
  0x1d   : > { %v260_v45 = vsub.f32 %v3887_v39, %v3895_v42  ;;  %v3930_v56 = vand.u32 4294901760, %v3924_v53  ;;  %v3947_v63 = vand.u32 4294901760, %v3941_v60  ;;  %v3955_v2 = vsub.f32 %v209_v61, %v3949_v0  ;;  %p3686_p5 = pnand %p3685_p3, %p3681_p0 }
  0x1e   : > { %v3855_v17 = vand.u32 4294901760, %v236_v11  ;;  %v3872_v32 = vand.u32 4294901760, %v244_v25  ;;  %v3892_v41 = vand.u32 4294901760, %v252_v38  ;;  %v268_v52 = vsub.f32 %v3907_v46, %v3913_v49 }
  0x1f   : > { %v261_v48 = vand.u32 4294901760, %v260_v45  ;;  %v276_v59 = vsub.f32 %v3924_v53, %v3930_v56  ;;  %v284_v1 = vsub.f32 %v3941_v60, %v3947_v63  ;;  %v3960_v6 = vand.u32 4294901760, %v3955_v2 }
  0x20   : > { %v184_v14 = vld.sshfl [vmem:[#allocation1] sm:$0xff pattern:$0x75316420]  ;;  %v185_v15 = vld.sshfl [vmem:[#allocation1 + $0x8] sm:$0xff pattern:$0x75316420] }
  0x21   : > { %v212_v16 = vsel %vm211_vm1, %v184_v14, 0  ;;  %v214_v18 = vsel %vm211_vm1, %v185_v15, 0  ;;  %v269_v55 = vand.u32 4294901760, %v268_v52  ;;  %v277_v62 = vand.u32 4294901760, %v276_v59 }
  0x22   : > { %v231_v20 = vand.u32 4294901760, %v212_v16  ;;  %v594_v21 = vand.u32 4294901760, %v214_v18  ;;  %v285_v5 = vand.u32 4294901760, %v284_v1  ;;  %v292_v9 = vsub.f32 %v3955_v2, %v3960_v6 }
  0x24   : > { %232 = vmatpush.msra.mxu0 %v231_v20  ;;  %v314_v23 = vsub.f32 %v212_v16, %v231_v20  ;;  %427 = vmatpush.msra.mxu3 %v231_v20  ;;  %v677_v24 = vsub.f32 %v214_v18, %v594_v21  ;;  %v293_v10 = vand.u32 4294901760, %v292_v9 }
  0x25   : > { %238 = vmatmul.f32.vlgmr.msra.gmra.mxu0 %v3855_v17  ;;  %431 = vmatmul.f32.vlgmr.msra.gmra.mxu3 %v3840_v7 }
  0x26   : > { %369 = vmatpush.msra.mxu2 %v314_v23  ;;  %v315_v27 = vand.u32 4294901760, %v314_v23  ;;  %v678_v28 = vand.u32 4294901760, %v677_v24 }
  0x27   : > { %372 = vmatmul.f32.vlgmr.msra.gmra.mxu2 %v3833_v4 }
  0x28   : > { %595 = vmatpush.msrb.mxu2 %v594_v21  ;;  %v316_v30 = vsub.f32 %v314_v23, %v315_v27  ;;  %495 = vmatpush.msrb.mxu0 %v315_v27  ;;  %v679_v31 = vsub.f32 %v677_v24, %v678_v28 }
  0x2a   : > { %858 = vmatpush.msra.mxu2 %v678_v28  ;;  %732 = vmatpush.msra.mxu0 %v677_v24  ;;  %v317_v35 = vand.u32 4294901760, %v316_v30  ;;  %v680_v36 = vand.u32 4294901760, %v679_v31 }
  0x2c   : > { %318 = vmatpush.msra.mxu1 %v317_v35  ;;  %681 = vmatpush.msrb.mxu3 %v680_v36 }
  0x2d   : > { %246 = vmatmul.f32.gmra.mxu0 %v3872_v32  ;;  %320 = vmatmul.f32.vlgmr.msra.gmra.mxu1 %v3830_v3 }
  0x2e   : > { %545 = vmatpush.msrb.mxu1 %v231_v20  ;;  %437 = vmatmul.f32.gmra.mxu3 %v3858_v19 }
  0x2f   : > { %377 = vmatmul.f32.gmra.mxu2 %v3851_v12  ;;  %908 = vmatpush.msra.mxu3 %v594_v21 }
  0x30   : > { %790 = vmatpush.msra.mxu1 %v594_v21 }
  0x35   : > { %254 = vmatmul.f32.gmra.mxu0 %v3892_v41  ;;  %324 = vmatmul.f32.gmra.mxu1 %v3842_v8 }
  0x36   : > { %443 = vmatmul.f32.gmra.mxu3 %v3875_v33 }
  0x37   : > { %382 = vmatmul.f32.gmra.mxu2 %v3868_v26 }
  0x3d   : > { %262 = vmatmul.f32.gmra.mxu0 %v261_v48  ;;  %328 = vmatmul.f32.gmra.mxu1 %v3853_v13 }
  0x3e   : > { %449 = vmatmul.f32.gmra.mxu3 %v3895_v42 }
  0x3f   : > { %387 = vmatmul.f32.gmra.mxu2 %v3887_v39 }
  0x45   : > { %270 = vmatmul.f32.gmra.mxu0 %v269_v55  ;;  %332 = vmatmul.f32.gmra.mxu1 %v3877_v34 }
  0x46   : > { %455 = vmatmul.f32.gmra.mxu3 %v3913_v49 }
  0x47   : > { %392 = vmatmul.f32.gmra.mxu2 %v3907_v46 }
  0x4d   : > { %278 = vmatmul.f32.gmra.mxu0 %v277_v62  ;;  %336 = vmatmul.f32.gmra.mxu1 %v3897_v43 }
  0x4e   : > { %461 = vmatmul.f32.gmra.mxu3 %v3930_v56 }
  0x4f   : > { %397 = vmatmul.f32.gmra.mxu2 %v3924_v53 }
  0x55   : > { %286 = vmatmul.f32.gmra.mxu0 %v285_v5  ;;  %340 = vmatmul.f32.gmra.mxu1 %v3915_v50 }
  0x56   : > { %467 = vmatmul.f32.gmra.mxu3 %v3947_v63 }
  0x57   : > { %402 = vmatmul.f32.gmra.mxu2 %v3941_v60 }
  0x5d   : > { %294 = vmatmul.f32.gmra.mxu0 %v293_v10  ;;  %344 = vmatmul.f32.gmra.mxu1 %v3932_v57 }
  0x5e   : > { %473 = vmatmul.f32.gmra.mxu3 %v3960_v6 }
  0x5f   : > { %407 = vmatmul.f32.gmra.mxu2 %v3955_v2 }
  0x65   : > { %348 = vmatmul.f32.gmra.mxu1 %v3949_v0  ;;  %497 = vmatmul.f32.vlgmr.msrb.gmra.mxu0 %v3830_v3 }
  0x66   : > { %683 = vmatmul.f32.vlgmr.msrb.gmra.mxu3 %v3830_v3 }
  0x67   : > { %601 = vmatmul.f32.vlgmr.msrb.gmra.mxu2 %v3855_v17 }
  0x6d   : > { %501 = vmatmul.f32.gmra.mxu0 %v3842_v8  ;;  %547 = vmatmul.f32.vlgmr.msrb.gmra.mxu1 %v3830_v3 }
  0x6e   : > { %687 = vmatmul.f32.gmra.mxu3 %v3842_v8 }
  0x6f   : > { %609 = vmatmul.f32.gmra.mxu2 %v3872_v32 }
  0x75   : > { %505 = vmatmul.f32.gmra.mxu0 %v3853_v13  ;;  %551 = vmatmul.f32.gmra.mxu1 %v3842_v8 }
  0x76   : > { %691 = vmatmul.f32.gmra.mxu3 %v3853_v13 }
  0x77   : > { %617 = vmatmul.f32.gmra.mxu2 %v3892_v41 }
  0x7d   : > { %509 = vmatmul.f32.gmra.mxu0 %v3877_v34  ;;  %555 = vmatmul.f32.gmra.mxu1 %v3853_v13 }
  0x7e   : > { %695 = vmatmul.f32.gmra.mxu3 %v3877_v34 }
  0x7f   : > { %625 = vmatmul.f32.gmra.mxu2 %v261_v48 }
  0x85   : > { %513 = vmatmul.f32.gmra.mxu0 %v3897_v43  ;;  %559 = vmatmul.f32.gmra.mxu1 %v3877_v34 }
  0x86   : > { %699 = vmatmul.f32.gmra.mxu3 %v3897_v43 }
  0x87   : > { %633 = vmatmul.f32.gmra.mxu2 %v269_v55 }
  0x8d   : > { %517 = vmatmul.f32.gmra.mxu0 %v3915_v50  ;;  %563 = vmatmul.f32.gmra.mxu1 %v3897_v43 }
  0x8e   : > { %703 = vmatmul.f32.gmra.mxu3 %v3915_v50 }
  0x8f   : > { %641 = vmatmul.f32.gmra.mxu2 %v277_v62 }
  0x95   : > { %521 = vmatmul.f32.gmra.mxu0 %v3932_v57  ;;  %567 = vmatmul.f32.gmra.mxu1 %v3915_v50 }
  0x96   : > { %707 = vmatmul.f32.gmra.mxu3 %v3932_v57 }
  0x97   : > { %649 = vmatmul.f32.gmra.mxu2 %v285_v5 }
  0x9d   : > { %525 = vmatmul.f32.gmra.mxu0 %v3949_v0  ;;  %571 = vmatmul.f32.gmra.mxu1 %v3932_v57 }
  0x9e   : > { %711 = vmatmul.f32.gmra.mxu3 %v3949_v0 }
  0x9f   : > { %657 = vmatmul.f32.gmra.mxu2 %v293_v10 }
  0xa2   : > { %v3997_v11 = vpop.f32.mrf.mxu0 }
  0xa5   : > { %575 = vmatmul.f32.gmra.mxu1 %v3949_v0  ;;  %735 = vmatmul.f32.vlgmr.msra.gmra.mxu0 %v3833_v4 }
  0xa6   : > { %910 = vmatmul.f32.vlgmr.msra.gmra.mxu3 %v3830_v3 }
  0xa7   : > { %860 = vmatmul.f32.vlgmr.msra.gmra.mxu2 %v3830_v3 }
  0xa8   : > { %v4003_v14 = vpop.f32.mrf.mxu3 }
  0xaa   : > { %v247_v15 = vpop.f32.mrf.mxu0  ;;  %v321_v16 = vpop.f32.mrf.mxu1 }
  0xab   : > { %v373_v17 = vpop.f32.mrf.mxu2 }
  0xad   : > { %740 = vmatmul.f32.gmra.mxu0 %v3851_v12  ;;  %794 = vmatmul.f32.vlgmr.msra.gmra.mxu1 %v3840_v7 }
  0xae   : > { %914 = vmatmul.f32.gmra.mxu3 %v3842_v8 }
  0xaf   : > { %864 = vmatmul.f32.gmra.mxu2 %v3842_v8 }
  0xb1   : > { %v4009_v18 = vpop.f32.mrf.mxu3 }
  0xb2   : > { %v255_v4 = vpop.f32.mrf.mxu0  ;;  %v325_v20 = vpop.f32.mrf.mxu1 }
  0xb3   : > { %v4011_v21 = vadd.f32 %v325_v20, %v247_v15  ;;  %v378_v3 = vpop.f32.mrf.mxu2 }
  0xb5   : > { %745 = vmatmul.f32.gmra.mxu0 %v3868_v26  ;;  %800 = vmatmul.f32.gmra.mxu1 %v3858_v19 }
  0xb6   : > { %918 = vmatmul.f32.gmra.mxu3 %v3853_v13 }
  0xb7   : > { %868 = vmatmul.f32.gmra.mxu2 %v3853_v13 }
  0xb9   : > { %v4017_v7 = vpop.f32.mrf.mxu3 }
  0xba   : > { %v263_v12 = vpop.f32.mrf.mxu0  ;;  %v329_v22 = vpop.f32.mrf.mxu1 }
  0xbb   : > { %v4019_v8 = vadd.f32 %v329_v22, %v255_v4  ;;  %v4021_v23 = vpop.f32.mrf.mxu2  ;;  %v3742_v22 = vmov 683565275  }
  0xbd   : > { %750 = vmatmul.f32.gmra.mxu0 %v3887_v39  ;;  %806 = vmatmul.f32.gmra.mxu1 %v3875_v33 }
  0xbe   : > { %922 = vmatmul.f32.gmra.mxu3 %v3877_v34 }
  0xbf   : > { %872 = vmatmul.f32.gmra.mxu2 %v3877_v34 }
  0xc1   : > { %v4027_v19 = vpop.f32.mrf.mxu3 }
  0xc2   : > { %v271_v24 = vpop.f32.mrf.mxu0  ;;  %v333_v13 = vpop.f32.mrf.mxu1 }
  0xc3   : > { %v4029_v25 = vadd.f32 %v333_v13, %v263_v12  ;;  %v4031_v26 = vpop.f32.mrf.mxu2  ;;  %v3743_v13 = vmov 2475754826  }
  0xc5   : > { %755 = vmatmul.f32.gmra.mxu0 %v3907_v46  ;;  %812 = vmatmul.f32.gmra.mxu1 %v3895_v42  ;;  %v322_v42 = vadd.f32 %v321_v16, %v3997_v11 }
  0xc6   : > { %926 = vmatmul.f32.gmra.mxu3 %v3897_v43 }
  0xc7   : > { %876 = vmatmul.f32.gmra.mxu2 %v3897_v43  ;;  %v374_v45 = vadd.f32 %v373_v17, %v322_v42  ;;  %v3746_v42 = vmov 920167782  }
  0xc9   : > { %v4037_v27 = vpop.f32.mrf.mxu3 }
  0xca   : > { %v279_v28 = vpop.f32.mrf.mxu0  ;;  %v337_v29 = vpop.f32.mrf.mxu1 }
  0xcb   : > { %v4039_v30 = vadd.f32 %v337_v29, %v271_v24  ;;  %v4041_v31 = vpop.f32.mrf.mxu2  ;;  %v3744_v29 = vmov 2131351028  }
  0xcd   : > { %760 = vmatmul.f32.gmra.mxu0 %v3924_v53  ;;  %818 = vmatmul.f32.gmra.mxu1 %v3913_v49  ;;  %v433_v49 = vadd.f32 %v4003_v14, %v374_v45  ;;  %v379_v53 = vadd.f32 %v378_v3, %v4011_v21 }
  0xce   : > { %930 = vmatmul.f32.gmra.mxu3 %v3915_v50 }
  0xcf   : > { %880 = vmatmul.f32.gmra.mxu2 %v3915_v50  ;;  %v439_v59 = vadd.f32 %v4009_v18, %v379_v53  ;;  %v384_v18 = vadd.f32 %v4021_v23, %v4019_v8 }
  0xd1   : > { %v4047_v32 = vpop.f32.mrf.mxu3 }
  0xd2   : > { %v287_v33 = vpop.f32.mrf.mxu0  ;;  %v341_v34 = vpop.f32.mrf.mxu1 }
  0xd3   : > { %v4049_v35 = vadd.f32 %v341_v34, %v279_v28  ;;  %v4051_v36 = vpop.f32.mrf.mxu2  ;;  %v3745_v34 = vmov 2102212464  }
  0xd5   : > { %765 = vmatmul.f32.gmra.mxu0 %v3941_v60  ;;  %824 = vmatmul.f32.gmra.mxu1 %v3930_v56 }
  0xd6   : > { %934 = vmatmul.f32.gmra.mxu3 %v3932_v57 }
  0xd7   : > { %884 = vmatmul.f32.gmra.mxu2 %v3932_v57 }
  0xd9   : > { %v4057_v37 = vpop.f32.mrf.mxu3 }
  0xda   : > { %v295_v38 = vpop.f32.mrf.mxu0  ;;  %v345_v39 = vpop.f32.mrf.mxu1 }
  0xdb   : > { %v4059_v40 = vadd.f32 %v345_v39, %v287_v33  ;;  %v4061_v41 = vpop.f32.mrf.mxu2 }
  0xdd   : > { %770 = vmatmul.f32.gmra.mxu0 %v3955_v2  ;;  %830 = vmatmul.f32.gmra.mxu1 %v3947_v63 }
  0xde   : > { %938 = vmatmul.f32.gmra.mxu3 %v3949_v0 }
  0xdf   : > { %888 = vmatmul.f32.gmra.mxu2 %v3949_v0 }
  0xe1   : > { %v4068_v43 = vpop.f32.mrf.mxu3 }
  0xe2   : > { %v349_v44 = vpop.f32.mrf.mxu1  ;;  %v498_v48 = vpop.f32.mrf.mxu0 }
  0xe3   : > { %v4070_v46 = vadd.f32 %v349_v44, %v295_v38  ;;  %v4072_v47 = vpop.f32.mrf.mxu2  ;;  %v499_v50 = vadd.f32 %v498_v48, %v433_v49  ;;  %v3747_v48 = vmov 1326507024  }
  0xe5   : > { %836 = vmatmul.f32.gmra.mxu1 %v3960_v6 }
  0xe9   : > { %v4076_v51 = vpop.f32.mrf.mxu3 }
  0xea   : > { %v548_v52 = vpop.f32.mrf.mxu1  ;;  %v502_v58 = vpop.f32.mrf.mxu0 }
  0xeb   : > { %v4079_v54 = vadd.f32 %v548_v52, %v499_v50  ;;  %v4081_v55 = vpop.f32.mrf.mxu2  ;;  %v503_v62 = vadd.f32 %v502_v58, %v439_v59 }
  0xed   : > { %v942_v56 = vand.u32 2147483647, %v4079_v54  ;;  %v945_v57 = vand.u32 2139095040, %v4079_v54  ;;  %vm944_vm1 = vcmp.lt.s32.totalorder %v4079_v54, 0 }
  0xef   : > { %v946_v60 = vshrl.u32 %v945_v57, 23  ;;  %v949_v61 = vand.u32 8388607, %v942_v56 }
  0xf1   : > { %v3543_v63 = vadd.s32 4294967169, %v946_v60  ;;  %v950_v0 = vor.u32 8388608, %v949_v61  ;;  %v688_v1 = vpop.f32.mrf.mxu3 }
  0xf2   : > { %v552_v2 = vpop.f32.mrf.mxu1 }
  0xf3   : > { %v952_v5 = vadd.s32 1, %v3543_v63  ;;  %v4088_v6 = vadd.f32 %v552_v2, %v503_v62  ;;  %v610_v9 = vpop.f32.mrf.mxu2  ;;  %v4092_v11 = vshll.u32 %v950_v0, 8 }
  0xf4   : > { %v4090_v10 = vadd.f32 %v688_v1, %v610_v9 }
  0xf5   : > { %vm953_vm2 = vcmp.gt.s32.totalorder %v952_v5, 0  ;;  %v5920_v14 = vand.u32 2147483647, %v4088_v6  ;;  %v1255_v16 = vand.u32 2139095040, %v4088_v6  ;;  %v991_v21 = vand.u32 65535, %v4092_v11 }
  0xf6   : > { %v954_v15 = vsel %vm953_vm2, %v952_v5, 0 }
  0xf7   : > { %v956_v17 = vand.u32 31, %v954_v15  ;;  %v955_v4 = vshrl.u32 %v954_v15, 5  ;;  %v1256_v3 = vshrl.u32 %v1255_v16, 23  ;;  %v1259_v12 = vand.u32 8388607, %v5920_v14 }
  0xf9   : > { %v957_v20 = vsub.s32 32, %v956_v17  ;;  %v959_v24 = vshll.u32 %v3742_v22, %v956_v17  ;;  %v962_v28 = vshll.u32 %v3743_v13, %v956_v17  ;;  %v965_v33 = vshll.u32 %v3744_v29, %v956_v17 }
  0xfa   : > { %v968_v8 = vshll.u32 %v3745_v34, %v956_v17  ;;  %v971_v44 = vshll.u32 %v3746_v42, %v956_v17  ;;  %vm974_vm3 = vcmp.lt.s32.totalorder %v955_v4, 1  ;;  %vm975_vm4 = vcmp.lt.s32.totalorder %v955_v4, 2 }
  0xfb   : > { %v960_v23 = vshrl.u32 %v3743_v13, %v957_v20  ;;  %v963_v38 = vshrl.u32 %v3744_v29, %v957_v20  ;;  %v966_v39 = vshrl.u32 %v3745_v34, %v957_v20  ;;  %v969_v45 = vshrl.u32 %v3746_v42, %v957_v20 }
  0xfc   : > { %v972_v49 = vshrl.u32 %v3747_v48, %v957_v20  ;;  %v3549_v57 = vadd.s32 4294967169, %v1256_v3  ;;  %v958_v58 = vshrl.u32 %v3742_v22, %v957_v20  ;;  %vm977_vm5 = vcmp.lt.s32.totalorder %v955_v4, 4 }
  0xfd   : > { %v961_v50 = vor.u32 %v960_v23, %v959_v24  ;;  %v964_v52 = vor.u32 %v963_v38, %v962_v28  ;;  %v967_v53 = vor.u32 %v966_v39, %v965_v33  ;;  %v970_v59 = vor.u32 %v969_v45, %v968_v8 }
  0xfe   : > { %v973_v60 = vor.u32 %v972_v49, %v971_v44  ;;  %vm976_vm6 = vcmp.lt.s32.totalorder %v955_v4, 3  ;;  %v1260_v2 = vor.u32 8388608, %v1259_v12  ;;  %v1262_v5 = vadd.s32 1, %v3549_v57 }
  0xff   : > { %v979_v61 = vsel %vm977_vm5, %v967_v53, 2102212464  ;;  %v982_v62 = vsel %vm974_vm3, %v961_v50, %v964_v52  ;;  %v986_v63 = vsel %vm974_vm3, %v964_v52, %v967_v53  ;;  %v983_v0 = vsel %vm977_vm5, %v970_v59, 920167782 }
 0x100   : > { %v987_v1 = vsel %vm977_vm5, %v973_v60, 1326507024  ;;  %v978_v9 = vsel %vm974_vm3, %v958_v58, %v961_v50  ;;  %v980_v15 = vsel %vm976_vm6, %v964_v52, %v979_v61  ;;  %v984_v16 = vsel %vm976_vm6, %v967_v53, %v983_v0 }
 0x101   : > { %v988_v17 = vsel %vm976_vm6, %v970_v59, %v987_v1  ;;  %v985_v20 = vsel %vm975_vm4, %v982_v62, %v984_v16  ;;  %v992_v24 = vshrl.u32 %v4092_v11, 16  ;;  %vm1263_vm7 = vcmp.gt.s32.totalorder %v1262_v5, 0 }
 0x102   : > { %v989_v3 = vsel %vm975_vm4, %v986_v63, %v988_v17  ;;  %v1015_v8 = vand.u32 65535, %v985_v20  ;;  %v1016_v23 = vshrl.u32 %v985_v20, 16  ;;  %v445_v38 = vadd.f32 %v4017_v7, %v384_v18 }
 0x103   : > { %v993_v28 = vand.u32 65535, %v989_v3  ;;  %v994_v33 = vshrl.u32 %v989_v3, 16  ;;  %v4120_v12 = vsel %vm975_vm4, %v978_v9, %v980_v15  ;;  %v1264_v45 = vsel %vm1263_vm7, %v1262_v5, 0 }
 0x104   : > { %v4122_v49 = vshll.u32 %v1260_v2, 8  ;;  %v1018_v53 = vmul.u32 %v1016_v23, %v991_v21  ;;  %v1019_v57 = vmul.u32 %v1015_v8, %v992_v24  ;;  %v1017_v60 = vmul.u32 %v1015_v8, %v991_v21 }
 0x105   : > { %v996_v39 = vmul.u32 %v994_v33, %v991_v21  ;;  %v997_v44 = vmul.u32 %v993_v28, %v992_v24  ;;  %v995_v50 = vmul.u32 %v993_v28, %v991_v21  ;;  %v998_v52 = vmul.u32 %v994_v33, %v992_v24 }
 0x106   : > { %v1020_v61 = vmul.u32 %v1016_v23, %v992_v24  ;;  %v1021_v0 = vshll.u32 %v1018_v53, 16  ;;  %v1022_v7 = vshrl.u32 %v1018_v53, 16  ;;  %v1023_v4 = vshll.u32 %v1019_v57, 16 }
 0x107   : > { %v999_v58 = vshll.u32 %v996_v39, 16  ;;  %v1000_v59 = vshrl.u32 %v996_v39, 16  ;;  %v1001_v62 = vshll.u32 %v997_v44, 16  ;;  %v1002_v63 = vshrl.u32 %v997_v44, 16 }
 0x108   : > { %v1266_v1 = vand.u32 31, %v1264_v45  ;;  %v3748_v9 = vmov 0   ;;  %v1024_v5 = vshrl.u32 %v1019_v57, 16  ;;  %vm1025_vm9 = vc.u32 %v1017_v60, %v1021_v0  ;;  %v506_v57 = vpop.f32.mrf.mxu0 }
 0x109   : > { %vm1003_vm8 = vc.u32 %v995_v50, %v999_v58  ;;  %v1005_v18 = vadd.s32 %v999_v58, %v995_v50  ;;  %v1027_v15 = vadd.s32 %v1021_v0, %v1017_v60  ;;  %v1026_v17 = vsel %vm1025_vm9, 1, %v3748_v9 }
 0x10a   : > { %v1004_v2 = vsel %vm1003_vm8, 1, %v3748_v9  ;;  %v4126_v21 = vsub.s32 32, %v1266_v1  ;;  %v1028_v3 = vadd.s32 %v1026_v17, %v1020_v61  ;;  %v4129_v24 = vshrl.u32 %v1264_v45, 5 }
 0x10b   : > { %v1006_v16 = vadd.s32 %v1004_v2, %v998_v52  ;;  %vm1007_vm10 = vc.u32 %v1005_v18, %v1001_v62  ;;  %vm1029_vm11 = vc.u32 %v1027_v15, %v1023_v4  ;;  %v4132_v8 = vadd.s32 %v1027_v15, %v1023_v4 }
 0x10c   : > { %v1008_v20 = vsel %vm1007_vm10, 1, %v3748_v9  ;;  %v1030_v33 = vsel %vm1029_vm11, 1, %v3748_v9  ;;  %v1269_v23 = vshll.u32 %v3742_v22, %v1266_v1  ;;  %v1270_v44 = vshrl.u32 %v3743_v13, %v4126_v21 }
 0x10d   : > { %v1010_v28 = vadd.s32 %v1008_v20, %v1006_v16  ;;  %v1032_v39 = vadd.s32 %v1030_v33, %v1028_v3  ;;  %v1272_v50 = vshll.u32 %v3743_v13, %v1266_v1  ;;  %v1273_v52 = vshrl.u32 %v3744_v29, %v4126_v21 }
 0x10e   : > { %v1275_v45 = vshll.u32 %v3744_v29, %v1266_v1  ;;  %v1276_v58 = vshrl.u32 %v3745_v34, %v4126_v21  ;;  %v1278_v60 = vshll.u32 %v3745_v34, %v1266_v1  ;;  %v4144_v62 = vor.u32 %v1270_v44, %v1269_v23 }
 0x10f   : > { %v1011_v53 = vadd.s32 %v1010_v28, %v1000_v59  ;;  %v1033_v61 = vadd.s32 %v1032_v39, %v1022_v7  ;;  %v4146_v0 = vor.u32 %v1273_v52, %v1272_v50  ;;  %v1279_v18 = vshrl.u32 %v3746_v42, %v4126_v21  ;;  %v556_v28 = vpop.f32.mrf.mxu1 }
 0x110   : > { %v1277_v2 = vor.u32 %v1276_v58, %v1275_v45  ;;  %v1281_v59 = vshll.u32 %v3746_v42, %v1266_v1  ;;  %v1282_v15 = vshrl.u32 %v3747_v48, %v4126_v21  ;;  %v507_v17 = vadd.f32 %v506_v57, %v445_v38 }
 0x111   : > { %v4150_v4 = vadd.s32 %v1011_v53, %v1002_v63  ;;  %v1034_v16 = vadd.s32 %v1033_v61, %v1024_v5  ;;  %v1280_v20 = vor.u32 %v1279_v18, %v1278_v60  ;;  %v1035_v7 = vmul.u32 %v4092_v11, %v4120_v12 }
 0x112   : > { %v1283_v3 = vor.u32 %v1282_v15, %v1281_v59  ;;  %vm1284_vm13 = vcmp.lt.s32.totalorder %v4129_v24, 1  ;;  %vm1287_vm14 = vcmp.lt.s32.totalorder %v4129_v24, 4  ;;  %v1301_v38 = vand.u32 65535, %v4122_v49 }
 0x113   : > { %vm1037_vm12 = vc.u32 %v4150_v4, %v4132_v8  ;;  %v1038_v63 = vadd.s32 1, %v1034_v16  ;;  %v1292_v1 = vsel %vm1284_vm13, %v4144_v62, %v4146_v0  ;;  %vm1286_vm15 = vcmp.lt.s32.totalorder %v4129_v24, 3 }
 0x114   : > { %v1293_v11 = vsel %vm1287_vm14, %v1280_v20, 920167782  ;;  %v1296_v12 = vsel %vm1284_vm13, %v4146_v0, %v1277_v2  ;;  %v1297_v5 = vsel %vm1287_vm14, %v1283_v3, 1326507024  ;;  %vm1285_vm0 = vcmp.lt.s32.totalorder %v4129_v24, 2 }
 0x115   : > { %v1039_v33 = vsel %vm1037_vm12, %v1038_v63, %v1034_v16  ;;  %v1294_v23 = vsel %vm1286_vm15, %v1277_v2, %v1293_v11  ;;  %v1298_v39 = vsel %vm1286_vm15, %v1280_v20, %v1297_v5  ;;  %v1302_v53 = vshrl.u32 %v4122_v49, 16 }
 0x116   : > { %v1040_v44 = vadd.s32 %v1039_v33, %v1035_v7  ;;  %v1295_v50 = vsel %vm1285_vm0, %v1292_v1, %v1294_v23  ;;  %v1299_v52 = vsel %vm1285_vm0, %v1296_v12, %v1298_v39  ;;  %v4184_v60 = vadd.f32 %v556_v28, %v507_v17 }
 0x117   : > { %v1303_v57 = vand.u32 65535, %v1299_v52  ;;  %v1304_v45 = vshrl.u32 %v1299_v52, 16  ;;  %v1326_v58 = vshrl.u32 %v1295_v50, 16  ;;  %v1325_v18 = vand.u32 65535, %v1295_v50 }
 0x118   : > { %v1041_v61 = vadd.s32 536870912, %v1040_v44  ;;  %v5922_v63 = vand.u32 2147483647, %v4184_v60  ;;  %v1289_v39 = vsel %vm1287_vm14, %v1277_v2, 2102212464  ;;  %v1565_v2 = vand.u32 2139095040, %v4184_v60 }
 0x119   : > { %v1306_v59 = vmul.u32 %v1304_v45, %v1301_v38  ;;  %v1307_v15 = vmul.u32 %v1303_v57, %v1302_v53  ;;  %v1328_v20 = vmul.u32 %v1326_v58, %v1301_v38  ;;  %v1305_v7 = vmul.u32 %v1303_v57, %v1301_v38 }
 0x11a   : > { %v1042_v16 = vshrl.u32 %v1041_v61, 30  ;;  %v1308_v11 = vmul.u32 %v1304_v45, %v1302_v53  ;;  %v1329_v12 = vmul.u32 %v1325_v18, %v1302_v53  ;;  %v1327_v28 = vmul.u32 %v1325_v18, %v1301_v38 }
 0x11b   : > { %v1309_v3 = vshll.u32 %v1306_v59, 16  ;;  %v1331_v5 = vshll.u32 %v1328_v20, 16  ;;  %v1311_v33 = vshll.u32 %v1307_v15, 16  ;;  %v1310_v50 = vshrl.u32 %v1306_v59, 16 }
 0x11c   : > { %v1043_v1 = vshll.u32 %v1042_v16, 30  ;;  %v1330_v61 = vmul.u32 %v1326_v58, %v1302_v53  ;;  %v1268_v53 = vshrl.u32 %v3742_v22, %v4126_v21  ;;  %vm4203_vm6 = vcmp.le.f32.partialorder %v942_v56, 0.7853982 }
 0x11d   : > { %vm1313_vm2 = vc.u32 %v1305_v7, %v1309_v3  ;;  %v1315_v17 = vadd.s32 %v1309_v3, %v1305_v7  ;;  %vm1335_vm4 = vc.u32 %v1327_v28, %v1331_v5  ;;  %v1333_v7 = vshll.u32 %v1329_v12, 16 }
 0x11e   : > { %v4188_v23 = vsub.s32 %v1040_v44, %v1043_v1  ;;  %v1314_v52 = vsel %vm1313_vm2, 1, %v3748_v9  ;;  %v1336_v44 = vsel %vm1335_vm4, 1, %v3748_v9  ;;  %v1337_v18 = vadd.s32 %v1331_v5, %v1327_v28  ;;  %v692_v5 = vpop.f32.mrf.mxu3 }
 0x11f   : > { %v1316_v57 = vadd.s32 %v1314_v52, %v1308_v11  ;;  %vm1317_vm3 = vc.u32 %v1315_v17, %v1311_v33  ;;  %v1066_v3 = vsub.s32 4, %v1042_v16  ;;  %v1338_v58 = vadd.s32 %v1336_v44, %v1330_v61  ;;  %v618_v33 = vpop.f32.mrf.mxu2 }
 0x120   : > { %vm1045_vm5 = vcmp.lt.s32.totalorder %v4188_v23, 0  ;;  %v1046_v45 = vsub.s32 0, %v4188_v23  ;;  %v1318_v14 = vsel %vm1317_vm3, 1, %v3748_v9  ;;  %vm1339_vm7 = vc.u32 %v1337_v18, %v1333_v7 }
 0x121   : > { %v1320_v38 = vadd.s32 %v1318_v14, %v1316_v57  ;;  %v1288_v17 = vsel %vm1284_vm13, %v1268_v53, %v4144_v62  ;;  %v1290_v21 = vsel %vm1286_vm15, %v4146_v0, %v1289_v39  ;;  %v1312_v28 = vshrl.u32 %v1307_v15, 16 }
 0x122   : > { %v1047_v59 = vsel %vm1045_vm5, %v1046_v45, %v4188_v23  ;;  %v1340_v52 = vsel %vm1339_vm7, 1, %v3748_v9  ;;  %v1332_v57 = vshrl.u32 %v1328_v20, 16  ;;  %v1566_v45 = vshrl.u32 %v1565_v2, 23 }
 0x123   : > { %v1048_v11 = vclz %v1047_v59  ;;  %v1321_v14 = vadd.s32 %v1320_v38, %v1310_v50  ;;  %v1342_v61 = vadd.s32 %v1340_v52, %v1338_v58  ;;  %v1067_v50 = vsel %vm944_vm1, %v1066_v3, %v1042_v16 }
 0x124   : > { %v1569_v44 = vand.u32 8388607, %v5922_v63  ;;  %v4218_v59 = vadd.f32 %v692_v5, %v618_v33  ;;  %v1036_v62 = vadd.s32 %v4132_v8, %v4150_v4  ;;  %v1334_v0 = vshrl.u32 %v1329_v12, 16 }
 0x125   : > { %v3544_v56 = vadd.s32 4294967294, %v1048_v11  ;;  %v1322_v38 = vadd.s32 %v1321_v14, %v1312_v28  ;;  %v1343_v15 = vadd.s32 %v1342_v61, %v1332_v57  ;;  %v1291_v20 = vsel %vm1285_vm0, %v1288_v17, %v1290_v21 }
 0x126   : > { %v1341_v2 = vadd.s32 %v1337_v18, %v1333_v7  ;;  %v3555_v53 = vadd.s32 4294967169, %v1566_v45  ;;  %v1069_v3 = vsel %vm4203_vm6, 0, %v1067_v50  ;;  %v389_v14 = vadd.f32 %v4031_v26, %v4029_v25  ;;  %v560_v50 = vpop.f32.mrf.mxu1 }
 0x127   : > { %vm3545_vm8 = vcmp.lt.s32.totalorder %v3544_v56, 0  ;;  %v1344_v11 = vadd.s32 %v1343_v15, %v1334_v0  ;;  %v1570_v8 = vor.u32 8388608, %v1569_v44  ;;  %v394_v7 = vadd.f32 %v4041_v31, %v4039_v30 }
 0x128   : > { %v1051_v39 = vsel %vm3545_vm8, 0, %v3544_v56  ;;  %vm1347_vm9 = vc.u32 %v1322_v38, %v1341_v2  ;;  %v1572_v4 = vadd.s32 1, %v3555_v53  ;;  %v1086_v18 = vadd.s32 3, %v1069_v3  ;;  %v510_v56 = vpop.f32.mrf.mxu0 }
 0x129   : > { %v1052_v58 = vsub.s32 32, %v1051_v39  ;;  %v1056_v16 = vsub.s32 4294967266, %v1051_v39  ;;  %v1053_v12 = vshll.u32 %v4188_v23, %v1051_v39  ;;  %v1348_v24 = vadd.s32 1, %v1344_v11 }
 0x12a   : > { %v1345_v17 = vmul.u32 %v4122_v49, %v1291_v20  ;;  %vm1573_vm10 = vcmp.gt.s32.totalorder %v1572_v4, 0  ;;  %v451_v26 = vadd.f32 %v4027_v19, %v389_v14  ;;  %v4233_v45 = vshll.u32 %v1570_v8, 8 }
 0x12b   : > { %v1054_v33 = vshrl.u32 %v1036_v62, %v1052_v58  ;;  %v1057_v5 = vadd.s32 127, %v1056_v16  ;;  %v1349_v52 = vsel %vm1347_vm9, %v1348_v24, %v1344_v11  ;;  %v1574_v25 = vsel %vm1573_vm10, %v1572_v4, 0 }
 0x12c   : > { %v1350_v57 = vadd.s32 %v1349_v52, %v1345_v17  ;;  %v1576_v61 = vand.u32 31, %v1574_v25  ;;  %v4236_v44 = vadd.f32 %v4037_v27, %v394_v7  ;;  %v511_v31 = vadd.f32 %v510_v56, %v451_v26 }
 0x12d   : > { %v1055_v21 = vor.u32 %v1054_v33, %v1053_v12  ;;  %v1058_v28 = vshll.u32 %v1057_v5, 23  ;;  %v4240_v15 = vand.u32 3, %v1086_v18  ;;  %v4242_v39 = vadd.s32 %v1341_v2, %v1322_v38 }
 0x12e   : > { %v1351_v30 = vadd.s32 536870912, %v1350_v57  ;;  %v4238_v49 = vsub.s32 32, %v1576_v61  ;;  %v4248_v58 = vadd.f32 %v560_v50, %v511_v31  ;;  %v1579_v16 = vshll.u32 %v3742_v22, %v1576_v61 }
 0x12f   : > { %v1059_v23 = vor.u32 4788187, %v1058_v28  ;;  %v1062_v0 = vcvt.s32.f32 %v1055_v21  ;;  %v4254_v11 = vand.u32 65535, %v4233_v45  ;;  %v1582_v2 = vshll.u32 %v3743_v13, %v1576_v61 }
 0x130   : > { %v1352_v19 = vshrl.u32 %v1351_v30, 30  ;;  %v1580_v20 = vshrl.u32 %v3743_v13, %v4238_v49  ;;  %v1583_v53 = vshrl.u32 %v3744_v29, %v4238_v49  ;;  %v1589_v3 = vshrl.u32 %v3746_v42, %v4238_v49 }
 0x131   : > { %v1060_v62 = vand.u32 2147483647, %v1059_v23  ;;  %v1586_v14 = vshrl.u32 %v3745_v34, %v4238_v49  ;;  %v1588_v8 = vshll.u32 %v3745_v34, %v1576_v61  ;;  %v4260_v12 = vshrl.u32 %v1574_v25, 5 }
 0x132   : > { %v1353_v38 = vshll.u32 %v1352_v19, 30  ;;  %v1585_v33 = vshll.u32 %v3744_v29, %v1576_v61  ;;  %v1592_v5 = vshrl.u32 %v3747_v48, %v4238_v49  ;;  %v4267_v7 = vor.u32 %v1580_v20, %v1579_v16 }
 0x133   : > { %v1063_v27 = vmul.f32 %v1062_v0, %v1060_v62  ;;  %v4269_v18 = vor.u32 %v1583_v53, %v1582_v2  ;;  %v1590_v17 = vor.u32 %v1589_v3, %v1588_v8  ;;  %vm1254_vm11 = vcmp.lt.s32.totalorder %v4088_v6, 0 }
 0x134   : > { %v4265_v24 = vsub.s32 %v1350_v57, %v1353_v38  ;;  %v1591_v28 = vshll.u32 %v3746_v42, %v1576_v61  ;;  %v4276_v52 = vshrl.u32 %v4233_v45, 16  ;;  %v5921_v56 = vand.u32 2147483647, %v4248_v58 }
 0x135   : > { %v1064_v4 = vxor.u32 2147483648, %v1063_v27  ;;  %v1587_v57 = vor.u32 %v1586_v14, %v1585_v33  ;;  %vm1594_vm13 = vcmp.lt.s32.totalorder %v4260_v12, 1  ;;  %vm1597_vm14 = vcmp.lt.s32.totalorder %v4260_v12, 4 }
 0x136   : > { %vm1355_vm12 = vcmp.lt.s32.totalorder %v4265_v24, 0  ;;  %v1356_v26 = vsub.s32 0, %v4265_v24  ;;  %v1875_v61 = vand.u32 2139095040, %v4248_v58  ;;  %v1593_v30 = vor.u32 %v1592_v5, %v1591_v28 }
 0x137   : > { %v1065_v21 = vsel %vm944_vm1, %v1064_v4, %v1063_v27  ;;  %v1602_v1 = vsel %vm1594_vm13, %v4267_v7, %v4269_v18  ;;  %v1603_v31 = vsel %vm1597_vm14, %v1590_v17, 920167782  ;;  %vm1596_vm15 = vcmp.lt.s32.totalorder %v4260_v12, 3 }
 0x138   : > { %v4282_v25 = vsel %vm4203_vm6, %v4079_v54, %v1065_v21  ;;  %v1357_v50 = vsel %vm1355_vm12, %v1356_v26, %v4265_v24  ;;  %v1376_v53 = vsub.s32 4, %v1352_v19  ;;  %vm1595_vm0 = vcmp.lt.s32.totalorder %v4260_v12, 2 }
 0x139   : > { %v1070_v23 = vmul.f32 %v4282_v25, %v4282_v25  ;;  %v1358_v20 = vclz %v1357_v50  ;;  %v1604_v27 = vsel %vm1596_vm15, %v1587_v57, %v1603_v31  ;;  %v4304_v16 = vand.u32 8388607, %v5921_v56 }
 0x13a   : > { %v1605_v14 = vsel %vm1595_vm0, %v1602_v1, %v1604_v27  ;;  %v1606_v8 = vsel %vm1594_vm13, %v4269_v18, %v1587_v57  ;;  %v1607_v4 = vsel %vm1597_vm14, %v1593_v30, 1326507024  ;;  %v4313_v5 = vshrl.u32 %v1875_v61, 23 }
 0x13b   : > { %v1071_v62 = vmul.f32 -0.001358992, %v1070_v23  ;;  %v1078_v0 = vmul.f32 -0.00019511016, %v1070_v23  ;;  %v3550_v2 = vadd.s32 4294967294, %v1358_v20  ;;  %v1636_v33 = vshrl.u32 %v1605_v14, 16 }
 0x13c   : > { %v1608_v26 = vsel %vm1596_vm15, %v1590_v17, %v1607_v4  ;;  %v4319_v1 = vsel %vm1254_vm11, %v1376_v53, %v1352_v19  ;;  %v4323_v31 = vshrl.u32 %v3742_v22, %v4238_v49  ;;  %v1635_v20 = vand.u32 65535, %v1605_v14 }
 0x13d   : > { %v1072_v3 = vadd.f32 0.041655596, %v1071_v62  ;;  %v1079_v38 = vadd.f32 0.008332121, %v1078_v0  ;;  %vm3551_vm1 = vcmp.lt.s32.totalorder %v3550_v2, 0  ;;  %v1609_v30 = vsel %vm1595_vm0, %v1606_v8, %v1608_v26 }
 0x13e   : > { %v1361_v50 = vsel %vm3551_vm1, 0, %v3550_v2  ;;  %vm1089_vm2 = vcmp.eq.s32.totalorder %v4240_v15, 0  ;;  %vm1092_vm3 = vcmp.eq.s32.totalorder %v4240_v15, 2  ;;  %v1599_v19 = vsel %vm1597_vm14, %v1587_v57, 2102212464 }
 0x13f   : > { %v1073_v21 = vmul.f32 %v1072_v3, %v1070_v23  ;;  %v1080_v28 = vmul.f32 %v1079_v38, %v1070_v23  ;;  %v1362_v0 = vsub.s32 32, %v1361_v50  ;;  %v1366_v17 = vsub.s32 4294967266, %v1361_v50 }
 0x140   : > { %v1613_v53 = vand.u32 65535, %v1609_v30  ;;  %v1614_v27 = vshrl.u32 %v1609_v30, 16  ;;  %vm1088_vm4 = vcmp.lt.s32.totalorder %v4240_v15, 2  ;;  %v4334_v2 = vmul.u32 %v1636_v33, %v4254_v11 }
 0x141   : > { %v1074_v61 = vadd.f32 -0.4999988, %v1073_v21  ;;  %v1081_v62 = vadd.f32 -0.16666654, %v1080_v28  ;;  %v1364_v38 = vshrl.u32 %v4242_v39, %v1362_v0  ;;  %vm1085_vm5 = vweird.f32 %v4079_v54 }
 0x142   : > { %v1363_v14 = vshll.u32 %v4265_v24, %v1361_v50  ;;  %v1367_v8 = vadd.s32 127, %v1366_v17  ;;  %v1616_v4 = vmul.u32 %v1614_v27, %v4254_v11  ;;  %v4340_v57 = vmul.u32 %v1613_v53, %v4276_v52 }
 0x143   : > { %v1075_v49 = vmul.f32 %v1074_v61, %v1070_v23  ;;  %v1082_v3 = vmul.f32 %v1081_v62, %v1070_v23  ;;  %v5927_v28 = vand.u32 2147483647, %v4088_v6  ;;  %v1637_v26 = vmul.u32 %v1635_v20, %v4254_v11 }
 0x144   : > { %v4351_v24 = vmul.u32 %v1635_v20, %v4276_v52  ;;  %v1365_v50 = vor.u32 %v1364_v38, %v1363_v14  ;;  %v1368_v30 = vshll.u32 %v1367_v8, 23  ;;  %v1615_v61 = vmul.u32 %v1613_v53, %v4254_v11 }
 0x145   : > { %v1076_v23 = vadd.f32 1.0, %v1075_v49  ;;  %v1083_v21 = vadd.f32 1.0, %v1082_v3  ;;  %vm4345_vm6 = vcmp.le.f32.partialorder %v5927_v28, 0.7853982  ;;  %v1619_v62 = vshll.u32 %v1616_v4, 16 }
 0x146   : > { %v1618_v49 = vmul.u32 %v1614_v27, %v4276_v52  ;;  %v1621_v3 = vshll.u32 %v4340_v57, 16  ;;  %v1369_v28 = vor.u32 4788187, %v1368_v30  ;;  %v1641_v20 = vshll.u32 %v4334_v2, 16 }
 0x147   : > { %v1084_v0 = vmul.f32 %v1083_v21, %v4282_v25  ;;  %v1093_v17 = vxor.u32 2147483648, %v1076_v23  ;;  %vm1623_vm7 = vc.u32 %v1615_v61, %v1619_v62  ;;  %v1625_v56 = vadd.s32 %v1619_v62, %v1615_v61 }
 0x148   : > { %v1620_v38 = vshrl.u32 %v1616_v4, 16  ;;  %v1624_v14 = vsel %vm1623_vm7, 1, %v3748_v9  ;;  %v1640_v11 = vmul.u32 %v1636_v33, %v4276_v52  ;;  %v1370_v53 = vand.u32 2147483647, %v1369_v28  ;;  %v626_v33 = vpop.f32.mrf.mxu2 }
 0x149   : > { %v1090_v63 = vxor.u32 2147483648, %v1084_v0  ;;  %v1372_v25 = vcvt.s32.f32 %v1365_v50  ;;  %v1626_v8 = vadd.s32 %v1624_v14, %v1618_v49  ;;  %vm1627_vm8 = vc.u32 %v1625_v56, %v1621_v3  ;;  %v696_v50 = vpop.f32.mrf.mxu3 }
 0x14a   : > { %v1094_v21 = vsel %vm1092_vm3, %v1093_v17, %v1084_v0  ;;  %v1628_v30 = vsel %vm1627_vm8, 1, %v3748_v9  ;;  %vm1645_vm9 = vc.u32 %v1637_v26, %v1641_v20  ;;  %v1379_v15 = vsel %vm4345_vm6, 0, %v4319_v1 }
 0x14b   : > { %v1091_v27 = vsel %vm1089_vm2, %v1076_v23, %v1090_v63  ;;  %v1373_v61 = vmul.f32 %v1372_v25, %v1370_v53  ;;  %v1630_v62 = vadd.s32 %v1628_v30, %v1626_v8  ;;  %v1646_v52 = vsel %vm1645_vm9, 1, %v3748_v9 }
 0x14c   : > { %v1095_v4 = vsel %vm1088_vm4, %v1091_v27, %v1094_v21  ;;  %v1643_v63 = vshll.u32 %v4351_v24, 16  ;;  %v1647_v23 = vadd.s32 %v1641_v20, %v1637_v26  ;;  %v1648_v49 = vadd.s32 %v1646_v52, %v1640_v11 }
 0x14d   : > { %v1096_v56 = vsel %vm1085_vm5, nan, %v1095_v4  ;;  %v1374_v0 = vxor.u32 2147483648, %v1373_v61  ;;  %v1631_v17 = vadd.s32 %v1630_v62, %v1620_v38  ;;  %v3561_v3 = vadd.s32 4294967169, %v4313_v5 }
 0x14e   : > { %3422 = vst [vmem:[%s4373_s28] sm:$0xff] %v1096_v56  ;;  %v1598_v54 = vsel %vm1594_vm13, %v4323_v31, %v4267_v7  ;;  %v1600_v26 = vsel %vm1596_vm15, %v4269_v18, %v1599_v19  ;;  %vm1649_vm10 = vc.u32 %v1647_v23, %v1643_v63  ;;  %v4387_v28 = vadd.f32 %v696_v50, %v626_v33 }
 0x14f   : > { %v1375_v20 = vsel %vm1254_vm11, %v1374_v0, %v1373_v61  ;;  %v1622_v1 = vshrl.u32 %v4340_v57, 16  ;;  %v1650_v38 = vsel %vm1649_vm10, 1, %v3748_v9  ;;  %v1882_v5 = vadd.s32 1, %v3561_v3 }
 0x150   : > { %v1378_v14 = vsel %vm4345_vm6, %v4088_v6, %v1375_v20  ;;  %v1396_v7 = vadd.s32 3, %v1379_v15  ;;  %v1642_v31 = vshrl.u32 %v4334_v2, 16  ;;  %v1652_v11 = vadd.s32 %v1650_v38, %v1648_v49  ;;  %v514_v20 = vpop.f32.mrf.mxu0 }
 0x151   : > { %v1380_v18 = vmul.f32 %v1378_v14, %v1378_v14  ;;  %v1601_v19 = vsel %vm1595_vm0, %v1598_v54, %v1600_v26  ;;  %v4399_v53 = vadd.s32 %v1631_v17, %v1622_v1  ;;  %vm1883_vm11 = vcmp.gt.s32.totalorder %v1882_v5, 0 }
 0x152   : > { %v4403_v57 = vadd.f32 %v4051_v36, %v4049_v35  ;;  %v1644_v25 = vshrl.u32 %v4351_v24, 16  ;;  %v1653_v8 = vadd.s32 %v1652_v11, %v1642_v31  ;;  %v1884_v39 = vsel %vm1883_vm11, %v1882_v5, 0 }
 0x153   : > { %v1381_v27 = vmul.f32 -0.001358992, %v1380_v18  ;;  %v1388_v21 = vmul.f32 -0.00019511016, %v1380_v18  ;;  %v4406_v30 = vadd.s32 %v1647_v23, %v1643_v63  ;;  %v1886_v2 = vand.u32 31, %v1884_v39 }
 0x154   : > { %v4408_v4 = vand.u32 3, %v1396_v7  ;;  %v1654_v12 = vadd.s32 %v1653_v8, %v1644_v25  ;;  %v1655_v61 = vmul.u32 %v4233_v45, %v1601_v19  ;;  %v1880_v62 = vor.u32 8388608, %v4304_v16 }
 0x155   : > { %v1382_v52 = vadd.f32 0.041655596, %v1381_v27  ;;  %v1389_v33 = vadd.f32 0.008332121, %v1388_v21  ;;  %vm1657_vm12 = vc.u32 %v4399_v53, %v4406_v30  ;;  %v1887_v35 = vsub.s32 32, %v1886_v2 }
 0x156   : > { %v1658_v36 = vadd.s32 1, %v1654_v12  ;;  %v4414_v24 = vshrl.u32 %v1884_v39, 5  ;;  %v1889_v50 = vshll.u32 %v3742_v22, %v1886_v2  ;;  %v1892_v56 = vshll.u32 %v3743_v13, %v1886_v2 }
 0x157   : > { %v1383_v63 = vmul.f32 %v1382_v52, %v1380_v18  ;;  %v1390_v23 = vmul.f32 %v1389_v33, %v1380_v18  ;;  %v1890_v49 = vshrl.u32 %v3743_v13, %v1887_v35  ;;  %v1898_v45 = vshll.u32 %v3745_v34, %v1886_v2 }
 0x158   : > { %v1659_v16 = vsel %vm1657_vm12, %v1658_v36, %v1654_v12  ;;  %v1893_v0 = vshrl.u32 %v3744_v29, %v1887_v35  ;;  %v1896_v15 = vshrl.u32 %v3745_v34, %v1887_v35  ;;  %v1899_v17 = vshrl.u32 %v3746_v42, %v1887_v35 }
 0x159   : > { %v1384_v3 = vadd.f32 -0.4999988, %v1383_v63  ;;  %v1391_v54 = vadd.f32 -0.16666654, %v1390_v23  ;;  %v1660_v26 = vadd.s32 %v1659_v16, %v1655_v61  ;;  %v1895_v1 = vshll.u32 %v3744_v29, %v1886_v2 }
 0x15a   : > { %v1891_v38 = vor.u32 %v1890_v49, %v1889_v50  ;;  %v4424_v5 = vor.u32 %v1893_v0, %v1892_v56  ;;  %v1900_v7 = vor.u32 %v1899_v17, %v1898_v45  ;;  %v1901_v31 = vshll.u32 %v3746_v42, %v1886_v2  ;;  %v564_v56 = vpop.f32.mrf.mxu1 }
 0x15b   : > { %v1385_v11 = vmul.f32 %v1384_v3, %v1380_v18  ;;  %v1392_v19 = vmul.f32 %v1391_v54, %v1380_v18  ;;  %v1661_v25 = vadd.s32 536870912, %v1660_v26  ;;  %v1902_v8 = vshrl.u32 %v3747_v48, %v1887_v35 }
 0x15c   : > { %vm1395_vm13 = vweird.f32 %v4088_v6  ;;  %vm1398_vm14 = vcmp.lt.s32.totalorder %v4408_v4, 2  ;;  %v515_v39 = vadd.f32 %v514_v20, %v4236_v44  ;;  %v1897_v27 = vor.u32 %v1896_v15, %v1895_v1 }
 0x15d   : > { %vm1907_vm15 = vcmp.lt.s32.totalorder %v4414_v24, 4  ;;  %v1386_v21 = vadd.f32 1.0, %v1385_v11  ;;  %v1393_v12 = vadd.f32 1.0, %v1392_v19  ;;  %v4432_v61 = vshrl.u32 %v1661_v25, 30 }
 0x15e   : > { %v1903_v52 = vor.u32 %v1902_v8, %v1901_v31  ;;  %vm1904_vm0 = vcmp.lt.s32.totalorder %v4414_v24, 1  ;;  %vm1906_vm1 = vcmp.lt.s32.totalorder %v4414_v24, 3  ;;  %v1913_v18 = vsel %vm1907_vm15, %v1900_v7, 920167782 }
 0x15f   : > { %v4438_v2 = vshll.u32 %v1880_v62, 8  ;;  %v1394_v33 = vmul.f32 %v1393_v12, %v1378_v14  ;;  %v1403_v36 = vxor.u32 2147483648, %v1386_v21  ;;  %v1663_v44 = vshll.u32 %v4432_v61, 30 }
 0x160   : > { %v1912_v50 = vsel %vm1904_vm0, %v1891_v38, %v4424_v5  ;;  %vm1399_vm2 = vcmp.eq.s32.totalorder %v4408_v4, 0  ;;  %vm1402_vm3 = vcmp.eq.s32.totalorder %v4408_v4, 2  ;;  %v1914_v63 = vsel %vm1906_vm1, %v1897_v27, %v1913_v18 }
 0x161   : > { %v1917_v62 = vsel %vm1907_vm15, %v1903_v52, 1326507024  ;;  %v1400_v23 = vxor.u32 2147483648, %v1394_v33  ;;  %v4450_v14 = vsub.s32 %v1660_v26, %v1663_v44  ;;  %vm1905_vm4 = vcmp.lt.s32.totalorder %v4414_v24, 2 }
 0x162   : > { %v1916_v49 = vsel %vm1904_vm0, %v4424_v5, %v1897_v27  ;;  %v1915_v45 = vsel %vm1905_vm4, %v1912_v50, %v1914_v63  ;;  %v1918_v16 = vsel %vm1906_vm1, %v1900_v7, %v1917_v62  ;;  %v1921_v0 = vand.u32 65535, %v4438_v2 }
 0x163   : > { %v4461_v15 = vadd.f32 %v564_v56, %v515_v39  ;;  %v1401_v17 = vsel %vm1399_vm2, %v1386_v21, %v1400_v23  ;;  %v1404_v3 = vsel %vm1402_vm3, %v1403_v36, %v1394_v33  ;;  %vm1665_vm5 = vcmp.lt.s32.totalorder %v4450_v14, 0 }
 0x164   : > { %v1666_v54 = vsub.s32 0, %v4450_v14  ;;  %v1405_v26 = vsel %vm1398_vm14, %v1401_v17, %v1404_v3  ;;  %v1888_v20 = vshrl.u32 %v3742_v22, %v1887_v35  ;;  %v1919_v1 = vsel %vm1905_vm4, %v1916_v49, %v1918_v16 }
 0x165   : > { %v1946_v31 = vshrl.u32 %v1915_v45, 16  ;;  %v1406_v7 = vsel %vm1395_vm13, nan, %v1405_v26  ;;  %v1923_v19 = vand.u32 65535, %v1919_v1  ;;  %v1945_v25 = vand.u32 65535, %v1915_v45 }
 0x166   : > { %v1667_v11 = vsel %vm1665_vm5, %v1666_v54, %v4450_v14  ;;  %3424 = vst [vmem:[%s4373_s28 + $0x10] sm:$0xff] %v1406_v7  ;;  %v1922_v39 = vshrl.u32 %v4438_v2, 16  ;;  %v1924_v21 = vshrl.u32 %v1919_v1, 16  ;;  %v1656_v35 = vadd.s32 %v4406_v30, %v4399_v53 }
 0x167   : > { %v1668_v8 = vclz %v1667_v11  ;;  %v1948_v4 = vmul.u32 %v1946_v31, %v1921_v0  ;;  %v1908_v12 = vsel %vm1904_vm0, %v1888_v20, %v1891_v38  ;;  %v2182_v52 = vand.u32 2147483647, %v4461_v15 }
 0x168   : > { %v2185_v6 = vand.u32 2139095040, %v4461_v15  ;;  %v1909_v33 = vsel %vm1907_vm15, %v1897_v27, 2102212464  ;;  %v1926_v36 = vmul.u32 %v1924_v21, %v1921_v0  ;;  %v1927_v44 = vmul.u32 %v1923_v19, %v1922_v39 }
 0x169   : > { %v3556_v18 = vadd.s32 4294967294, %v1668_v8  ;;  %vm1564_vm6 = vcmp.lt.s32.totalorder %v4184_v60, 0  ;;  %v1686_v50 = vsub.s32 4, %v4432_v61  ;;  %v1947_v56 = vmul.u32 %v1945_v25, %v1921_v0 }
 0x16a   : > { %v1949_v63 = vmul.u32 %v1945_v25, %v1922_v39  ;;  %v1951_v53 = vshll.u32 %v1948_v4, 16  ;;  %v1925_v30 = vmul.u32 %v1923_v19, %v1921_v0  ;;  %v1928_v38 = vmul.u32 %v1924_v21, %v1922_v39 }
 0x16b   : > { %vm3557_vm7 = vcmp.lt.s32.totalorder %v3556_v18, 0  ;;  %v1929_v62 = vshll.u32 %v1926_v36, 16  ;;  %v1931_v49 = vshll.u32 %v1927_v44, 16  ;;  %v1950_v45 = vmul.u32 %v1946_v31, %v1922_v39 }
 0x16c   : > { %v1671_v23 = vsel %vm3557_vm7, 0, %v3556_v18  ;;  %v1953_v16 = vshll.u32 %v1949_v63, 16  ;;  %v5930_v54 = vand.u32 2147483647, %v4184_v60  ;;  %vm1955_vm10 = vc.u32 %v1947_v56, %v1951_v53 }
 0x16d   : > { %v1672_v17 = vsub.s32 32, %v1671_v23  ;;  %v1673_v27 = vshll.u32 %v4450_v14, %v1671_v23  ;;  %v1676_v3 = vsub.s32 4294967266, %v1671_v23  ;;  %vm1933_vm8 = vc.u32 %v1925_v30, %v1929_v62 }
 0x16e   : > { %vm4488_vm9 = vcmp.le.f32.partialorder %v5930_v54, 0.7853982  ;;  %v1934_v20 = vsel %vm1933_vm8, 1, %v3748_v9  ;;  %v1935_v0 = vadd.s32 %v1929_v62, %v1925_v30  ;;  %v1957_v1 = vadd.s32 %v1951_v53, %v1947_v56  ;;  %v634_v30 = vpop.f32.mrf.mxu2  ;;  %v700_v56 = vpop.f32.mrf.mxu3 }
 0x16f   : > { %v1674_v7 = vshrl.u32 %v1656_v35, %v1672_v17  ;;  %v1677_v11 = vadd.s32 127, %v1676_v3  ;;  %v1936_v31 = vadd.s32 %v1934_v20, %v1928_v38  ;;  %v1956_v19 = vsel %vm1955_vm10, 1, %v3748_v9 }
 0x170   : > { %v1910_v14 = vsel %vm1906_vm1, %v4424_v5, %v1909_v33  ;;  %vm1937_vm11 = vc.u32 %v1935_v0, %v1931_v49  ;;  %v1958_v25 = vadd.s32 %v1956_v19, %v1950_v45  ;;  %vm1959_vm12 = vc.u32 %v1957_v1, %v1953_v16 }
 0x171   : > { %v1675_v8 = vor.u32 %v1674_v7, %v1673_v27  ;;  %v1678_v39 = vshll.u32 %v1677_v11, 23  ;;  %v1938_v21 = vsel %vm1937_vm11, 1, %v3748_v9  ;;  %v1960_v18 = vsel %vm1959_vm12, 1, %v3748_v9 }
 0x172   : > { %v1930_v35 = vshrl.u32 %v1926_v36, 16  ;;  %v1940_v53 = vadd.s32 %v1938_v21, %v1936_v31  ;;  %v1952_v38 = vshrl.u32 %v1948_v4, 16  ;;  %v1962_v62 = vadd.s32 %v1960_v18, %v1958_v25  ;;  %v518_v31 = vpop.f32.mrf.mxu0 }
 0x173   : > { %v1679_v23 = vor.u32 4788187, %v1678_v39  ;;  %v1687_v5 = vsel %vm1564_vm6, %v1686_v50, %v4432_v61  ;;  %v1932_v33 = vshrl.u32 %v1927_v44, 16  ;;  %v2186_v49 = vshrl.u32 %v2185_v6, 23 }
 0x174   : > { %v1941_v45 = vadd.s32 %v1940_v53, %v1930_v35  ;;  %v1954_v17 = vshrl.u32 %v1949_v63, 16  ;;  %v1963_v27 = vadd.s32 %v1962_v62, %v1952_v38  ;;  %v4502_v3 = vadd.f32 %v700_v56, %v634_v30 }
 0x175   : > { %v1680_v54 = vand.u32 2147483647, %v1679_v23  ;;  %v1682_v20 = vcvt.s32.f32 %v1675_v8  ;;  %v1911_v36 = vsel %vm1905_vm4, %v1908_v12, %v1910_v14  ;;  %v3567_v0 = vadd.s32 4294967169, %v2186_v49 }
 0x176   : > { %v1942_v4 = vadd.s32 %v1941_v45, %v1932_v33  ;;  %v1961_v7 = vadd.s32 %v1957_v1, %v1953_v16  ;;  %v1964_v11 = vadd.s32 %v1963_v27, %v1954_v17  ;;  %v2189_v61 = vand.u32 8388607, %v2182_v52  ;;  %v568_v16 = vpop.f32.mrf.mxu1 }
 0x177   : > { %v463_v6 = vadd.f32 %v4047_v32, %v4403_v57  ;;  %v1683_v44 = vmul.f32 %v1682_v20, %v1680_v54  ;;  %v1689_v50 = vsel %vm4488_vm9, 0, %v1687_v5  ;;  %v2192_v63 = vadd.s32 1, %v3567_v0 }
 0x178   : > { %vm1967_vm13 = vc.u32 %v1942_v4, %v1961_v7  ;;  %v1968_v19 = vadd.s32 1, %v1964_v11  ;;  %v1965_v12 = vmul.u32 %v4438_v2, %v1911_v36  ;;  %v1706_v1 = vadd.s32 3, %v1689_v50 }
 0x179   : > { %v1684_v24 = vxor.u32 2147483648, %v1683_v44  ;;  %v519_v14 = vadd.f32 %v518_v31, %v463_v6  ;;  %vm2193_vm14 = vcmp.gt.s32.totalorder %v2192_v63, 0  ;;  %v2190_v8 = vor.u32 8388608, %v2189_v61 }
 0x17a   : > { %v1969_v25 = vsel %vm1967_vm13, %v1968_v19, %v1964_v11  ;;  %v2194_v39 = vsel %vm2193_vm14, %v2192_v63, 0  ;;  %v4522_v53 = vand.u32 3, %v1706_v1  ;;  %v4526_v5 = vadd.s32 %v1961_v7, %v1942_v4 }
 0x17b   : > { %v1685_v32 = vsel %vm1564_vm6, %v1684_v24, %v1683_v44  ;;  %v1970_v57 = vadd.s32 %v1969_v25, %v1965_v12  ;;  %v2196_v21 = vand.u32 31, %v2194_v39  ;;  %v4518_v30 = vadd.f32 %v568_v16, %v519_v14 }
 0x17c   : > { %v1688_v18 = vsel %vm4488_vm9, %v4184_v60, %v1685_v32  ;;  %v4524_v38 = vshll.u32 %v2190_v8, 8  ;;  %vm1874_vm15 = vcmp.lt.s32.totalorder %v4248_v58, 0  ;;  %v4536_v36 = vshrl.u32 %v2194_v39, 5 }
 0x17d   : > { %v1690_v56 = vmul.f32 %v1688_v18, %v1688_v18  ;;  %v1971_v2 = vadd.s32 536870912, %v1970_v57  ;;  %v4520_v35 = vsub.s32 32, %v2196_v21  ;;  %v2492_v17 = vand.u32 2147483647, %v4518_v30 }
 0x17e   : > { %v2199_v0 = vshll.u32 %v3742_v22, %v2196_v21  ;;  %v2202_v4 = vshll.u32 %v3743_v13, %v2196_v21  ;;  %v2205_v7 = vshll.u32 %v3744_v29, %v2196_v21  ;;  %v2208_v11 = vshll.u32 %v3745_v34, %v2196_v21 }
 0x17f   : > { %v1691_v62 = vmul.f32 -0.001358992, %v1690_v56  ;;  %v1698_v23 = vmul.f32 -0.00019511016, %v1690_v56  ;;  %v1972_v33 = vshrl.u32 %v1971_v2, 30  ;;  %v2200_v49 = vshrl.u32 %v3743_v13, %v4520_v35 }
 0x180   : > { %v2203_v26 = vshrl.u32 %v3744_v29, %v4520_v35  ;;  %v2209_v45 = vshrl.u32 %v3746_v42, %v4520_v35  ;;  %v2206_v44 = vshrl.u32 %v3745_v34, %v4520_v35  ;;  %vm1712_vm0 = vcmp.eq.s32.totalorder %v4522_v53, 2 }
 0x181   : > { %v1692_v27 = vadd.f32 0.041655596, %v1691_v62  ;;  %v1699_v54 = vadd.f32 0.008332121, %v1698_v23  ;;  %v1973_v20 = vshll.u32 %v1972_v33, 30  ;;  %v4547_v50 = vor.u32 %v2200_v49, %v2199_v0 }
 0x182   : > { %v4549_v63 = vor.u32 %v2203_v26, %v2202_v4  ;;  %v2210_v19 = vor.u32 %v2209_v45, %v2208_v11  ;;  %v2212_v24 = vshrl.u32 %v3747_v48, %v4520_v35  ;;  %vm1709_vm2 = vcmp.eq.s32.totalorder %v4522_v53, 0 }
 0x183   : > { %v1693_v31 = vmul.f32 %v1692_v27, %v1690_v56  ;;  %v1700_v61 = vmul.f32 %v1699_v54, %v1690_v56  ;;  %v4542_v6 = vsub.s32 %v1970_v57, %v1973_v20  ;;  %v1996_v1 = vsub.s32 4, %v1972_v33  ;;  %v522_v27 = vpop.f32.mrf.mxu0 }
 0x184   : > { %v2211_v25 = vshll.u32 %v3746_v42, %v2196_v21  ;;  %v4558_v8 = vand.u32 65535, %v4524_v38  ;;  %v4561_v39 = vshrl.u32 %v4524_v38, 16  ;;  %vm1708_vm3 = vcmp.lt.s32.totalorder %v4522_v53, 2 }
 0x185   : > { %v1694_v12 = vadd.f32 -0.4999988, %v1693_v31  ;;  %v1701_v14 = vadd.f32 -0.16666654, %v1700_v61  ;;  %vm1975_vm1 = vcmp.lt.s32.totalorder %v4542_v6, 0  ;;  %v1976_v16 = vsub.s32 0, %v4542_v6 }
 0x186   : > { %v2207_v62 = vor.u32 %v2206_v44, %v2205_v7  ;;  %vm1705_vm4 = vweird.f32 %v4184_v60  ;;  %v2213_v49 = vor.u32 %v2212_v24, %v2211_v25  ;;  %vm2214_vm5 = vcmp.lt.s32.totalorder %v4536_v36, 1 }
 0x187   : > { %v1695_v32 = vmul.f32 %v1694_v12, %v1690_v56  ;;  %v1702_v57 = vmul.f32 %v1701_v14, %v1690_v56  ;;  %v1977_v2 = vsel %vm1975_vm1, %v1976_v16, %v4542_v6  ;;  %vm2217_vm6 = vcmp.lt.s32.totalorder %v4536_v36, 4 }
 0x188   : > { %v1978_v23 = vclz %v1977_v2  ;;  %v5933_v45 = vand.u32 2147483647, %v4248_v58  ;;  %v2222_v56 = vsel %vm2214_vm5, %v4547_v50, %v4549_v63  ;;  %v2223_v54 = vsel %vm2217_vm6, %v2210_v19, 920167782 }
 0x189   : > { %v1696_v21 = vadd.f32 1.0, %v1695_v32  ;;  %v1703_v26 = vadd.f32 1.0, %v1702_v57  ;;  %v4582_v0 = vsel %vm1874_vm15, %v1996_v1, %v1972_v33  ;;  %vm2216_vm8 = vcmp.lt.s32.totalorder %v4536_v36, 3 }
 0x18a   : > { %vm4570_vm7 = vcmp.le.f32.partialorder %v5933_v45, 0.7853982  ;;  %v3562_v20 = vadd.s32 4294967294, %v1978_v23  ;;  %v2495_v4 = vand.u32 2139095040, %v4518_v30  ;;  %vm2215_vm9 = vcmp.lt.s32.totalorder %v4536_v36, 2 }
 0x18b   : > { %v1704_v7 = vmul.f32 %v1703_v26, %v1688_v18  ;;  %v1713_v11 = vxor.u32 2147483648, %v1696_v21  ;;  %v2224_v31 = vsel %vm2216_vm8, %v2207_v62, %v2223_v54  ;;  %v2226_v33 = vsel %vm2214_vm5, %v4549_v63, %v2207_v62 }
 0x18c   : > { %vm3563_vm10 = vcmp.lt.s32.totalorder %v3562_v20, 0  ;;  %v2225_v61 = vsel %vm2215_vm9, %v2222_v56, %v2224_v31  ;;  %v2227_v44 = vsel %vm2217_vm6, %v2213_v49, 1326507024  ;;  %v2198_v54 = vshrl.u32 %v3742_v22, %v4520_v35 }
 0x18d   : > { %v1710_v24 = vxor.u32 2147483648, %v1704_v7  ;;  %v1714_v18 = vsel %vm1712_vm0, %v1713_v11, %v1704_v7  ;;  %v1981_v12 = vsel %vm3563_vm10, 0, %v3562_v20  ;;  %v2228_v14 = vsel %vm2216_vm8, %v2210_v19, %v2227_v44 }
 0x18e   : > { %v1982_v16 = vsub.s32 32, %v1981_v12  ;;  %v1983_v1 = vshll.u32 %v4542_v6, %v1981_v12  ;;  %v1986_v25 = vsub.s32 4294967266, %v1981_v12  ;;  %v2229_v32 = vsel %vm2215_vm9, %v2226_v33, %v2228_v14 }
 0x18f   : > { %v1711_v57 = vsel %vm1709_vm2, %v1696_v21, %v1710_v24  ;;  %v2233_v2 = vand.u32 65535, %v2229_v32  ;;  %v2234_v23 = vshrl.u32 %v2229_v32, 16  ;;  %v2255_v49 = vand.u32 65535, %v2225_v61 }
 0x190   : > { %v1715_v26 = vsel %vm1708_vm3, %v1711_v57, %v1714_v18  ;;  %v1984_v45 = vshrl.u32 %v4526_v5, %v1982_v16  ;;  %v1987_v19 = vadd.s32 127, %v1986_v25  ;;  %v2256_v56 = vshrl.u32 %v2225_v61, 16 }
 0x191   : > { %v1716_v6 = vsel %vm1705_vm4, nan, %v1715_v26  ;;  %v2236_v20 = vmul.u32 %v2234_v23, %v4558_v8  ;;  %v2237_v21 = vmul.u32 %v2233_v2, %v4561_v39  ;;  %v1999_v53 = vsel %vm4570_vm7, 0, %v4582_v0 }
 0x192   : > { %3426 = vst [vmem:[%s4373_s28 + $0x20] sm:$0xff] %v1716_v6  ;;  %v1985_v7 = vor.u32 %v1984_v45, %v1983_v1  ;;  %v1988_v11 = vshll.u32 %v1987_v19, 23  ;;  %v4620_v5 = vand.u32 8388607, %v2492_v17  ;;  %v2218_v60 = vsel %vm2214_vm5, %v2198_v54, %v4547_v50  ;;  %v704_v54 = vpop.f32.mrf.mxu3 }
 0x193   : > { %v2219_v35 = vsel %vm2217_vm6, %v2207_v62, 2102212464  ;;  %v2235_v31 = vmul.u32 %v2233_v2, %v4558_v8  ;;  %v2239_v61 = vshll.u32 %v2236_v20, 16  ;;  %v2238_v44 = vmul.u32 %v2234_v23, %v4561_v39 }
 0x194   : > { %v1989_v33 = vor.u32 4788187, %v1988_v11  ;;  %v2258_v24 = vmul.u32 %v2256_v56, %v4558_v8  ;;  %v2259_v0 = vmul.u32 %v2255_v49, %v4561_v39  ;;  %v2241_v18 = vshll.u32 %v2237_v21, 16 }
 0x195   : > { %vm2243_vm11 = vc.u32 %v2235_v31, %v2239_v61  ;;  %v2245_v12 = vadd.s32 %v2239_v61, %v2235_v31  ;;  %v2257_v14 = vmul.u32 %v2255_v49, %v4558_v8  ;;  %v1992_v50 = vcvt.s32.f32 %v1985_v7  ;;  %v642_v49 = vpop.f32.mrf.mxu2 }
 0x196   : > { %v1990_v16 = vand.u32 2147483647, %v1989_v33  ;;  %v2244_v1 = vsel %vm2243_vm11, 1, %v3748_v9  ;;  %v2261_v62 = vshll.u32 %v2258_v24, 16  ;;  %v2260_v32 = vmul.u32 %v2256_v56, %v4561_v39 }
 0x197   : > { %v2246_v25 = vadd.s32 %v2244_v1, %v2238_v44  ;;  %vm2247_vm12 = vc.u32 %v2245_v12, %v2241_v18  ;;  %v2263_v57 = vshll.u32 %v2259_v0, 16  ;;  %v2240_v45 = vshrl.u32 %v2236_v20, 16 }
 0x198   : > { %v1993_v2 = vmul.f32 %v1992_v50, %v1990_v16  ;;  %v2248_v23 = vsel %vm2247_vm12, 1, %v3748_v9  ;;  %vm2265_vm13 = vc.u32 %v2257_v14, %v2261_v62  ;;  %v2267_v26 = vadd.s32 %v2261_v62, %v2257_v14 }
 0x199   : > { %v2250_v19 = vadd.s32 %v2248_v23, %v2246_v25  ;;  %v2266_v6 = vsel %vm2265_vm13, 1, %v3748_v9  ;;  %v2496_v8 = vshrl.u32 %v2495_v4, 23  ;;  %v2220_v11 = vsel %vm2216_vm8, %v4549_v63, %v2219_v35 }
 0x19a   : > { %v1994_v7 = vxor.u32 2147483648, %v1993_v2  ;;  %v2268_v31 = vadd.s32 %v2266_v6, %v2260_v32  ;;  %vm2269_vm14 = vc.u32 %v2267_v26, %v2263_v57  ;;  %v2242_v39 = vshrl.u32 %v2237_v21, 16 }
 0x19b   : > { %v2251_v56 = vadd.s32 %v2250_v19, %v2240_v45  ;;  %v2270_v61 = vsel %vm2269_vm14, 1, %v3748_v9  ;;  %v3573_v33 = vadd.s32 4294967169, %v2496_v8  ;;  %v2262_v44 = vshrl.u32 %v2258_v24, 16 }
 0x19c   : > { %v1995_v20 = vsel %vm1874_vm15, %v1994_v7, %v1993_v2  ;;  %v2272_v18 = vadd.s32 %v2270_v61, %v2268_v31  ;;  %v4642_v4 = vadd.f32 %v704_v54, %v642_v49  ;;  %v404_v12 = vadd.f32 %v4061_v41, %v4059_v40 }
 0x19d   : > { %v1998_v63 = vsel %vm4570_vm7, %v4248_v58, %v1995_v20  ;;  %v4649_v35 = vadd.s32 %v2251_v56, %v2242_v39  ;;  %v2502_v21 = vadd.s32 1, %v3573_v33  ;;  %v2016_v16 = vadd.s32 3, %v1999_v53 }
 0x19e   : > { %v2000_v14 = vmul.f32 %v1998_v63, %v1998_v63  ;;  %v2264_v50 = vshrl.u32 %v2259_v0, 16  ;;  %v2273_v1 = vadd.s32 %v2272_v18, %v2262_v44  ;;  %v2221_v24 = vsel %vm2215_vm9, %v2218_v60, %v2220_v11 }
 0x19f   : > { %v4653_v62 = vadd.s32 %v2267_v26, %v2263_v57  ;;  %v2500_v25 = vor.u32 8388608, %v4620_v5  ;;  %vm2503_vm15 = vcmp.gt.s32.totalorder %v2502_v21, 0  ;;  %v469_v23 = vadd.f32 %v4057_v37, %v404_v12 }
 0x1a0   : > { %v2001_v40 = vmul.f32 -0.001358992, %v2000_v14  ;;  %v2008_v41 = vmul.f32 -0.00019511016, %v2000_v14  ;;  %v2274_v32 = vadd.s32 %v2273_v1, %v2264_v50  ;;  %v2504_v2 = vsel %vm2503_vm15, %v2502_v21, 0 }
 0x1a1   : > { %vm2277_vm0 = vc.u32 %v4649_v35, %v4653_v62  ;;  %v2506_v53 = vand.u32 31, %v2504_v2  ;;  %v4661_v36 = vadd.f32 %v4072_v47, %v4070_v46  ;;  %v2017_v5 = vand.u32 3, %v2016_v16 }
 0x1a2   : > { %v2002_v60 = vadd.f32 0.041655596, %v2001_v40  ;;  %v2009_v0 = vadd.f32 0.008332121, %v2008_v41  ;;  %v2278_v57 = vadd.s32 1, %v2274_v32  ;;  %v2275_v26 = vmul.u32 %v4524_v38, %v2221_v24 }
 0x1a3   : > { %v523_v45 = vadd.f32 %v522_v27, %v469_v23  ;;  %v4664_v19 = vsub.s32 32, %v2506_v53  ;;  %v4666_v49 = vshll.u32 %v2500_v25, 8  ;;  %v4668_v7 = vshrl.u32 %v2504_v2, 5  ;;  %v572_v27 = vpop.f32.mrf.mxu1 }
 0x1a4   : > { %v2003_v6 = vmul.f32 %v2002_v60, %v2000_v14  ;;  %v2010_v8 = vmul.f32 %v2009_v0, %v2000_v14  ;;  %v2279_v37 = vsel %vm2277_vm0, %v2278_v57, %v2274_v32  ;;  %v2509_v38 = vshll.u32 %v3742_v22, %v2506_v53 }
 0x1a5   : > { %v2280_v54 = vadd.s32 %v2279_v37, %v2275_v26  ;;  %v2510_v46 = vshrl.u32 %v3743_v13, %v4664_v19  ;;  %v2513_v47 = vshrl.u32 %v3744_v29, %v4664_v19  ;;  %v2519_v39 = vshrl.u32 %v3746_v42, %v4664_v19 }
 0x1a6   : > { %v2004_v11 = vadd.f32 -0.4999988, %v2003_v6  ;;  %v2011_v31 = vadd.f32 -0.16666654, %v2010_v8  ;;  %v2512_v61 = vshll.u32 %v3743_v13, %v2506_v53  ;;  %v2516_v33 = vshrl.u32 %v3745_v34, %v4664_v19 }
 0x1a7   : > { %v2281_v56 = vadd.s32 536870912, %v2280_v54  ;;  %v2518_v20 = vshll.u32 %v3745_v34, %v2506_v53  ;;  %vm2018_vm1 = vcmp.lt.s32.totalorder %v2017_v5, 2  ;;  %v2511_v12 = vor.u32 %v2510_v46, %v2509_v38 }
 0x1a8   : > { %v2005_v44 = vmul.f32 %v2004_v11, %v2000_v14  ;;  %v2012_v18 = vmul.f32 %v2011_v31, %v2000_v14  ;;  %v2515_v21 = vshll.u32 %v3744_v29, %v2506_v53  ;;  %vm2015_vm2 = vweird.f32 %v4248_v58 }
 0x1a9   : > { %v2282_v16 = vshrl.u32 %v2281_v56, 30  ;;  %v4683_v50 = vor.u32 %v2513_v47, %v2512_v61  ;;  %v2520_v1 = vor.u32 %v2519_v39, %v2518_v20  ;;  %v2522_v24 = vshrl.u32 %v3747_v48, %v4664_v19 }
 0x1aa   : > { %v2006_v25 = vadd.f32 1.0, %v2005_v44  ;;  %v2013_v40 = vadd.f32 1.0, %v2012_v18  ;;  %vm2019_vm3 = vcmp.eq.s32.totalorder %v2017_v5, 0  ;;  %v2521_v41 = vshll.u32 %v3746_v42, %v2506_v53 }
 0x1ab   : > { %vm2022_vm4 = vcmp.eq.s32.totalorder %v2017_v5, 2  ;;  %v2283_v14 = vshll.u32 %v2282_v16, 30  ;;  %v2517_v32 = vor.u32 %v2516_v33, %v2515_v21  ;;  %vm2524_vm5 = vcmp.lt.s32.totalorder %v4668_v7, 1 }
 0x1ac   : > { %v2014_v2 = vmul.f32 %v2013_v40, %v1998_v63  ;;  %v2023_v23 = vxor.u32 2147483648, %v2006_v25  ;;  %v2523_v60 = vor.u32 %v2522_v24, %v2521_v41  ;;  %vm2527_vm6 = vcmp.lt.s32.totalorder %v4668_v7, 4 }
 0x1ad   : > { %vm2184_vm7 = vcmp.lt.s32.totalorder %v4461_v15, 0  ;;  %v4691_v0 = vsub.s32 %v2280_v54, %v2283_v14  ;;  %v2532_v57 = vsel %vm2524_vm5, %v2511_v12, %v4683_v50  ;;  %v2533_v53 = vsel %vm2527_vm6, %v2520_v1, 920167782 }
 0x1ae   : > { %v2541_v26 = vand.u32 65535, %v4666_v49  ;;  %v2020_v6 = vxor.u32 2147483648, %v2014_v2  ;;  %vm2525_vm8 = vcmp.lt.s32.totalorder %v4668_v7, 2  ;;  %vm2526_vm9 = vcmp.lt.s32.totalorder %v4668_v7, 3 }
 0x1af   : > { %v4701_v63 = vadd.f32 %v572_v27, %v523_v45  ;;  %v2024_v8 = vsel %vm2022_vm4, %v2023_v23, %v2014_v2  ;;  %vm2285_vm10 = vcmp.lt.s32.totalorder %v4691_v0, 0  ;;  %v2286_v37 = vsub.s32 0, %v4691_v0 }
 0x1b0   : > { %v2534_v54 = vsel %vm2526_vm9, %v2517_v32, %v2533_v53  ;;  %v2021_v46 = vsel %vm2019_vm3, %v2006_v25, %v2020_v6  ;;  %v2536_v45 = vsel %vm2524_vm5, %v4683_v50, %v2517_v32  ;;  %v2537_v11 = vsel %vm2527_vm6, %v2523_v60, 1326507024 }
 0x1b1   : > { %v2535_v47 = vsel %vm2525_vm8, %v2532_v57, %v2534_v54  ;;  %v2025_v31 = vsel %vm2018_vm1, %v2021_v46, %v2024_v8  ;;  %v2287_v38 = vsel %vm2285_vm10, %v2286_v37, %v4691_v0  ;;  %v2538_v39 = vsel %vm2526_vm9, %v2520_v1, %v2537_v11 }
 0x1b2   : > { %v2542_v56 = vshrl.u32 %v4666_v49, 16  ;;  %v2026_v61 = vsel %vm2015_vm2, nan, %v2025_v31  ;;  %v2288_v33 = vclz %v2287_v38  ;;  %v2306_v20 = vsub.s32 4, %v2282_v16 }
 0x1b3   : > { %v2539_v44 = vsel %vm2525_vm8, %v2536_v45, %v2538_v39  ;;  %3428 = vst [vmem:[%s4373_s28 + $0x30] sm:$0xff] %v2026_v61  ;;  %v2276_v5 = vadd.s32 %v4653_v62, %v4649_v35  ;;  %v2508_v18 = vshrl.u32 %v3742_v22, %v4664_v19  ;;  %v2565_v24 = vand.u32 65535, %v2535_v47 }
 0x1b4   : > { %v2543_v21 = vand.u32 65535, %v2539_v44  ;;  %v3568_v1 = vadd.s32 4294967294, %v2288_v33  ;;  %v2544_v25 = vshrl.u32 %v2539_v44, 16  ;;  %v2566_v40 = vshrl.u32 %v2535_v47, 16 }
 0x1b5   : > { %v2802_v58 = vand.u32 2147483647, %v4701_v63  ;;  %v2528_v41 = vsel %vm2524_vm5, %v2508_v18, %v2511_v12  ;;  %v2529_v14 = vsel %vm2527_vm6, %v2517_v32, 2102212464  ;;  %v2805_v2 = vand.u32 2139095040, %v4701_v63 }
 0x1b6   : > { %v2547_v27 = vmul.u32 %v2543_v21, %v2542_v56  ;;  %vm3569_vm11 = vcmp.lt.s32.totalorder %v3568_v1, 0  ;;  %v2307_v35 = vsel %vm2184_vm7, %v2306_v20, %v2282_v16  ;;  %v2546_v62 = vmul.u32 %v2544_v25, %v2541_v26 }
 0x1b7   : > { %v2568_v19 = vmul.u32 %v2566_v40, %v2541_v26  ;;  %v2291_v23 = vsel %vm3569_vm11, 0, %v3568_v1  ;;  %v2545_v60 = vmul.u32 %v2543_v21, %v2541_v26  ;;  %v2567_v57 = vmul.u32 %v2565_v24, %v2541_v26  ;;  %v708_v1 = vpop.f32.mrf.mxu3 }
 0x1b8   : > { %v2569_v53 = vmul.u32 %v2565_v24, %v2542_v56  ;;  %vm4740_vm12 = vcmp.le.f32.partialorder %v2182_v52, 0.7853982  ;;  %v2292_v32 = vsub.s32 32, %v2291_v23  ;;  %v2296_v6 = vsub.s32 4294967266, %v2291_v23  ;;  %v650_v24 = vpop.f32.mrf.mxu2 }
 0x1b9   : > { %v2548_v8 = vmul.u32 %v2544_v25, %v2542_v56  ;;  %v2549_v37 = vshll.u32 %v2546_v62, 16  ;;  %v2293_v54 = vshll.u32 %v4691_v0, %v2291_v23  ;;  %v2551_v46 = vshll.u32 %v2547_v27, 16 }
 0x1ba   : > { %v2570_v16 = vmul.u32 %v2566_v40, %v2542_v56  ;;  %v2571_v47 = vshll.u32 %v2568_v19, 16  ;;  %v2294_v45 = vshrl.u32 %v2276_v5, %v2292_v32  ;;  %v2297_v11 = vadd.s32 127, %v2296_v6 }
 0x1bb   : > { %vm2553_vm13 = vc.u32 %v2545_v60, %v2549_v37  ;;  %v2555_v26 = vadd.s32 %v2549_v37, %v2545_v60  ;;  %v2573_v38 = vshll.u32 %v2569_v53, 16  ;;  %v2530_v0 = vsel %vm2526_vm9, %v4683_v50, %v2529_v14 }
 0x1bc   : > { %v2554_v31 = vsel %vm2553_vm13, 1, %v3748_v9  ;;  %vm2575_vm14 = vc.u32 %v2567_v57, %v2571_v47  ;;  %v2577_v52 = vadd.s32 %v2571_v47, %v2567_v57  ;;  %v2295_v39 = vor.u32 %v2294_v45, %v2293_v54 }
 0x1bd   : > { %v2298_v61 = vshll.u32 %v2297_v11, 23  ;;  %v2556_v33 = vadd.s32 %v2554_v31, %v2548_v8  ;;  %vm2557_vm15 = vc.u32 %v2555_v26, %v2551_v46  ;;  %v2576_v20 = vsel %vm2575_vm14, 1, %v3748_v9  ;;  %v576_v26 = vpop.f32.mrf.mxu1 }
 0x1be   : > { %v2558_v56 = vsel %vm2557_vm15, 1, %v3748_v9  ;;  %vm2579_vm0 = vc.u32 %v2577_v52, %v2573_v38  ;;  %v2550_v5 = vshrl.u32 %v2546_v62, 16  ;;  %v2578_v21 = vadd.s32 %v2576_v20, %v2570_v16  ;;  %v526_v16 = vpop.f32.mrf.mxu0 }
 0x1bf   : > { %v2299_v44 = vor.u32 4788187, %v2298_v61  ;;  %v2560_v18 = vadd.s32 %v2558_v56, %v2556_v33  ;;  %v2552_v25 = vshrl.u32 %v2547_v27, 16  ;;  %v2572_v40 = vshrl.u32 %v2568_v19, 16 }
 0x1c0   : > { %v2580_v23 = vsel %vm2579_vm0, 1, %v3748_v9  ;;  %v2806_v60 = vshrl.u32 %v2805_v2, 23  ;;  %v2302_v32 = vcvt.s32.f32 %v2295_v39  ;;  %v475_v14 = vadd.f32 %v4068_v43, %v4661_v36 }
 0x1c1   : > { %v2300_v57 = vand.u32 2147483647, %v2299_v44  ;;  %v2561_v6 = vadd.s32 %v2560_v18, %v2550_v5  ;;  %v2582_v50 = vadd.s32 %v2580_v23, %v2578_v21  ;;  %v2309_v8 = vsel %vm4740_vm12, 0, %v2307_v35 }
 0x1c2   : > { %v3579_v62 = vadd.s32 4294967169, %v2806_v60  ;;  %v4756_v37 = vadd.f32 %v708_v1, %v650_v24  ;;  %v2574_v27 = vshrl.u32 %v2569_v53, 16  ;;  %v2531_v2 = vsel %vm2525_vm8, %v2528_v41, %v2530_v0 }
 0x1c3   : > { %v2303_v54 = vmul.f32 %v2302_v32, %v2300_v57  ;;  %v2562_v46 = vadd.s32 %v2561_v6, %v2552_v25  ;;  %v2583_v19 = vadd.s32 %v2582_v50, %v2572_v40  ;;  %v2581_v47 = vadd.s32 %v2577_v52, %v2573_v38 }
 0x1c4   : > { %v2809_v45 = vand.u32 8388607, %v2802_v58  ;;  %v2812_v11 = vadd.s32 1, %v3579_v62  ;;  %v2326_v35 = vadd.s32 3, %v2309_v8  ;;  %v527_v31 = vadd.f32 %v526_v16, %v475_v14 }
 0x1c5   : > { %v2304_v43 = vxor.u32 2147483648, %v2303_v54  ;;  %v2584_v36 = vadd.s32 %v2583_v19, %v2574_v27  ;;  %vm2587_vm1 = vc.u32 %v2562_v46, %v2581_v47  ;;  %v2585_v39 = vmul.u32 %v4666_v49, %v2531_v2 }
 0x1c6   : > { %vm2813_vm2 = vcmp.gt.s32.totalorder %v2812_v11, 0  ;;  %v2810_v38 = vor.u32 8388608, %v2809_v45  ;;  %v4768_v33 = vadd.f32 %v576_v26, %v527_v31  ;;  %v4772_v21 = vand.u32 3, %v2326_v35 }
 0x1c7   : > { %v2305_v53 = vsel %vm2184_vm7, %v2304_v43, %v2303_v54  ;;  %v2588_v61 = vadd.s32 1, %v2584_v36  ;;  %v2814_v7 = vsel %vm2813_vm2, %v2812_v11, 0  ;;  %v4774_v49 = vadd.s32 %v2581_v47, %v2562_v46 }
 0x1c8   : > { %v2308_v41 = vsel %vm4740_vm12, %v4461_v15, %v2305_v53  ;;  %v2816_v52 = vand.u32 31, %v2814_v7  ;;  %v4776_v1 = vshll.u32 %v2810_v38, 8  ;;  %v3112_v12 = vand.u32 2147483647, %v4768_v33 }
 0x1c9   : > { %v2310_v0 = vmul.f32 %v2308_v41, %v2308_v41  ;;  %v2589_v56 = vsel %vm2587_vm1, %v2588_v61, %v2584_v36  ;;  %v3115_v50 = vand.u32 2139095040, %v4768_v33  ;;  %vm2494_vm3 = vcmp.lt.s32.totalorder %v4518_v30, 0 }
 0x1ca   : > { %v2590_v20 = vadd.s32 %v2589_v56, %v2585_v39  ;;  %v4770_v44 = vsub.s32 32, %v2816_v52  ;;  %v2819_v32 = vshll.u32 %v3742_v22, %v2816_v52  ;;  %v2822_v62 = vshll.u32 %v3743_v13, %v2816_v52 }
 0x1cb   : > { %v2311_v5 = vmul.f32 -0.001358992, %v2310_v0  ;;  %v2318_v18 = vmul.f32 -0.00019511016, %v2310_v0  ;;  %v4791_v27 = vshrl.u32 %v2814_v7, 5  ;;  %v2825_v19 = vshll.u32 %v3744_v29, %v2816_v52 }
 0x1cc   : > { %v2591_v24 = vadd.s32 536870912, %v2590_v20  ;;  %v2820_v23 = vshrl.u32 %v3743_v13, %v4770_v44  ;;  %v2823_v60 = vshrl.u32 %v3744_v29, %v4770_v44  ;;  %v2829_v6 = vshrl.u32 %v3746_v42, %v4770_v44 }
 0x1cd   : > { %v2312_v25 = vadd.f32 0.041655596, %v2311_v5  ;;  %v2319_v40 = vadd.f32 0.008332121, %v2318_v18  ;;  %v2826_v54 = vshrl.u32 %v3745_v34, %v4770_v44  ;;  %v2828_v16 = vshll.u32 %v3745_v34, %v2816_v52 }
 0x1ce   : > { %v2592_v57 = vshrl.u32 %v2591_v24, 30  ;;  %vm2332_vm4 = vcmp.eq.s32.totalorder %v4772_v21, 2  ;;  %v2821_v45 = vor.u32 %v2820_v23, %v2819_v32  ;;  %v4796_v11 = vor.u32 %v2823_v60, %v2822_v62 }
 0x1cf   : > { %v2313_v14 = vmul.f32 %v2312_v25, %v2310_v0  ;;  %v2320_v8 = vmul.f32 %v2319_v40, %v2310_v0  ;;  %vm2329_vm5 = vcmp.eq.s32.totalorder %v4772_v21, 0  ;;  %v2830_v36 = vor.u32 %v2829_v6, %v2828_v16 }
 0x1d0   : > { %v2593_v46 = vshll.u32 %v2592_v57, 30  ;;  %v2831_v26 = vshll.u32 %v3746_v42, %v2816_v52  ;;  %v2832_v35 = vshrl.u32 %v3747_v48, %v4770_v44  ;;  %vm2328_vm6 = vcmp.lt.s32.totalorder %v4772_v21, 2 }
 0x1d1   : > { %v2314_v2 = vadd.f32 -0.4999988, %v2313_v14  ;;  %v2321_v47 = vadd.f32 -0.16666654, %v2320_v8  ;;  %vm4807_vm7 = vcmp.le.f32.partialorder %v2492_v17, 0.7853982  ;;  %v2827_v7 = vor.u32 %v2826_v54, %v2825_v19 }
 0x1d2   : > { %v4799_v43 = vsub.s32 %v2590_v20, %v2593_v46  ;;  %v2616_v61 = vsub.s32 4, %v2592_v57  ;;  %vm2325_vm8 = vweird.f32 %v4461_v15  ;;  %vm2834_vm10 = vcmp.lt.s32.totalorder %v4791_v27, 1 }
 0x1d3   : > { %v2315_v31 = vmul.f32 %v2314_v2, %v2310_v0  ;;  %v2322_v53 = vmul.f32 %v2321_v47, %v2310_v0  ;;  %vm2835_vm11 = vcmp.lt.s32.totalorder %v4791_v27, 2  ;;  %vm2837_vm12 = vcmp.lt.s32.totalorder %v4791_v27, 4 }
 0x1d4   : > { %vm2595_vm9 = vcmp.lt.s32.totalorder %v4799_v43, 0  ;;  %v2596_v38 = vsub.s32 0, %v4799_v43  ;;  %v2842_v17 = vsel %vm2834_vm10, %v2821_v45, %v4796_v11  ;;  %v2833_v20 = vor.u32 %v2832_v35, %v2831_v26 }
 0x1d5   : > { %v2316_v52 = vadd.f32 1.0, %v2315_v31  ;;  %v2323_v0 = vadd.f32 1.0, %v2322_v53  ;;  %vm2836_vm13 = vcmp.lt.s32.totalorder %v4791_v27, 3  ;;  %v2843_v5 = vsel %vm2837_vm12, %v2830_v36, 920167782 }
 0x1d6   : > { %v2597_v56 = vsel %vm2595_vm9, %v2596_v38, %v4799_v43  ;;  %v2844_v40 = vsel %vm2836_vm13, %v2827_v7, %v2843_v5  ;;  %v2851_v60 = vand.u32 65535, %v4776_v1  ;;  %v2852_v32 = vshrl.u32 %v4776_v1, 16 }
 0x1d7   : > { %v2324_v18 = vmul.f32 %v2323_v0, %v2308_v41  ;;  %v2333_v24 = vxor.u32 2147483648, %v2316_v52  ;;  %v2598_v25 = vclz %v2597_v56  ;;  %v2845_v23 = vsel %vm2835_vm11, %v2842_v17, %v2844_v40 }
 0x1d8   : > { %v3116_v6 = vshrl.u32 %v3115_v50, 23  ;;  %v4832_v62 = vsel %vm2494_vm3, %v2616_v61, %v2592_v57  ;;  %v2846_v41 = vsel %vm2834_vm10, %v4796_v11, %v2827_v7  ;;  %v2818_v46 = vshrl.u32 %v3742_v22, %v4770_v44 }
 0x1d9   : > { %v2330_v14 = vxor.u32 2147483648, %v2324_v18  ;;  %v3574_v8 = vadd.s32 4294967294, %v2598_v25  ;;  %v2334_v54 = vsel %vm2332_vm4, %v2333_v24, %v2324_v18  ;;  %v2847_v50 = vsel %vm2837_vm12, %v2833_v20, 1326507024 }
 0x1da   : > { %v2876_v19 = vshrl.u32 %v2845_v23, 16  ;;  %v2848_v57 = vsel %vm2836_vm13, %v2830_v36, %v2847_v50  ;;  %v2875_v2 = vand.u32 65535, %v2845_v23  ;;  %v2619_v44 = vsel %vm4807_vm7, 0, %v4832_v62 }
 0x1db   : > { %v2331_v16 = vsel %vm2329_vm5, %v2316_v52, %v2330_v14  ;;  %vm3575_vm14 = vcmp.lt.s32.totalorder %v3574_v8, 0  ;;  %v2849_v35 = vsel %vm2835_vm11, %v2846_v41, %v2848_v57  ;;  %v2839_v36 = vsel %vm2837_vm12, %v2827_v7, 2102212464 }
 0x1dc   : > { %v2335_v47 = vsel %vm2328_vm6, %v2331_v16, %v2334_v54  ;;  %v2601_v26 = vsel %vm3575_vm14, 0, %v3574_v8  ;;  %v2838_v21 = vsel %vm2834_vm10, %v2818_v46, %v2821_v45  ;;  %v2853_v38 = vand.u32 65535, %v2849_v35 }
 0x1dd   : > { %v2336_v31 = vsel %vm2325_vm8, nan, %v2335_v47  ;;  %v2602_v53 = vsub.s32 32, %v2601_v26  ;;  %v2606_v61 = vsub.s32 4294967266, %v2601_v26  ;;  %v2854_v52 = vshrl.u32 %v2849_v35, 16 }
 0x1de   : > { %3430 = vst [vmem:[%s4373_s28 + $0x40] sm:$0xff] %v2336_v31  ;;  %v2878_v0 = vmul.u32 %v2876_v19, %v2851_v60  ;;  %v2603_v17 = vshll.u32 %v4799_v43, %v2601_v26  ;;  %v2879_v5 = vmul.u32 %v2875_v2, %v2852_v32  ;;  %v2840_v15 = vsel %vm2836_vm13, %v4796_v11, %v2839_v36 }
 0x1df   : > { %v2604_v56 = vshrl.u32 %v4774_v49, %v2602_v53  ;;  %v2607_v20 = vadd.s32 127, %v2606_v61  ;;  %v2856_v18 = vmul.u32 %v2854_v52, %v2851_v60  ;;  %v2857_v24 = vmul.u32 %v2853_v38, %v2852_v32 }
 0x1e0   : > { %v3585_v7 = vadd.s32 4294967169, %v3116_v6  ;;  %v2877_v23 = vmul.u32 %v2875_v2, %v2851_v60  ;;  %v2881_v45 = vshll.u32 %v2878_v0, 16  ;;  %v2855_v14 = vmul.u32 %v2853_v38, %v2851_v60  ;;  %v658_v38 = vpop.f32.mrf.mxu2 }
 0x1e1   : > { %v2605_v25 = vor.u32 %v2604_v56, %v2603_v17  ;;  %v2608_v40 = vshll.u32 %v2607_v20, 23  ;;  %v2858_v8 = vmul.u32 %v2854_v52, %v2852_v32  ;;  %v2859_v41 = vshll.u32 %v2856_v18, 16  ;;  %v712_v52 = vpop.f32.mrf.mxu3 }
 0x1e2   : > { %v2880_v54 = vmul.u32 %v2876_v19, %v2852_v32  ;;  %v2861_v49 = vshll.u32 %v2857_v24, 16  ;;  %v2883_v50 = vshll.u32 %v2879_v5, 16  ;;  %vm2885_vm0 = vc.u32 %v2877_v23, %v2881_v45 }
 0x1e3   : > { %v2609_v43 = vor.u32 4788187, %v2608_v40  ;;  %v2612_v46 = vcvt.s32.f32 %v2605_v25  ;;  %vm2863_vm15 = vc.u32 %v2855_v14, %v2859_v41  ;;  %v2865_v16 = vadd.s32 %v2859_v41, %v2855_v14 }
 0x1e4   : > { %v2887_v57 = vadd.s32 %v2881_v45, %v2877_v23  ;;  %v2864_v47 = vsel %vm2863_vm15, 1, %v3748_v9  ;;  %v2886_v6 = vsel %vm2885_vm0, 1, %v3748_v9  ;;  %v3122_v26 = vadd.s32 1, %v3585_v7 }
 0x1e5   : > { %v2610_v11 = vand.u32 2147483647, %v2609_v43  ;;  %v2866_v2 = vadd.s32 %v2864_v47, %v2858_v8  ;;  %vm2867_vm1 = vc.u32 %v2865_v16, %v2861_v49  ;;  %v2888_v60 = vadd.s32 %v2886_v6, %v2880_v54 }
 0x1e6   : > { %vm2889_vm2 = vc.u32 %v2887_v57, %v2883_v50  ;;  %v2868_v32 = vsel %vm2867_vm1, 1, %v3748_v9  ;;  %v2882_v19 = vshrl.u32 %v2878_v0, 16  ;;  %v2860_v53 = vshrl.u32 %v2856_v18, 16 }
 0x1e7   : > { %v2613_v35 = vmul.f32 %v2612_v46, %v2610_v11  ;;  %v2890_v31 = vsel %vm2889_vm2, 1, %v3748_v9  ;;  %v2870_v61 = vadd.s32 %v2868_v32, %v2866_v2  ;;  %vm3123_vm4 = vcmp.gt.s32.totalorder %v3122_v26, 0 }
 0x1e8   : > { %v2892_v36 = vadd.s32 %v2890_v31, %v2888_v60  ;;  %v2841_v56 = vsel %vm2835_vm11, %v2838_v21, %v2840_v15  ;;  %v2862_v20 = vshrl.u32 %v2857_v24, 16  ;;  %v3124_v7 = vsel %vm3123_vm4, %v3122_v26, 0 }
 0x1e9   : > { %v2614_v17 = vxor.u32 2147483648, %v2613_v35  ;;  %v2871_v25 = vadd.s32 %v2870_v61, %v2860_v53  ;;  %v2884_v40 = vshrl.u32 %v2879_v5, 16  ;;  %v3126_v45 = vand.u32 31, %v3124_v7 }
 0x1ea   : > { %v2893_v23 = vadd.s32 %v2892_v36, %v2882_v19  ;;  %v4874_v14 = vadd.s32 %v2887_v57, %v2883_v50  ;;  %v3119_v18 = vand.u32 8388607, %v3112_v12  ;;  %v4878_v8 = vadd.f32 %v712_v52, %v658_v38 }
 0x1eb   : > { %v2615_v0 = vsel %vm2494_vm3, %v2614_v17, %v2613_v35  ;;  %v4885_v21 = vadd.s32 %v2871_v25, %v2862_v20  ;;  %v4887_v15 = vsub.s32 32, %v3126_v45  ;;  %v2636_v41 = vadd.s32 3, %v2619_v44 }
 0x1ec   : > { %v4883_v27 = vsel %vm4807_vm7, %v4518_v30, %v2615_v0  ;;  %v2894_v5 = vadd.s32 %v2893_v23, %v2884_v40  ;;  %v2895_v54 = vmul.u32 %v4776_v1, %v2841_v56  ;;  %v4896_v43 = vshrl.u32 %v3124_v7, 5 }
 0x1ed   : > { %v2620_v24 = vmul.f32 %v4883_v27, %v4883_v27  ;;  %vm2897_vm3 = vc.u32 %v4885_v21, %v4874_v14  ;;  %v3129_v49 = vshll.u32 %v3742_v22, %v3126_v45  ;;  %v3132_v50 = vshll.u32 %v3743_v13, %v3126_v45 }
 0x1ee   : > { %v2898_v46 = vadd.s32 1, %v2894_v5  ;;  %v3130_v39 = vshrl.u32 %v3743_v13, %v4887_v15  ;;  %v3133_v62 = vshrl.u32 %v3744_v29, %v4887_v15  ;;  %v3136_v1 = vshrl.u32 %v3745_v34, %v4887_v15 }
 0x1ef   : > { %v2621_v16 = vmul.f32 -0.001358992, %v2620_v24  ;;  %v2628_v57 = vmul.f32 -0.00019511016, %v2620_v24  ;;  %v3138_v11 = vshll.u32 %v3745_v34, %v3126_v45  ;;  %v3139_v47 = vshrl.u32 %v3746_v42, %v4887_v15 }
 0x1f0   : > { %v2899_v44 = vsel %vm2897_vm3, %v2898_v46, %v2894_v5  ;;  %v3135_v60 = vshll.u32 %v3744_v29, %v3126_v45  ;;  %v4912_v35 = vor.u32 %v3130_v39, %v3129_v49  ;;  %v4914_v32 = vor.u32 %v3133_v62, %v3132_v50 }
 0x1f1   : > { %v2622_v6 = vadd.f32 0.041655596, %v2621_v16  ;;  %v2629_v26 = vadd.f32 0.008332121, %v2628_v57  ;;  %v2900_v2 = vadd.s32 %v2899_v44, %v2895_v54  ;;  %v3140_v19 = vor.u32 %v3139_v47, %v3138_v11  ;;  %v736_v16 = vpop.f32.mrf.mxu0 }
 0x1f2   : > { %v3141_v31 = vshll.u32 %v3746_v42, %v3126_v45  ;;  %v3142_v38 = vshrl.u32 %v3747_v48, %v4887_v15  ;;  %v685_v52 = vadd.f32 %v4076_v51, %v4081_v55  ;;  %v3120_v17 = vor.u32 8388608, %v3119_v18 }
 0x1f3   : > { %v2623_v53 = vmul.f32 %v2622_v6, %v2620_v24  ;;  %v2630_v61 = vmul.f32 %v2629_v26, %v2620_v24  ;;  %v2901_v36 = vadd.s32 536870912, %v2900_v2  ;;  %v3137_v56 = vor.u32 %v3136_v1, %v3135_v60 }
 0x1f4   : > { %vm3147_vm5 = vcmp.lt.s32.totalorder %v4896_v43, 4  ;;  %v3143_v40 = vor.u32 %v3142_v38, %v3141_v31  ;;  %v2637_v23 = vand.u32 3, %v2636_v41  ;;  %vm3144_vm6 = vcmp.lt.s32.totalorder %v4896_v43, 1 }
 0x1f5   : > { %v2624_v20 = vadd.f32 -0.4999988, %v2623_v53  ;;  %v2631_v7 = vadd.f32 -0.16666654, %v2630_v61  ;;  %v4922_v25 = vshrl.u32 %v2901_v36, 30  ;;  %vm3146_vm7 = vcmp.lt.s32.totalorder %v4896_v43, 3 }
 0x1f6   : > { %v3153_v45 = vsel %vm3147_vm5, %v3140_v19, 920167782  ;;  %v3152_v55 = vsel %vm3144_vm6, %v4912_v35, %v4914_v32  ;;  %vm2635_vm8 = vweird.f32 %v4518_v30  ;;  %vm3145_vm9 = vcmp.lt.s32.totalorder %v4896_v43, 2  ;;  %v861_v30 = vpop.f32.mrf.mxu2 }
 0x1f7   : > { %v2625_v0 = vmul.f32 %v2624_v20, %v2620_v24  ;;  %v2632_v5 = vmul.f32 %v2631_v7, %v2620_v24  ;;  %v2903_v51 = vshll.u32 %v4922_v25, 30  ;;  %v3154_v18 = vsel %vm3146_vm7, %v3137_v56, %v3153_v45 }
 0x1f8   : > { %v3157_v41 = vsel %vm3147_vm5, %v3143_v40, 1326507024  ;;  %v4939_v54 = vshll.u32 %v3120_v17, 8  ;;  %v3156_v50 = vsel %vm3144_vm6, %v4914_v32, %v3137_v56  ;;  %vm2638_vm10 = vcmp.lt.s32.totalorder %v2637_v23, 2 }
 0x1f9   : > { %v2626_v24 = vadd.f32 1.0, %v2625_v0  ;;  %v2633_v46 = vadd.f32 1.0, %v2632_v5  ;;  %v4941_v49 = vsub.s32 %v2900_v2, %v2903_v51  ;;  %vm2639_vm11 = vcmp.eq.s32.totalorder %v2637_v23, 0  ;;  %v795_v0 = vpop.f32.mrf.mxu1 }
 0x1fa   : > { %v3155_v57 = vsel %vm3145_vm9, %v3152_v55, %v3154_v18  ;;  %v3158_v39 = vsel %vm3146_vm7, %v3140_v19, %v3157_v41  ;;  %vm2642_vm13 = vcmp.eq.s32.totalorder %v2637_v23, 2  ;;  %v4955_v6 = vadd.f32 %v736_v16, %v685_v52 }
 0x1fb   : > { %v2634_v62 = vmul.f32 %v2633_v46, %v4883_v27  ;;  %v2643_v44 = vxor.u32 2147483648, %v2626_v24  ;;  %vm2905_vm12 = vcmp.lt.s32.totalorder %v4941_v49, 0  ;;  %v2906_v1 = vsub.s32 0, %v4941_v49 }
 0x1fc   : > { %v3159_v11 = vsel %vm3145_vm9, %v3156_v50, %v3158_v39  ;;  %v3186_v47 = vshrl.u32 %v3155_v57, 16  ;;  %v3161_v60 = vand.u32 65535, %v4939_v54  ;;  %v3162_v27 = vshrl.u32 %v4939_v54, 16 }
 0x1fd   : > { %v2640_v26 = vxor.u32 2147483648, %v2634_v62  ;;  %v2907_v2 = vsel %vm2905_vm12, %v2906_v1, %v4941_v49  ;;  %v3163_v19 = vand.u32 65535, %v3159_v11  ;;  %v3164_v53 = vshrl.u32 %v3159_v11, 16 }
 0x1fe   : > { %v2908_v31 = vclz %v2907_v2  ;;  %v3185_v61 = vand.u32 65535, %v3155_v57  ;;  %v2644_v38 = vsel %vm2642_vm13, %v2643_v44, %v2634_v62  ;;  %v2896_v17 = vadd.s32 %v4874_v14, %v4885_v21  ;;  %v911_v44 = vpop.f32.mrf.mxu3 }
 0x1ff   : > { %v2641_v36 = vsel %vm2639_vm11, %v2626_v24, %v2640_v26  ;;  %v3128_v52 = vshrl.u32 %v3742_v22, %v4887_v15  ;;  %v3167_v40 = vmul.u32 %v3163_v19, %v3162_v27  ;;  %v3188_v45 = vmul.u32 %v3186_v47, %v3161_v60 }
 0x200   : > { %v2645_v20 = vsel %vm2638_vm10, %v2641_v36, %v2644_v38  ;;  %v3580_v7 = vadd.s32 4294967294, %v2908_v31  ;;  %v3149_v55 = vsel %vm3147_vm5, %v3137_v56, 2102212464  ;;  %v3166_v14 = vmul.u32 %v3164_v53, %v3161_v60 }
 0x201   : > { %v2646_v5 = vsel %vm2635_vm8, nan, %v2645_v20  ;;  %v3148_v51 = vsel %vm3144_vm6, %v3128_v52, %v4912_v35  ;;  %v2926_v21 = vsub.s32 4, %v4922_v25  ;;  %v3187_v15 = vmul.u32 %v3185_v61, %v3161_v60 }
 0x202   : > { %3432 = vst [vmem:[%s4373_s28 + $0x50] sm:$0xff] %v2646_v5  ;;  %vm3581_vm14 = vcmp.lt.s32.totalorder %v3580_v7, 0  ;;  %v3189_v23 = vmul.u32 %v3185_v61, %v3162_v27  ;;  %v3165_v41 = vmul.u32 %v3163_v19, %v3161_v60  ;;  %v3168_v24 = vmul.u32 %v3164_v53, %v3162_v27  ;;  %v801_v5 = vpop.f32.mrf.mxu1 }
 0x203   : > { %v2911_v18 = vsel %vm3581_vm14, 0, %v3580_v7  ;;  %v3169_v46 = vshll.u32 %v3166_v14, 16  ;;  %v3171_v57 = vshll.u32 %v3167_v40, 16  ;;  %v3191_v39 = vshll.u32 %v3188_v45, 16 }
 0x204   : > { %v2912_v50 = vsub.s32 32, %v2911_v18  ;;  %v2916_v16 = vsub.s32 4294967266, %v2911_v18  ;;  %v2913_v35 = vshll.u32 %v4941_v49, %v2911_v18  ;;  %v3190_v62 = vmul.u32 %v3186_v47, %v3162_v27  ;;  %v741_v49 = vpop.f32.mrf.mxu0 }
 0x205   : > { %vm3173_vm15 = vc.u32 %v3165_v41, %v3169_v46  ;;  %v3175_v56 = vadd.s32 %v3169_v46, %v3165_v41  ;;  %v3193_v2 = vshll.u32 %v3189_v23, 16  ;;  %vm3195_vm1 = vc.u32 %v3187_v15, %v3191_v39 }
 0x206   : > { %v2914_v1 = vshrl.u32 %v2896_v17, %v2912_v50  ;;  %v2917_v11 = vadd.s32 127, %v2916_v16  ;;  %v3174_v26 = vsel %vm3173_vm15, 1, %v3748_v9  ;;  %v3197_v60 = vadd.s32 %v3191_v39, %v3187_v15 }
 0x207   : > { %v3176_v31 = vadd.s32 %v3174_v26, %v3168_v24  ;;  %vm3177_vm0 = vc.u32 %v3175_v56, %v3171_v57  ;;  %v3196_v36 = vsel %vm3195_vm1, 1, %v3748_v9  ;;  %v3170_v38 = vshrl.u32 %v3166_v14, 16 }
 0x208   : > { %v2915_v19 = vor.u32 %v2914_v1, %v2913_v35  ;;  %v2918_v53 = vshll.u32 %v2917_v11, 23  ;;  %v3178_v61 = vsel %vm3177_vm0, 1, %v3748_v9  ;;  %v3198_v47 = vadd.s32 %v3196_v36, %v3190_v62  ;;  %v865_v35 = vpop.f32.mrf.mxu2  ;;  %v915_v11 = vpop.f32.mrf.mxu3 }
 0x209   : > { %v3180_v52 = vadd.s32 %v3178_v61, %v3176_v31  ;;  %vm3199_vm2 = vc.u32 %v3197_v60, %v3193_v2  ;;  %v3172_v17 = vshrl.u32 %v3167_v40, 16  ;;  %v3192_v20 = vshrl.u32 %v3188_v45, 16 }
 0x20a   : > { %v2919_v27 = vor.u32 4788187, %v2918_v53  ;;  %v3200_v7 = vsel %vm3199_vm2, 1, %v3748_v9  ;;  %v742_v15 = vadd.f32 %v741_v49, %v4090_v10  ;;  %v796_v24 = vadd.f32 %v795_v0, %v4955_v6 }
 0x20b   : > { %v3181_v18 = vadd.s32 %v3180_v52, %v3170_v38  ;;  %v3202_v41 = vadd.s32 %v3200_v7, %v3198_v47  ;;  %v2922_v50 = vcvt.s32.f32 %v2915_v19  ;;  %v3150_v14 = vsel %vm3146_vm7, %v4914_v32, %v3149_v55 }
 0x20c   : > { %v2920_v46 = vand.u32 2147483647, %v2919_v27  ;;  %v3194_v16 = vshrl.u32 %v3189_v23, 16  ;;  %v862_v40 = vadd.f32 %v861_v30, %v796_v24  ;;  %v802_v45 = vadd.f32 %v801_v5, %v742_v15 }
 0x20d   : > { %v3182_v57 = vadd.s32 %v3181_v18, %v3172_v17  ;;  %v3203_v39 = vadd.s32 %v3202_v41, %v3192_v20  ;;  %vm2804_vm4 = vcmp.lt.s32.totalorder %v4701_v63, 0  ;;  %v3201_v62 = vadd.s32 %v3197_v60, %v3193_v2 }
 0x20e   : > { %v2923_v56 = vmul.f32 %v2922_v50, %v2920_v46  ;;  %v2927_v10 = vsel %vm2804_vm4, %v2926_v21, %v4922_v25  ;;  %v3151_v6 = vsel %vm3145_vm9, %v3148_v51, %v3150_v14  ;;  %v4989_v1 = vadd.f32 %v911_v44, %v862_v40 }
 0x20f   : > { %v3204_v0 = vadd.s32 %v3203_v39, %v3194_v16  ;;  %vm3207_vm3 = vc.u32 %v3182_v57, %v3201_v62  ;;  %v866_v55 = vadd.f32 %v865_v35, %v802_v45  ;;  %vm2803_vm5 = vcmp.le.f32.partialorder %v2802_v58, 0.7853982 }
 0x210   : > { %v2924_v32 = vxor.u32 2147483648, %v2923_v56  ;;  %v1100_v30 = vand.u32 2139095040, %v4989_v1  ;;  %v2929_v2 = vsel %vm2803_vm5, 0, %v2927_v10  ;;  %v3205_v25 = vmul.u32 %v4939_v54, %v3151_v6 }
 0x211   : > { %v3208_v23 = vadd.s32 1, %v3204_v0  ;;  %v4995_v21 = vadd.f32 %v915_v11, %v866_v55  ;;  %v1097_v44 = vand.u32 2147483647, %v4989_v1  ;;  %v2946_v53 = vadd.s32 3, %v2929_v2 }
 0x212   : > { %v2925_v26 = vsel %vm2804_vm4, %v2924_v32, %v2923_v56  ;;  %v1101_v31 = vshrl.u32 %v1100_v30, 23  ;;  %vm3114_vm6 = vcmp.lt.s32.totalorder %v4768_v33, 0  ;;  %vm5005_vm8 = vcmp.le.f32.partialorder %v3112_v12, 0.7853982 }
 0x213   : > { %v2928_v43 = vsel %vm2803_vm5, %v4701_v63, %v2925_v26  ;;  %v3209_v51 = vsel %vm3207_vm3, %v3208_v23, %v3204_v0  ;;  %v1410_v58 = vand.u32 2139095040, %v4995_v21  ;;  %v1104_v54 = vand.u32 8388607, %v1097_v44 }
 0x214   : > { %v2930_v60 = vmul.f32 %v2928_v43, %v2928_v43  ;;  %v3210_v19 = vadd.s32 %v3209_v51, %v3205_v25  ;;  %v3546_v61 = vadd.s32 4294967169, %v1101_v31  ;;  %v2947_v7 = vand.u32 3, %v2946_v53 }
 0x215   : > { %v1411_v47 = vshrl.u32 %v1410_v58, 23  ;;  %v1105_v50 = vor.u32 8388608, %v1104_v54  ;;  %v1407_v16 = vand.u32 2147483647, %v4995_v21  ;;  %v3206_v56 = vadd.s32 %v3201_v62, %v3182_v57 }
 0x216   : > { %v2931_v36 = vmul.f32 -0.001358992, %v2930_v60  ;;  %v2938_v49 = vmul.f32 -0.00019511016, %v2930_v60  ;;  %v3211_v38 = vadd.s32 536870912, %v3210_v19  ;;  %v1107_v52 = vadd.s32 1, %v3546_v61 }
 0x217   : > { %v3552_v5 = vadd.s32 4294967169, %v1411_v47  ;;  %vm2949_vm9 = vcmp.eq.s32.totalorder %v2947_v7, 0  ;;  %vm2952_vm10 = vcmp.eq.s32.totalorder %v2947_v7, 2  ;;  %vm2948_vm11 = vcmp.lt.s32.totalorder %v2947_v7, 2 }
 0x218   : > { %v2932_v27 = vadd.f32 0.041655596, %v2931_v36  ;;  %v2939_v17 = vadd.f32 0.008332121, %v2938_v49  ;;  %v3212_v20 = vshrl.u32 %v3211_v38, 30  ;;  %vm1108_vm7 = vcmp.gt.s32.totalorder %v1107_v52, 0 }
 0x219   : > { %v1109_v14 = vsel %vm1108_vm7, %v1107_v52, 0  ;;  %v5014_v6 = vadd.s32 1, %v3552_v5  ;;  %vm2945_vm13 = vweird.f32 %v4701_v63  ;;  %v5021_v23 = vshll.u32 %v1105_v50, 8 }
 0x21a   : > { %v2933_v18 = vmul.f32 %v2932_v27, %v2930_v60  ;;  %v2940_v41 = vmul.f32 %v2939_v17, %v2930_v60  ;;  %v3213_v15 = vshll.u32 %v3212_v20, 30  ;;  %v3236_v24 = vsub.s32 4, %v3212_v20 }
 0x21b   : > { %v1111_v10 = vand.u32 31, %v1109_v14  ;;  %v5025_v57 = vand.u32 8388607, %v1407_v16  ;;  %v5028_v2 = vshrl.u32 %v1109_v14, 5  ;;  %vm1418_vm14 = vcmp.gt.s32.totalorder %v5014_v6, 0 }
 0x21c   : > { %v2934_v39 = vadd.f32 -0.4999988, %v2933_v18  ;;  %v2941_v40 = vadd.f32 -0.16666654, %v2940_v41  ;;  %v5010_v45 = vsub.s32 %v3210_v19, %v3213_v15  ;;  %v3237_v35 = vsel %vm3114_vm6, %v3236_v24, %v3212_v20 }
 0x21d   : > { %v3239_v32 = vsel %vm5005_vm8, 0, %v3237_v35  ;;  %v1112_v55 = vsub.s32 32, %v1111_v10  ;;  %v1114_v51 = vshll.u32 %v3742_v22, %v1111_v10  ;;  %v1120_v54 = vshll.u32 %v3744_v29, %v1111_v10 }
 0x21e   : > { %v2935_v12 = vmul.f32 %v2934_v39, %v2930_v60  ;;  %v2942_v0 = vmul.f32 %v2941_v40, %v2930_v60  ;;  %vm3215_vm12 = vcmp.lt.s32.totalorder %v5010_v45, 0  ;;  %v3216_v11 = vsub.s32 0, %v5010_v45 }
 0x21f   : > { %v1115_v31 = vshrl.u32 %v3743_v13, %v1112_v55  ;;  %v1117_v60 = vshll.u32 %v3743_v13, %v1111_v10  ;;  %v1118_v61 = vshrl.u32 %v3744_v29, %v1112_v55  ;;  %v1121_v58 = vshrl.u32 %v3745_v34, %v1112_v55 }
 0x220   : > { %v2936_v62 = vadd.f32 1.0, %v2935_v12  ;;  %v2943_v30 = vadd.f32 1.0, %v2942_v0  ;;  %v3217_v26 = vsel %vm3215_vm12, %v3216_v11, %v5010_v45  ;;  %v3256_v49 = vadd.s32 3, %v3239_v32 }
 0x221   : > { %v3218_v25 = vclz %v3217_v26  ;;  %v1113_v38 = vshrl.u32 %v3742_v22, %v1112_v55  ;;  %v1116_v27 = vor.u32 %v1115_v31, %v1114_v51  ;;  %v1119_v17 = vor.u32 %v1118_v61, %v1117_v60 }
 0x222   : > { %v2944_v19 = vmul.f32 %v2943_v30, %v2928_v43  ;;  %v2953_v53 = vxor.u32 2147483648, %v2936_v62  ;;  %v1122_v20 = vor.u32 %v1121_v58, %v1120_v54  ;;  %v1123_v43 = vshll.u32 %v3745_v34, %v1111_v10 }
 0x223   : > { %v3586_v36 = vadd.s32 4294967294, %v3218_v25  ;;  %v1124_v5 = vshrl.u32 %v3746_v42, %v1112_v55  ;;  %v1126_v15 = vshll.u32 %v3746_v42, %v1111_v10  ;;  %v1127_v24 = vshrl.u32 %v3747_v48, %v1112_v55 }
 0x224   : > { %v2950_v52 = vxor.u32 2147483648, %v2944_v19  ;;  %v2954_v47 = vsel %vm2952_vm10, %v2953_v53, %v2944_v19  ;;  %vm1129_vm0 = vcmp.lt.s32.totalorder %v5028_v2, 1  ;;  %vm1130_vm1 = vcmp.lt.s32.totalorder %v5028_v2, 2 }
 0x225   : > { %vm3587_vm15 = vcmp.lt.s32.totalorder %v3586_v36, 0  ;;  %v1125_v12 = vor.u32 %v1124_v5, %v1123_v43  ;;  %v1128_v0 = vor.u32 %v1127_v24, %v1126_v15  ;;  %vm1131_vm2 = vcmp.lt.s32.totalorder %v5028_v2, 3 }
 0x226   : > { %v2951_v18 = vsel %vm2949_vm9, %v2936_v62, %v2950_v52  ;;  %v3221_v41 = vsel %vm3587_vm15, 0, %v3586_v36  ;;  %vm1132_vm4 = vcmp.lt.s32.totalorder %v5028_v2, 4  ;;  %v1133_v7 = vsel %vm1129_vm0, %v1113_v38, %v1116_v27 }
 0x227   : > { %v2955_v50 = vsel %vm2948_vm11, %v2951_v18, %v2954_v47  ;;  %v3222_v14 = vsub.s32 32, %v3221_v41  ;;  %v3223_v39 = vshll.u32 %v5010_v45, %v3221_v41  ;;  %v3226_v40 = vsub.s32 4294967266, %v3221_v41 }
 0x228   : > { %v2956_v35 = vsel %vm2945_vm13, nan, %v2955_v50  ;;  %v1137_v10 = vsel %vm1129_vm0, %v1116_v27, %v1119_v17  ;;  %v1141_v45 = vsel %vm1129_vm0, %v1119_v17, %v1122_v20  ;;  %v1134_v63 = vsel %vm1132_vm4, %v1122_v20, 2102212464 }
 0x229   : > { %3434 = vst [vmem:[%s4373_s28 + $0x60] sm:$0xff] %v2956_v35  ;;  %v3224_v11 = vshrl.u32 %v3206_v56, %v3222_v14  ;;  %v3227_v32 = vadd.s32 127, %v3226_v40  ;;  %v1138_v30 = vsel %vm1132_vm4, %v1125_v12, 920167782  ;;  %v1135_v26 = vsel %vm1131_vm2, %v1119_v17, %v1134_v63 }
 0x22a   : > { %v1139_v56 = vsel %vm1131_vm2, %v1122_v20, %v1138_v30  ;;  %v1142_v25 = vsel %vm1132_vm4, %v1128_v0, 1326507024  ;;  %v1419_v51 = vsel %vm1418_vm14, %v5014_v6, 0  ;;  %v1146_v19 = vand.u32 65535, %v5021_v23 }
 0x22b   : > { %v3225_v55 = vor.u32 %v3224_v11, %v3223_v39  ;;  %v3228_v62 = vshll.u32 %v3227_v32, 23  ;;  %v1140_v60 = vsel %vm1130_vm1, %v1137_v10, %v1139_v56  ;;  %v1147_v53 = vshrl.u32 %v5021_v23, 16 }
 0x22c   : > { %v5066_v61 = vsel %vm1130_vm1, %v1133_v7, %v1135_v26  ;;  %v1143_v58 = vsel %vm1131_vm2, %v1125_v12, %v1142_v25  ;;  %v1170_v36 = vand.u32 65535, %v1140_v60  ;;  %v1171_v38 = vshrl.u32 %v1140_v60, 16 }
 0x22d   : > { %v3229_v31 = vor.u32 4788187, %v3228_v62  ;;  %v3232_v52 = vcvt.s32.f32 %v3225_v55  ;;  %v1144_v6 = vsel %vm1130_vm1, %v1141_v45, %v1143_v58  ;;  %v5072_v47 = vand.u32 31, %v1419_v51 }
 0x22e   : > { %v5074_v27 = vand.u32 3, %v3256_v49  ;;  %v1148_v17 = vand.u32 65535, %v1144_v6  ;;  %v1149_v20 = vshrl.u32 %v1144_v6, 16  ;;  %v1173_v43 = vmul.u32 %v1171_v38, %v1146_v19 }
 0x22f   : > { %v3230_v54 = vand.u32 2147483647, %v3229_v31  ;;  %v1174_v18 = vmul.u32 %v1170_v36, %v1147_v53  ;;  %v1190_v41 = vmul.u32 %v5021_v23, %v5066_v61  ;;  %v5078_v15 = vshrl.u32 %v1419_v51, 5 }
 0x230   : > { %v1151_v24 = vmul.u32 %v1149_v20, %v1146_v19  ;;  %v1152_v50 = vmul.u32 %v1148_v17, %v1147_v53  ;;  %v1172_v14 = vmul.u32 %v1170_v36, %v1146_v19  ;;  %v1175_v39 = vmul.u32 %v1171_v38, %v1147_v53 }
 0x231   : > { %v3233_v5 = vmul.f32 %v3232_v52, %v3230_v54  ;;  %v1150_v40 = vmul.u32 %v1148_v17, %v1146_v19  ;;  %v1176_v35 = vshll.u32 %v1173_v43, 16  ;;  %v5081_v49 = vsub.s32 32, %v5072_v47 }
 0x232   : > { %v1153_v12 = vmul.u32 %v1149_v20, %v1147_v53  ;;  %v1154_v0 = vshll.u32 %v1151_v24, 16  ;;  %v1177_v11 = vshrl.u32 %v1173_v43, 16  ;;  %v1178_v32 = vshll.u32 %v1174_v18, 16 }
 0x233   : > { %v3234_v2 = vxor.u32 2147483648, %v3233_v5  ;;  %v1156_v10 = vshll.u32 %v1152_v50, 16  ;;  %vm1180_vm3 = vc.u32 %v1172_v14, %v1176_v35  ;;  %v1182_v45 = vadd.s32 %v1176_v35, %v1172_v14 }
 0x234   : > { %vm1158_vm5 = vc.u32 %v1150_v40, %v1154_v0  ;;  %v1160_v62 = vadd.s32 %v1154_v0, %v1150_v40  ;;  %v1181_v63 = vsel %vm1180_vm3, 1, %v3748_v9  ;;  %v1155_v25 = vshrl.u32 %v1151_v24, 16 }
 0x235   : > { %v3235_v7 = vsel %vm3114_vm6, %v3234_v2, %v3233_v5  ;;  %v1159_v26 = vsel %vm1158_vm5, 1, %v3748_v9  ;;  %v1183_v56 = vadd.s32 %v1181_v63, %v1175_v39  ;;  %vm1184_vm7 = vc.u32 %v1182_v45, %v1178_v32 }
 0x236   : > { %v3238_v55 = vsel %vm5005_vm8, %v4768_v33, %v3235_v7  ;;  %v1161_v51 = vadd.s32 %v1159_v26, %v1153_v12  ;;  %vm1162_vm9 = vc.u32 %v1160_v62, %v1156_v10  ;;  %v1185_v31 = vsel %vm1184_vm7, 1, %v3748_v9 }
 0x237   : > { %v3240_v30 = vmul.f32 %v3238_v55, %v3238_v55  ;;  %v1163_v53 = vsel %vm1162_vm9, 1, %v3748_v9  ;;  %v1187_v46 = vadd.s32 %v1185_v31, %v1183_v56  ;;  %v1157_v58 = vshrl.u32 %v1152_v50, 16 }
 0x238   : > { %v1165_v36 = vadd.s32 %v1163_v53, %v1161_v51  ;;  %v1179_v38 = vshrl.u32 %v1174_v18, 16  ;;  %v1425_v54 = vshrl.u32 %v3743_v13, %v5081_v49  ;;  %v1424_v20 = vshll.u32 %v3742_v22, %v5072_v47 }
 0x239   : > { %v3241_v60 = vmul.f32 -0.001358992, %v3240_v30  ;;  %v3248_v19 = vmul.f32 -0.00019511016, %v3240_v30  ;;  %v1188_v17 = vadd.s32 %v1187_v46, %v1177_v11  ;;  %v5096_v5 = vadd.s32 %v1182_v45, %v1178_v32 }
 0x23a   : > { %v1166_v43 = vadd.s32 %v1165_v36, %v1155_v25  ;;  %v1427_v24 = vshll.u32 %v3743_v13, %v5072_v47  ;;  %v1428_v50 = vshrl.u32 %v3744_v29, %v5081_v49  ;;  %v5102_v2 = vor.u32 %v1425_v54, %v1424_v20 }
 0x23b   : > { %v3242_v52 = vadd.f32 0.041655596, %v3241_v60  ;;  %v3249_v6 = vadd.f32 0.008332121, %v3248_v19  ;;  %v1189_v39 = vadd.s32 %v1188_v17, %v1179_v38  ;;  %v1431_v35 = vshrl.u32 %v3745_v34, %v5081_v49 }
 0x23c   : > { %v5104_v40 = vadd.s32 %v1166_v43, %v1157_v58  ;;  %v1433_v12 = vshll.u32 %v3745_v34, %v5072_v47  ;;  %v1434_v0 = vshrl.u32 %v3746_v42, %v5081_v49  ;;  %v1430_v10 = vshll.u32 %v3744_v29, %v5072_v47 }
 0x23d   : > { %v3243_v14 = vmul.f32 %v3242_v52, %v3240_v30  ;;  %v3250_v18 = vmul.f32 %v3249_v6, %v3240_v30  ;;  %v1193_v7 = vadd.s32 1, %v1189_v39  ;;  %v5116_v45 = vor.u32 %v1428_v50, %v1427_v24 }
 0x23e   : > { %vm1192_vm6 = vc.u32 %v5104_v40, %v5096_v5  ;;  %v1435_v62 = vor.u32 %v1434_v0, %v1433_v12  ;;  %v1436_v63 = vshll.u32 %v3746_v42, %v5072_v47  ;;  %v1437_v51 = vshrl.u32 %v3747_v48, %v5081_v49  ;;  %v746_v12 = vpop.f32.mrf.mxu0 }
 0x23f   : > { %v3244_v11 = vadd.f32 -0.4999988, %v3243_v14  ;;  %v3251_v32 = vadd.f32 -0.16666654, %v3250_v18  ;;  %v1194_v25 = vsel %vm1192_vm6, %v1193_v7, %v1189_v39  ;;  %v1415_v60 = vor.u32 8388608, %v5025_v57 }
 0x240   : > { %v1195_v31 = vadd.s32 %v1194_v25, %v1190_v41  ;;  %v5126_v19 = vor.u32 %v1431_v35, %v1430_v10  ;;  %v1438_v58 = vor.u32 %v1437_v51, %v1436_v63  ;;  %vm1439_vm8 = vcmp.lt.s32.totalorder %v5078_v15, 1 }
 0x241   : > { %v3245_v26 = vmul.f32 %v3244_v11, %v3240_v30  ;;  %v3252_v56 = vmul.f32 %v3251_v32, %v3240_v30  ;;  %vm3258_vm10 = vcmp.lt.s32.totalorder %v5074_v27, 2  ;;  %vm1442_vm11 = vcmp.lt.s32.totalorder %v5078_v15, 4 }
 0x242   : > { %v1196_v47 = vadd.s32 536870912, %v1195_v31  ;;  %v1447_v23 = vsel %vm1439_vm8, %v5102_v2, %v5116_v45  ;;  %vm1441_vm12 = vcmp.lt.s32.totalorder %v5078_v15, 3  ;;  %v1448_v57 = vsel %vm1442_vm11, %v1435_v62, 920167782 }
 0x243   : > { %v3246_v53 = vadd.f32 1.0, %v3245_v26  ;;  %v3253_v46 = vadd.f32 1.0, %v3252_v56  ;;  %vm1440_vm13 = vcmp.lt.s32.totalorder %v5078_v15, 2  ;;  %v1449_v36 = vsel %vm1441_vm12, %v5126_v19, %v1448_v57  ;;  %v807_v26 = vpop.f32.mrf.mxu1 }
 0x244   : > { %v5138_v30 = vshrl.u32 %v1196_v47, 30  ;;  %v1451_v38 = vsel %vm1439_vm8, %v5116_v45, %v5126_v19  ;;  %vm3259_vm14 = vcmp.eq.s32.totalorder %v5074_v27, 0  ;;  %v1450_v54 = vsel %vm1440_vm13, %v1447_v23, %v1449_v36 }
 0x245   : > { %v3254_v61 = vmul.f32 %v3253_v46, %v3238_v55  ;;  %v3263_v41 = vxor.u32 2147483648, %v3246_v53  ;;  %v1452_v52 = vsel %vm1442_vm11, %v1438_v58, 1326507024  ;;  %vm3262_vm15 = vcmp.eq.s32.totalorder %v5074_v27, 2  ;;  %v869_v58 = vpop.f32.mrf.mxu2 }
 0x246   : > { %v1198_v6 = vshll.u32 %v5138_v30, 30  ;;  %v1453_v17 = vsel %vm1441_vm12, %v1435_v62, %v1452_v52  ;;  %v5157_v20 = vshll.u32 %v1415_v60, 8  ;;  %v1481_v14 = vshrl.u32 %v1450_v54, 16 }
 0x247   : > { %v3260_v55 = vxor.u32 2147483648, %v3254_v61  ;;  %v3264_v24 = vsel %vm3262_vm15, %v3263_v41, %v3254_v61  ;;  %v1454_v50 = vsel %vm1440_vm13, %v1451_v38, %v1453_v17  ;;  %vm3255_vm0 = vweird.f32 %v4768_v33 }
 0x248   : > { %v1199_v39 = vsub.s32 %v1195_v31, %v1198_v6  ;;  %v1456_v0 = vand.u32 65535, %v5157_v20  ;;  %v1458_v11 = vand.u32 65535, %v1454_v50  ;;  %v1457_v7 = vshrl.u32 %v5157_v20, 16 }
 0x249   : > { %v3261_v43 = vsel %vm3259_vm14, %v3246_v53, %v3260_v55  ;;  %v1459_v10 = vshrl.u32 %v1454_v50, 16  ;;  %v1480_v62 = vand.u32 65535, %v1450_v54  ;;  %v747_v51 = vadd.f32 %v746_v12, %v4218_v59  ;;  %v919_v55 = vpop.f32.mrf.mxu3 }
 0x24a   : > { %v3265_v18 = vsel %vm3258_vm10, %v3261_v43, %v3264_v24  ;;  %vm1200_vm1 = vcmp.lt.s32.totalorder %v1199_v39, 0  ;;  %v1201_v32 = vsub.s32 0, %v1199_v39  ;;  %v5167_v63 = vmul.u32 %v1481_v14, %v1456_v0  ;;  %v751_v24 = vpop.f32.mrf.mxu0 }
 0x24b   : > { %v3266_v35 = vsel %vm3255_vm0, nan, %v3265_v18  ;;  %v1461_v56 = vmul.u32 %v1459_v10, %v1456_v0  ;;  %v1462_v27 = vmul.u32 %v1458_v11, %v1457_v7  ;;  %v1191_v31 = vadd.s32 %v5096_v5, %v5104_v40 }
 0x24c   : > { %3436 = vst [vmem:[%s4373_s28 + $0x70] sm:$0xff] %v3266_v35  ;;  %v1202_v33 = vsel %vm1200_vm1, %v1201_v32, %v1199_v39  ;;  %v1423_v60 = vshrl.u32 %v3742_v22, %v5081_v49  ;;  %v1460_v53 = vmul.u32 %v1458_v11, %v1456_v0  ;;  %v1463_v23 = vmul.u32 %v1459_v10, %v1457_v7 }
 0x24d   : > { %v1203_v25 = vclz %v1202_v33  ;;  %v1464_v46 = vshll.u32 %v1461_v56, 16  ;;  %v1482_v61 = vmul.u32 %v1480_v62, %v1456_v0  ;;  %v1486_v41 = vshll.u32 %v5167_v63, 16 }
 0x24e   : > { %v1466_v57 = vshll.u32 %v1462_v27, 16  ;;  %v1484_v38 = vmul.u32 %v1480_v62, %v1457_v7  ;;  %v1485_v5 = vmul.u32 %v1481_v14, %v1457_v7  ;;  %v1465_v17 = vshrl.u32 %v1461_v56, 16  ;;  %v813_v7 = vpop.f32.mrf.mxu1 }
 0x24f   : > { %v3547_v47 = vadd.s32 4294967294, %v1203_v25  ;;  %vm1468_vm2 = vc.u32 %v1460_v53, %v1464_v46  ;;  %v1470_v36 = vadd.s32 %v1464_v46, %v1460_v53  ;;  %vm1490_vm3 = vc.u32 %v1482_v61, %v1486_v41 }
 0x250   : > { %v1469_v59 = vsel %vm1468_vm2, 1, %v3748_v9  ;;  %v1491_v54 = vsel %vm1490_vm3, 1, %v3748_v9  ;;  %v1488_v18 = vshll.u32 %v1484_v38, 16  ;;  %v1492_v35 = vadd.s32 %v1486_v41, %v1482_v61  ;;  %v873_v61 = vpop.f32.mrf.mxu2 }
 0x251   : > { %vm3548_vm4 = vcmp.lt.s32.totalorder %v3547_v47, 0  ;;  %v1471_v49 = vadd.s32 %v1469_v59, %v1463_v23  ;;  %vm1472_vm5 = vc.u32 %v1470_v36, %v1466_v57  ;;  %v1493_v12 = vadd.s32 %v1491_v54, %v1485_v5 }
 0x252   : > { %v1206_v40 = vsel %vm3548_vm4, 0, %v3547_v47  ;;  %v1473_v43 = vsel %vm1472_vm5, 1, %v3748_v9  ;;  %v1444_v14 = vsel %vm1442_vm11, %v5126_v19, 2102212464  ;;  %vm1494_vm7 = vc.u32 %v1492_v35, %v1488_v18 }
 0x253   : > { %v1207_v52 = vsub.s32 32, %v1206_v40  ;;  %v1211_v6 = vsub.s32 4294967266, %v1206_v40  ;;  %v1475_v50 = vadd.s32 %v1473_v43, %v1471_v49  ;;  %v1208_v0 = vshll.u32 %v1199_v39, %v1206_v40 }
 0x254   : > { %v752_v62 = vadd.f32 %v751_v24, %v4387_v28  ;;  %v808_v33 = vadd.f32 %v807_v26, %v747_v51  ;;  %v1467_v53 = vshrl.u32 %v1462_v27, 16  ;;  %v1495_v46 = vsel %vm1494_vm7, 1, %v3748_v9 }
 0x255   : > { %v1209_v11 = vshrl.u32 %v1191_v31, %v1207_v52  ;;  %v1212_v32 = vadd.s32 127, %v1211_v6  ;;  %v1476_v10 = vadd.s32 %v1475_v50, %v1465_v17  ;;  %v1487_v47 = vshrl.u32 %v5167_v63, 16  ;;  %v923_v63 = vpop.f32.mrf.mxu3 }
 0x256   : > { %v1497_v39 = vadd.s32 %v1495_v46, %v1493_v12  ;;  %v870_v31 = vadd.f32 %v869_v58, %v808_v33  ;;  %v814_v23 = vadd.f32 %v813_v7, %v752_v62  ;;  %v1443_v19 = vsel %vm1439_vm8, %v1423_v60, %v5102_v2 }
 0x257   : > { %v1210_v56 = vor.u32 %v1209_v11, %v1208_v0  ;;  %v1213_v25 = vshll.u32 %v1212_v32, 23  ;;  %v1445_v28 = vsel %vm1441_vm12, %v5116_v45, %v1444_v14  ;;  %v1477_v26 = vadd.s32 %v1476_v10, %v1467_v53 }
 0x258   : > { %v1221_v27 = vsub.s32 4, %v5138_v30  ;;  %v1489_v51 = vshrl.u32 %v1484_v38, 16  ;;  %v1498_v57 = vadd.s32 %v1497_v39, %v1487_v47  ;;  %v5191_v36 = vadd.f32 %v919_v55, %v870_v31 }
 0x259   : > { %v1214_v41 = vor.u32 4788187, %v1213_v25  ;;  %v1217_v59 = vcvt.s32.f32 %v1210_v56  ;;  %v1496_v5 = vadd.s32 %v1492_v35, %v1488_v18  ;;  %v874_v40 = vadd.f32 %v873_v61, %v814_v23 }
 0x25a   : > { %v1446_v49 = vsel %vm1440_vm13, %v1443_v19, %v1445_v28  ;;  %v1499_v2 = vadd.s32 %v1498_v57, %v1489_v51  ;;  %v1717_v60 = vand.u32 2147483647, %v5191_v36  ;;  %v1720_v45 = vand.u32 2139095040, %v5191_v36 }
 0x25b   : > { %v1215_v58 = vand.u32 2147483647, %v1214_v41  ;;  %vm1099_vm9 = vcmp.lt.s32.totalorder %v4989_v1, 0  ;;  %vm1502_vm6 = vc.u32 %v1477_v26, %v1496_v5  ;;  %v5198_v38 = vadd.f32 %v923_v63, %v874_v40 }
 0x25c   : > { %v1222_v55 = vsel %vm1099_vm9, %v1221_v27, %v5138_v30  ;;  %v1503_v52 = vadd.s32 1, %v1499_v2  ;;  %v1721_v6 = vshrl.u32 %v1720_v45, 23  ;;  %v1724_v17 = vand.u32 8388607, %v1717_v60 }
 0x25d   : > { %v1218_v54 = vmul.f32 %v1217_v59, %v1215_v58  ;;  %v1500_v43 = vmul.u32 %v5157_v20, %v1446_v49  ;;  %v2030_v24 = vand.u32 2139095040, %v5198_v38  ;;  %vm1098_vm8 = vcmp.le.f32.partialorder %v1097_v44, 0.7853982 }
 0x25e   : > { %v1504_v50 = vsel %vm1502_vm6, %v1503_v52, %v1499_v2  ;;  %v3558_v18 = vadd.s32 4294967169, %v1721_v6  ;;  %v1224_v12 = vsel %vm1098_vm8, 0, %v1222_v55  ;;  %v1725_v11 = vor.u32 8388608, %v1724_v17 }
 0x25f   : > { %v1219_v15 = vxor.u32 2147483648, %v1218_v54  ;;  %v1505_v0 = vadd.s32 %v1504_v50, %v1500_v43  ;;  %v2031_v14 = vshrl.u32 %v2030_v24, 23  ;;  %v1241_v62 = vadd.s32 3, %v1224_v12 }
 0x260   : > { %v1727_v32 = vadd.s32 1, %v3558_v18  ;;  %v2027_v20 = vand.u32 2147483647, %v5198_v38  ;;  %v5209_v46 = vshll.u32 %v1725_v11, 8  ;;  %vm5213_vm11 = vcmp.le.f32.partialorder %v1407_v16, 0.7853982 }
 0x261   : > { %v1220_v35 = vsel %vm1099_vm9, %v1219_v15, %v1218_v54  ;;  %v1506_v10 = vadd.s32 536870912, %v1505_v0  ;;  %v3564_v47 = vadd.s32 4294967169, %v2031_v14  ;;  %vm1409_vm12 = vcmp.lt.s32.totalorder %v4995_v21, 0 }
 0x262   : > { %v1223_v30 = vsel %vm1098_vm8, %v4989_v1, %v1220_v35  ;;  %vm1728_vm10 = vcmp.gt.s32.totalorder %v1727_v32, 0  ;;  %v1242_v41 = vand.u32 3, %v1241_v62  ;;  %v1501_v19 = vadd.s32 %v1496_v5, %v1477_v26 }
 0x263   : > { %v1225_v7 = vmul.f32 %v1223_v30, %v1223_v30  ;;  %v1507_v25 = vshrl.u32 %v1506_v10, 30  ;;  %v1729_v44 = vsel %vm1728_vm10, %v1727_v32, 0  ;;  %v5222_v58 = vand.u32 8388607, %v2027_v20 }
 0x264   : > { %v1731_v53 = vand.u32 31, %v1729_v44  ;;  %v5224_v59 = vshrl.u32 %v1729_v44, 5  ;;  %v5227_v16 = vand.u32 65535, %v5209_v46  ;;  %v5230_v40 = vshrl.u32 %v5209_v46, 16 }
 0x265   : > { %v1226_v33 = vmul.f32 -0.001358992, %v1225_v7  ;;  %v1233_v56 = vmul.f32 -0.00019511016, %v1225_v7  ;;  %v1508_v61 = vshll.u32 %v1507_v25, 30  ;;  %v1531_v28 = vsub.s32 4, %v1507_v25 }
 0x266   : > { %v1732_v27 = vsub.s32 32, %v1731_v53  ;;  %v5232_v49 = vadd.s32 1, %v3564_v47  ;;  %vm1244_vm14 = vcmp.eq.s32.totalorder %v1242_v41, 0  ;;  %vm1247_vm15 = vcmp.eq.s32.totalorder %v1242_v41, 2 }
 0x267   : > { %v1227_v39 = vadd.f32 0.041655596, %v1226_v33  ;;  %v1234_v31 = vadd.f32 0.008332121, %v1233_v56  ;;  %v5218_v63 = vsub.s32 %v1505_v0, %v1508_v61  ;;  %v1532_v45 = vsel %vm1409_vm12, %v1531_v28, %v1507_v25 }
 0x268   : > { %v1734_v54 = vshll.u32 %v3742_v22, %v1731_v53  ;;  %v1735_v55 = vshrl.u32 %v3743_v13, %v1732_v27  ;;  %v1737_v52 = vshll.u32 %v3743_v13, %v1731_v53  ;;  %vm1243_vm0 = vcmp.lt.s32.totalorder %v1242_v41, 2 }
 0x269   : > { %v1228_v51 = vmul.f32 %v1227_v39, %v1225_v7  ;;  %v1235_v57 = vmul.f32 %v1234_v31, %v1225_v7  ;;  %vm1510_vm13 = vcmp.lt.s32.totalorder %v5218_v63, 0  ;;  %v1511_v2 = vsub.s32 0, %v5218_v63 }
 0x26a   : > { %v1738_v43 = vshrl.u32 %v3744_v29, %v1732_v27  ;;  %vm1240_vm1 = vweird.f32 %v4989_v1  ;;  %v1740_v50 = vshll.u32 %v3744_v29, %v1731_v53  ;;  %v1741_v18 = vshrl.u32 %v3745_v34, %v1732_v27 }
 0x26b   : > { %v1229_v26 = vadd.f32 -0.4999988, %v1228_v51  ;;  %v1236_v5 = vadd.f32 -0.16666654, %v1235_v57  ;;  %v1512_v15 = vsel %vm1510_vm13, %v1511_v2, %v5218_v63  ;;  %v1744_v35 = vshrl.u32 %v3746_v42, %v1732_v27 }
 0x26c   : > { %v1513_v24 = vclz %v1512_v15  ;;  %v1743_v11 = vshll.u32 %v3745_v34, %v1731_v53  ;;  %v1747_v32 = vshrl.u32 %v3747_v48, %v1732_v27  ;;  %v1736_v10 = vor.u32 %v1735_v55, %v1734_v54 }
 0x26d   : > { %v1230_v6 = vmul.f32 %v1229_v26, %v1225_v7  ;;  %v1237_v17 = vmul.f32 %v1236_v5, %v1225_v7  ;;  %v1534_v7 = vsel %vm5213_vm11, 0, %v1532_v45  ;;  %v1746_v62 = vshll.u32 %v3746_v42, %v1731_v53 }
 0x26e   : > { %v3553_v14 = vadd.s32 4294967294, %v1513_v24  ;;  %v1739_v25 = vor.u32 %v1738_v43, %v1737_v52  ;;  %v1745_v44 = vor.u32 %v1744_v35, %v1743_v11  ;;  %v1733_v47 = vshrl.u32 %v3742_v22, %v1732_v27 }
 0x26f   : > { %v1231_v12 = vadd.f32 1.0, %v1230_v6  ;;  %v1238_v0 = vadd.f32 1.0, %v1237_v17  ;;  %v1742_v39 = vor.u32 %v1741_v18, %v1740_v50  ;;  %v1748_v31 = vor.u32 %v1747_v32, %v1746_v62 }
 0x270   : > { %vm3554_vm2 = vcmp.lt.s32.totalorder %v3553_v14, 0  ;;  %vm1749_vm4 = vcmp.lt.s32.totalorder %v5224_v59, 1  ;;  %vm1750_vm3 = vcmp.lt.s32.totalorder %v5224_v59, 2  ;;  %vm1751_vm5 = vcmp.lt.s32.totalorder %v5224_v59, 3 }
 0x271   : > { %v1239_v33 = vmul.f32 %v1238_v0, %v1223_v30  ;;  %v1248_v56 = vxor.u32 2147483648, %v1231_v12  ;;  %v1516_v28 = vsel %vm3554_vm2, 0, %v3553_v14  ;;  %vm1752_vm7 = vcmp.lt.s32.totalorder %v5224_v59, 4 }
 0x272   : > { %v1517_v51 = vsub.s32 32, %v1516_v28  ;;  %v1521_v57 = vsub.s32 4294967266, %v1516_v28  ;;  %v1757_v27 = vsel %vm1749_vm4, %v1736_v10, %v1739_v25  ;;  %v1758_v26 = vsel %vm1752_vm7, %v1745_v44, 920167782 }
 0x273   : > { %v1245_v61 = vxor.u32 2147483648, %v1239_v33  ;;  %v1249_v53 = vsel %vm1247_vm15, %v1248_v56, %v1239_v33  ;;  %v1518_v2 = vshll.u32 %v5218_v63, %v1516_v28  ;;  %v1754_v52 = vsel %vm1752_vm7, %v1742_v39, 2102212464 }
 0x274   : > { %v1519_v45 = vshrl.u32 %v1501_v19, %v1517_v51  ;;  %v1522_v54 = vadd.s32 127, %v1521_v57  ;;  %v1759_v6 = vsel %vm1751_vm5, %v1742_v39, %v1758_v26  ;;  %v1761_v17 = vsel %vm1749_vm4, %v1739_v25, %v1742_v39 }
 0x275   : > { %v1246_v30 = vsel %vm1244_vm14, %v1231_v12, %v1245_v61  ;;  %v1760_v63 = vsel %vm1750_vm3, %v1757_v27, %v1759_v6  ;;  %v1762_v19 = vsel %vm1752_vm7, %v1748_v31, 1326507024  ;;  %v1551_v1 = vadd.s32 3, %v1534_v7 }
 0x276   : > { %v1250_v5 = vsel %vm1243_vm0, %v1246_v30, %v1249_v53  ;;  %v1520_v15 = vor.u32 %v1519_v45, %v1518_v2  ;;  %v1523_v41 = vshll.u32 %v1522_v54, 23  ;;  %v1763_v43 = vsel %vm1751_vm5, %v1745_v44, %v1762_v19 }
 0x277   : > { %v1251_v55 = vsel %vm1240_vm1, nan, %v1250_v5  ;;  %v1790_v24 = vand.u32 65535, %v1760_v63  ;;  %v1791_v50 = vshrl.u32 %v1760_v63, 16  ;;  %v1753_v35 = vsel %vm1749_vm4, %v1733_v47, %v1736_v10 }
 0x278   : > { %3423 = vst [vmem:[%s4373_s28 + $0x8] sm:$0xff] %v1251_v55  ;;  %v1524_v18 = vor.u32 4788187, %v1523_v41  ;;  %v1755_v12 = vsel %vm1751_vm5, %v1739_v25, %v1754_v52  ;;  %v1764_v0 = vsel %vm1750_vm3, %v1761_v17, %v1763_v43  ;;  %v2035_v7 = vor.u32 8388608, %v5222_v58 }
 0x279   : > { %v1768_v11 = vand.u32 65535, %v1764_v0  ;;  %v1769_v32 = vshrl.u32 %v1764_v0, 16  ;;  %v1793_v14 = vmul.u32 %v1791_v50, %v5227_v16  ;;  %v1527_v33 = vcvt.s32.f32 %v1520_v15 }
 0x27a   : > { %v1525_v62 = vand.u32 2147483647, %v1524_v18  ;;  %v1794_v56 = vmul.u32 %v1790_v24, %v5230_v40  ;;  %vm2038_vm9 = vcmp.gt.s32.totalorder %v5232_v49, 0  ;;  %v5290_v44 = vand.u32 3, %v1551_v1 }
 0x27b   : > { %v5294_v10 = vsel %vm1750_vm3, %v1753_v35, %v1755_v12  ;;  %v1771_v25 = vmul.u32 %v1769_v32, %v5227_v16  ;;  %v1772_v47 = vmul.u32 %v1768_v11, %v5230_v40  ;;  %v1792_v31 = vmul.u32 %v1790_v24, %v5227_v16 }
 0x27c   : > { %v1528_v39 = vmul.f32 %v1527_v33, %v1525_v62  ;;  %v1795_v61 = vmul.u32 %v1791_v50, %v5230_v40  ;;  %v1796_v28 = vshll.u32 %v1793_v14, 16  ;;  %v1770_v51 = vmul.u32 %v1768_v11, %v5227_v16 }
 0x27d   : > { %v1773_v57 = vmul.u32 %v1769_v32, %v5230_v40  ;;  %v1774_v30 = vshll.u32 %v1771_v25, 16  ;;  %v2039_v53 = vsel %vm2038_vm9, %v5232_v49, 0  ;;  %v1798_v27 = vshll.u32 %v1794_v56, 16 }
 0x27e   : > { %v1529_v59 = vxor.u32 2147483648, %v1528_v39  ;;  %vm1800_vm6 = vc.u32 %v1792_v31, %v1796_v28  ;;  %v1802_v26 = vadd.s32 %v1796_v28, %v1792_v31  ;;  %v1776_v5 = vshll.u32 %v1772_v47, 16 }
 0x27f   : > { %vm1778_vm8 = vc.u32 %v1770_v51, %v1774_v30  ;;  %v1780_v2 = vadd.s32 %v1774_v30, %v1770_v51  ;;  %v1801_v45 = vsel %vm1800_vm6, 1, %v3748_v9  ;;  %v1797_v15 = vshrl.u32 %v1793_v14, 16 }
 0x280   : > { %v1530_v54 = vsel %vm1409_vm12, %v1529_v59, %v1528_v39  ;;  %v1779_v55 = vsel %vm1778_vm8, 1, %v3748_v9  ;;  %v1803_v16 = vadd.s32 %v1801_v45, %v1795_v61  ;;  %vm1804_vm10 = vc.u32 %v1802_v26, %v1798_v27 }
 0x281   : > { %v1533_v40 = vsel %vm5213_vm11, %v4995_v21, %v1530_v54  ;;  %v1781_v49 = vadd.s32 %v1779_v55, %v1773_v57  ;;  %vm1782_vm13 = vc.u32 %v1780_v2, %v1776_v5  ;;  %v1805_v52 = vsel %vm1804_vm10, 1, %v3748_v9 }
 0x282   : > { %v1535_v6 = vmul.f32 %v1533_v40, %v1533_v40  ;;  %v1783_v17 = vsel %vm1782_vm13, 1, %v3748_v9  ;;  %v1807_v41 = vadd.s32 %v1805_v52, %v1803_v16  ;;  %v1775_v63 = vshrl.u32 %v1771_v25, 16 }
 0x283   : > { %v1785_v19 = vadd.s32 %v1783_v17, %v1781_v49  ;;  %v1810_v1 = vmul.u32 %v5209_v46, %v5294_v10  ;;  %v2041_v43 = vand.u32 31, %v2039_v53  ;;  %v1799_v18 = vshrl.u32 %v1794_v56, 16 }
 0x284   : > { %v1536_v24 = vmul.f32 -0.001358992, %v1535_v6  ;;  %v1543_v50 = vmul.f32 -0.00019511016, %v1535_v6  ;;  %v1808_v23 = vadd.s32 %v1807_v41, %v1797_v15  ;;  %v1777_v35 = vshrl.u32 %v1772_v47, 16 }
 0x285   : > { %v1786_v12 = vadd.s32 %v1785_v19, %v1775_v63  ;;  %v5314_v0 = vadd.s32 %v1802_v26, %v1798_v27  ;;  %v5316_v11 = vsub.s32 32, %v2041_v43  ;;  %v2044_v33 = vshll.u32 %v3742_v22, %v2041_v43 }
 0x286   : > { %v1537_v32 = vadd.f32 0.041655596, %v1536_v24  ;;  %v1544_v62 = vadd.f32 0.008332121, %v1543_v50  ;;  %v1809_v14 = vadd.s32 %v1808_v23, %v1799_v18  ;;  %v2047_v10 = vshll.u32 %v3743_v13, %v2041_v43 }
 0x287   : > { %v5319_v25 = vadd.s32 %v1786_v12, %v1777_v35  ;;  %v2045_v46 = vshrl.u32 %v3743_v13, %v5316_v11  ;;  %v2048_v56 = vshrl.u32 %v3744_v29, %v5316_v11  ;;  %v2051_v61 = vshrl.u32 %v3745_v34, %v5316_v11 }
 0x288   : > { %v1538_v47 = vmul.f32 %v1537_v32, %v1535_v6  ;;  %v1545_v39 = vmul.f32 %v1544_v62, %v1535_v6  ;;  %v1813_v31 = vadd.s32 1, %v1809_v14  ;;  %v5330_v28 = vshrl.u32 %v2039_v53, 5 }
 0x289   : > { %vm1812_vm11 = vc.u32 %v5319_v25, %v5314_v0  ;;  %v5332_v51 = vor.u32 %v2045_v46, %v2044_v33  ;;  %v2050_v57 = vshll.u32 %v3744_v29, %v2041_v43  ;;  %v5335_v26 = vor.u32 %v2048_v56, %v2047_v10 }
 0x28a   : > { %v1539_v30 = vadd.f32 -0.4999988, %v1538_v47  ;;  %v1546_v59 = vadd.f32 -0.16666654, %v1545_v39  ;;  %v1814_v27 = vsel %vm1812_vm11, %v1813_v31, %v1809_v14  ;;  %v2053_v45 = vshll.u32 %v3745_v34, %v2041_v43 }
 0x28b   : > { %v1815_v5 = vadd.s32 %v1814_v27, %v1810_v1  ;;  %v2052_v2 = vor.u32 %v2051_v61, %v2050_v57  ;;  %v2054_v54 = vshrl.u32 %v3746_v42, %v5316_v11  ;;  %v2056_v53 = vshll.u32 %v3746_v42, %v2041_v43 }
 0x28c   : > { %v1540_v55 = vmul.f32 %v1539_v30, %v1535_v6  ;;  %v1547_v16 = vmul.f32 %v1546_v59, %v1535_v6  ;;  %v2057_v49 = vshrl.u32 %v3747_v48, %v5316_v11  ;;  %vm2059_vm12 = vcmp.lt.s32.totalorder %v5330_v28, 1 }
 0x28d   : > { %v1816_v52 = vadd.s32 536870912, %v1815_v5  ;;  %v2055_v17 = vor.u32 %v2054_v54, %v2053_v45  ;;  %vm2060_vm14 = vcmp.lt.s32.totalorder %v5330_v28, 2  ;;  %vm2062_vm15 = vcmp.lt.s32.totalorder %v5330_v28, 4 }
 0x28e   : > { %v1541_v15 = vadd.f32 1.0, %v1540_v55  ;;  %v1548_v41 = vadd.f32 1.0, %v1547_v16  ;;  %v2058_v63 = vor.u32 %v2057_v49, %v2056_v53  ;;  %vm2061_vm0 = vcmp.lt.s32.totalorder %v5330_v28, 3  ;;  %v819_v55 = vpop.f32.mrf.mxu1 }
 0x28f   : > { %v5346_v19 = vshrl.u32 %v1816_v52, 30  ;;  %v2067_v6 = vsel %vm2059_vm12, %v5332_v51, %v5335_v26  ;;  %v2068_v1 = vsel %vm2062_vm15, %v2055_v17, 920167782  ;;  %v2071_v18 = vsel %vm2059_vm12, %v5335_v26, %v2052_v2 }
 0x290   : > { %v1549_v43 = vmul.f32 %v1548_v41, %v1533_v40  ;;  %v1558_v24 = vxor.u32 2147483648, %v1541_v15  ;;  %v2069_v50 = vsel %vm2061_vm0, %v2052_v2, %v2068_v1  ;;  %v2072_v12 = vsel %vm2062_vm15, %v2058_v63, 1326507024 }
 0x291   : > { %v1818_v23 = vshll.u32 %v5346_v19, 30  ;;  %v2070_v35 = vsel %vm2060_vm14, %v2067_v6, %v2069_v50  ;;  %vm1550_vm1 = vweird.f32 %v4995_v21  ;;  %v2073_v40 = vsel %vm2061_vm0, %v2055_v17, %v2072_v12 }
 0x292   : > { %v1555_v32 = vxor.u32 2147483648, %v1549_v43  ;;  %v5370_v62 = vshll.u32 %v2035_v7, 8  ;;  %vm1554_vm2 = vcmp.eq.s32.totalorder %v5290_v44, 0  ;;  %vm1557_vm4 = vcmp.eq.s32.totalorder %v5290_v44, 2  ;;  %v756_v7 = vpop.f32.mrf.mxu0 }
 0x293   : > { %v5374_v14 = vsub.s32 %v1815_v5, %v1818_v23  ;;  %v2074_v33 = vsel %vm2060_vm14, %v2071_v18, %v2073_v40  ;;  %vm1553_vm3 = vcmp.lt.s32.totalorder %v5290_v44, 2  ;;  %v1559_v10 = vsel %vm1557_vm4, %v1558_v24, %v1549_v43  ;;  %v877_v43 = vpop.f32.mrf.mxu2  ;;  %v927_v23 = vpop.f32.mrf.mxu3 }
 0x294   : > { %v1556_v46 = vsel %vm1554_vm2, %v1541_v15, %v1555_v32  ;;  %v2100_v56 = vand.u32 65535, %v2070_v35  ;;  %v2076_v39 = vand.u32 65535, %v5370_v62  ;;  %v2077_v61 = vshrl.u32 %v5370_v62, 16 }
 0x295   : > { %v1560_v47 = vsel %vm1553_vm3, %v1556_v46, %v1559_v10  ;;  %vm1820_vm5 = vcmp.lt.s32.totalorder %v5374_v14, 0  ;;  %v1821_v58 = vsub.s32 0, %v5374_v14  ;;  %v2078_v57 = vand.u32 65535, %v2074_v33 }
 0x296   : > { %v1561_v31 = vsel %vm1550_vm1, nan, %v1560_v47  ;;  %v2079_v30 = vshrl.u32 %v2074_v33, 16  ;;  %v2101_v59 = vshrl.u32 %v2070_v35, 16  ;;  %v757_v5 = vadd.f32 %v756_v7, %v4502_v3 }
 0x297   : > { %3425 = vst [vmem:[%s4373_s28 + $0x18] sm:$0xff] %v1561_v31  ;;  %v1822_v44 = vsel %vm1820_vm5, %v1821_v58, %v5374_v14  ;;  %v2082_v54 = vmul.u32 %v2078_v57, %v2077_v61  ;;  %v1811_v16 = vadd.s32 %v5314_v0, %v5319_v25  ;;  %v1841_v21 = vsub.s32 4, %v5346_v19 }
 0x298   : > { %v1823_v27 = vclz %v1822_v44  ;;  %v2081_v45 = vmul.u32 %v2079_v30, %v2076_v39  ;;  %v2043_v53 = vshrl.u32 %v3742_v22, %v5316_v11  ;;  %v2064_v49 = vsel %vm2062_vm15, %v2052_v2, 2102212464 }
 0x299   : > { %v2080_v17 = vmul.u32 %v2078_v57, %v2076_v39  ;;  %v2104_v41 = vmul.u32 %v2100_v56, %v2077_v61  ;;  %v2083_v63 = vmul.u32 %v2079_v30, %v2077_v61  ;;  %v2102_v6 = vmul.u32 %v2100_v56, %v2076_v39 }
 0x29a   : > { %v3559_v52 = vadd.s32 4294967294, %v1823_v27  ;;  %v2084_v15 = vshll.u32 %v2081_v45, 16  ;;  %v2085_v3 = vshrl.u32 %v2081_v45, 16  ;;  %v2103_v1 = vmul.u32 %v2101_v59, %v2076_v39  ;;  %v761_v58 = vpop.f32.mrf.mxu0 }
 0x29b   : > { %v2086_v24 = vshll.u32 %v2082_v54, 16  ;;  %v2105_v11 = vmul.u32 %v2101_v59, %v2077_v61  ;;  %v2108_v32 = vshll.u32 %v2104_v41, 16  ;;  %v2087_v7 = vshrl.u32 %v2082_v54, 16 }
 0x29c   : > { %vm3560_vm7 = vcmp.lt.s32.totalorder %v3559_v52, 0  ;;  %vm2088_vm9 = vc.u32 %v2080_v17, %v2084_v15  ;;  %v2090_v0 = vadd.s32 %v2084_v15, %v2080_v17  ;;  %v2106_v18 = vshll.u32 %v2103_v1, 16 }
 0x29d   : > { %v1826_v25 = vsel %vm3560_vm7, 0, %v3559_v52  ;;  %v2089_v50 = vsel %vm2088_vm9, 1, %v3748_v9  ;;  %v2107_v30 = vshrl.u32 %v2103_v1, 16  ;;  %v762_v45 = vadd.f32 %v761_v58, %v4642_v4 }
 0x29e   : > { %v1827_v2 = vsub.s32 32, %v1826_v25  ;;  %v1831_v35 = vsub.s32 4294967266, %v1826_v25  ;;  %v2091_v12 = vadd.s32 %v2089_v50, %v2083_v63  ;;  %v1828_v40 = vshll.u32 %v5374_v14, %v1826_v25  ;;  %v825_v14 = vpop.f32.mrf.mxu1 }
 0x29f   : > { %vm2092_vm6 = vc.u32 %v2090_v0, %v2086_v24  ;;  %vm2110_vm8 = vc.u32 %v2102_v6, %v2106_v18  ;;  %v2112_v33 = vadd.s32 %v2106_v18, %v2102_v6  ;;  %v2063_v17 = vsel %vm2059_vm12, %v2043_v53, %v5332_v51  ;;  %v881_v0 = vpop.f32.mrf.mxu2 }
 0x2a0   : > { %v1829_v46 = vshrl.u32 %v1811_v16, %v1827_v2  ;;  %v1832_v10 = vadd.s32 127, %v1831_v35  ;;  %v2093_v56 = vsel %vm2092_vm6, 1, %v3748_v9  ;;  %v2111_v47 = vsel %vm2110_vm8, 1, %v3748_v9 }
 0x2a1   : > { %v2095_v39 = vadd.s32 %v2093_v56, %v2091_v12  ;;  %v2113_v31 = vadd.s32 %v2111_v47, %v2105_v11  ;;  %vm2114_vm10 = vc.u32 %v2112_v33, %v2108_v32  ;;  %v820_v16 = vadd.f32 %v819_v55, %v757_v5 }
 0x2a2   : > { %v1830_v61 = vor.u32 %v1829_v46, %v1828_v40  ;;  %v1833_v57 = vshll.u32 %v1832_v10, 23  ;;  %v2115_v44 = vsel %vm2114_vm10, 1, %v3748_v9  ;;  %v2065_v54 = vsel %vm2061_vm0, %v5335_v26, %v2064_v49  ;;  %v931_v49 = vpop.f32.mrf.mxu3 }
 0x2a3   : > { %v2096_v59 = vadd.s32 %v2095_v39, %v2085_v3  ;;  %v2117_v27 = vadd.s32 %v2115_v44, %v2113_v31  ;;  %v2109_v15 = vshrl.u32 %v2104_v41, 16  ;;  %v878_v1 = vadd.f32 %v877_v43, %v820_v16 }
 0x2a4   : > { %v1834_v52 = vor.u32 4788187, %v1833_v57  ;;  %v826_v24 = vadd.f32 %v825_v14, %v762_v45  ;;  %vm1719_vm13 = vcmp.lt.s32.totalorder %v5191_v36, 0  ;;  %v1837_v4 = vcvt.s32.f32 %v1830_v61 }
 0x2a5   : > { %v2097_v63 = vadd.s32 %v2096_v59, %v2087_v7  ;;  %v2118_v6 = vadd.s32 %v2117_v27, %v2107_v30  ;;  %v2116_v5 = vadd.s32 %v2112_v33, %v2108_v32  ;;  %v1842_v55 = vsel %vm1719_vm13, %v1841_v21, %v5346_v19 }
 0x2a6   : > { %v1835_v3 = vand.u32 2147483647, %v1834_v52  ;;  %v2066_v51 = vsel %vm2060_vm14, %v2063_v17, %v2065_v54  ;;  %v5413_v26 = vadd.f32 %v927_v23, %v878_v1  ;;  %v882_v43 = vadd.f32 %v881_v0, %v826_v24 }
 0x2a7   : > { %v2119_v53 = vadd.s32 %v2118_v6, %v2109_v15  ;;  %vm2122_vm11 = vc.u32 %v2097_v63, %v2116_v5  ;;  %vm1718_vm12 = vcmp.le.f32.partialorder %v1717_v60, 0.7853982  ;;  %v2120_v28 = vmul.u32 %v5370_v62, %v2066_v51 }
 0x2a8   : > { %v1838_v41 = vmul.f32 %v1837_v4, %v1835_v3  ;;  %v2337_v50 = vand.u32 2147483647, %v5413_v26  ;;  %v2340_v11 = vand.u32 2139095040, %v5413_v26  ;;  %v1844_v19 = vsel %vm1718_vm12, 0, %v1842_v55 }
 0x2a9   : > { %v2123_v25 = vadd.s32 1, %v2119_v53  ;;  %v5420_v21 = vadd.f32 %v931_v49, %v882_v43  ;;  %v1861_v40 = vadd.s32 3, %v1844_v19  ;;  %vm2029_vm14 = vcmp.lt.s32.totalorder %v5198_v38, 0 }
 0x2aa   : > { %v1839_v18 = vxor.u32 2147483648, %v1838_v41  ;;  %v2341_v2 = vshrl.u32 %v2340_v11, 23  ;;  %v2344_v35 = vand.u32 8388607, %v2337_v50  ;;  %vm5433_vm0 = vcmp.le.f32.partialorder %v2027_v20, 0.7853982 }
 0x2ab   : > { %v2124_v23 = vsel %vm2122_vm11, %v2123_v25, %v2119_v53  ;;  %v2650_v46 = vand.u32 2139095040, %v5420_v21  ;;  %v5428_v61 = vand.u32 3, %v1861_v40  ;;  %v2647_v16 = vand.u32 2147483647, %v5420_v21 }
 0x2ac   : > { %v1840_v12 = vsel %vm1719_vm13, %v1839_v18, %v1838_v41  ;;  %v2125_v60 = vadd.s32 %v2124_v23, %v2120_v28  ;;  %v3570_v33 = vadd.s32 4294967169, %v2341_v2  ;;  %v2345_v62 = vor.u32 8388608, %v2344_v35 }
 0x2ad   : > { %v1843_v32 = vsel %vm1718_vm12, %v5191_v36, %v1840_v12  ;;  %v2651_v31 = vshrl.u32 %v2650_v46, 23  ;;  %vm1867_vm1 = vcmp.eq.s32.totalorder %v5428_v61, 2  ;;  %v2121_v6 = vadd.s32 %v2116_v5, %v2097_v63 }
 0x2ae   : > { %v1845_v10 = vmul.f32 %v1843_v32, %v1843_v32  ;;  %v2126_v56 = vadd.s32 536870912, %v2125_v60  ;;  %v2347_v47 = vadd.s32 1, %v3570_v33  ;;  %v5437_v45 = vshll.u32 %v2345_v62, 8 }
 0x2af   : > { %v3576_v15 = vadd.s32 4294967169, %v2651_v31  ;;  %vm1864_vm4 = vcmp.eq.s32.totalorder %v5428_v61, 0  ;;  %v5458_v63 = vand.u32 8388607, %v2647_v16  ;;  %vm1863_vm3 = vcmp.lt.s32.totalorder %v5428_v61, 2 }
 0x2b0   : > { %v1846_v58 = vmul.f32 -0.001358992, %v1845_v10  ;;  %v1853_v7 = vmul.f32 -0.00019511016, %v1845_v10  ;;  %v2127_v39 = vshrl.u32 %v2126_v56, 30  ;;  %vm2348_vm15 = vcmp.gt.s32.totalorder %v2347_v47, 0 }
 0x2b1   : > { %v2349_v27 = vsel %vm2348_vm15, %v2347_v47, 0  ;;  %v5451_v55 = vand.u32 65535, %v5437_v45  ;;  %v5454_v51 = vshrl.u32 %v5437_v45, 16  ;;  %v5462_v41 = vadd.s32 1, %v3576_v15 }
 0x2b2   : > { %v1847_v57 = vadd.f32 0.041655596, %v1846_v58  ;;  %v1854_v30 = vadd.f32 0.008332121, %v1853_v7  ;;  %v2128_v44 = vshll.u32 %v2127_v39, 30  ;;  %v2151_v14 = vsub.s32 4, %v2127_v39 }
 0x2b3   : > { %v2351_v20 = vand.u32 31, %v2349_v27  ;;  %vm1860_vm5 = vweird.f32 %v5191_v36  ;;  %v2350_v12 = vshrl.u32 %v2349_v27, 5  ;;  %vm2658_vm9 = vcmp.gt.s32.totalorder %v5462_v41, 0 }
 0x2b4   : > { %v1848_v52 = vmul.f32 %v1847_v57, %v1845_v10  ;;  %v1855_v17 = vmul.f32 %v1854_v30, %v1845_v10  ;;  %v5440_v54 = vsub.s32 %v2125_v60, %v2128_v44  ;;  %v5445_v1 = vsel %vm2029_vm14, %v2151_v14, %v2127_v39 }
 0x2b5   : > { %v2352_v4 = vsub.s32 32, %v2351_v20  ;;  %v2154_v25 = vsel %vm5433_vm0, 0, %v5445_v1  ;;  %v2354_v11 = vshll.u32 %v3742_v22, %v2351_v20  ;;  %v2357_v60 = vshll.u32 %v3743_v13, %v2351_v20 }
 0x2b6   : > { %v1849_v24 = vadd.f32 -0.4999988, %v1848_v52  ;;  %v1856_v0 = vadd.f32 -0.16666654, %v1855_v17  ;;  %vm2130_vm2 = vcmp.lt.s32.totalorder %v5440_v54, 0  ;;  %v2131_v3 = vsub.s32 0, %v5440_v54 }
 0x2b7   : > { %v2355_v18 = vshrl.u32 %v3743_v13, %v2352_v4  ;;  %v2358_v23 = vshrl.u32 %v3744_v29, %v2352_v4  ;;  %v2361_v2 = vshrl.u32 %v3745_v34, %v2352_v4  ;;  %v2360_v40 = vshll.u32 %v3744_v29, %v2351_v20 }
 0x2b8   : > { %v1850_v5 = vmul.f32 %v1849_v24, %v1845_v10  ;;  %v1857_v53 = vmul.f32 %v1856_v0, %v1845_v10  ;;  %v2132_v49 = vsel %vm2130_vm2, %v2131_v3, %v5440_v54  ;;  %v2353_v10 = vshrl.u32 %v3742_v22, %v2352_v4 }
 0x2b9   : > { %v2133_v43 = vclz %v2132_v49  ;;  %v2356_v56 = vor.u32 %v2355_v18, %v2354_v11  ;;  %v2359_v62 = vor.u32 %v2358_v23, %v2357_v60  ;;  %v2362_v47 = vor.u32 %v2361_v2, %v2360_v40 }
 0x2ba   : > { %v1851_v19 = vadd.f32 1.0, %v1850_v5  ;;  %v1858_v28 = vadd.f32 1.0, %v1857_v53  ;;  %v2364_v58 = vshrl.u32 %v3746_v42, %v2352_v4  ;;  %v2363_v57 = vshll.u32 %v3745_v34, %v2351_v20 }
 0x2bb   : > { %v3565_v35 = vadd.s32 4294967294, %v2133_v43  ;;  %v2366_v14 = vshll.u32 %v3746_v42, %v2351_v20  ;;  %v2367_v17 = vshrl.u32 %v3747_v48, %v2352_v4  ;;  %vm2369_vm6 = vcmp.lt.s32.totalorder %v2350_v12, 1 }
 0x2bc   : > { %v1859_v33 = vmul.f32 %v1858_v28, %v1843_v32  ;;  %v1868_v46 = vxor.u32 2147483648, %v1851_v19  ;;  %v2365_v52 = vor.u32 %v2364_v58, %v2363_v57  ;;  %vm2371_vm8 = vcmp.lt.s32.totalorder %v2350_v12, 3 }
 0x2bd   : > { %vm3566_vm7 = vcmp.lt.s32.totalorder %v3565_v35, 0  ;;  %vm2372_vm10 = vcmp.lt.s32.totalorder %v2350_v12, 4  ;;  %v2373_v20 = vsel %vm2369_vm6, %v2353_v10, %v2356_v56  ;;  %v2377_v4 = vsel %vm2369_vm6, %v2356_v56, %v2359_v62 }
 0x2be   : > { %v1865_v7 = vxor.u32 2147483648, %v1859_v33  ;;  %v1869_v39 = vsel %vm1867_vm1, %v1868_v46, %v1859_v33  ;;  %v2136_v31 = vsel %vm3566_vm7, 0, %v3565_v35  ;;  %v2374_v53 = vsel %vm2372_vm10, %v2362_v47, 2102212464 }
 0x2bf   : > { %v2137_v30 = vsub.s32 32, %v2136_v31  ;;  %v2138_v32 = vshll.u32 %v5440_v54, %v2136_v31  ;;  %v2141_v44 = vsub.s32 4294967266, %v2136_v31  ;;  %v2368_v54 = vor.u32 %v2367_v17, %v2366_v14 }
 0x2c0   : > { %v1866_v27 = vsel %vm1864_vm4, %v1851_v19, %v1865_v7  ;;  %v2375_v49 = vsel %vm2371_vm8, %v2359_v62, %v2374_v53  ;;  %v2378_v61 = vsel %vm2372_vm10, %v2365_v52, 920167782  ;;  %v2171_v18 = vadd.s32 3, %v2154_v25 }
 0x2c1   : > { %v1870_v15 = vsel %vm1863_vm3, %v1866_v27, %v1869_v39  ;;  %v2139_v1 = vshrl.u32 %v2121_v6, %v2137_v30  ;;  %v2142_v24 = vadd.s32 127, %v2141_v44  ;;  %v2381_v6 = vsel %vm2369_vm6, %v2359_v62, %v2362_v47 }
 0x2c2   : > { %v1871_v0 = vsel %vm1860_vm5, nan, %v1870_v15  ;;  %v2382_v43 = vsel %vm2372_vm10, %v2368_v54, 1326507024  ;;  %vm2370_vm13 = vcmp.lt.s32.totalorder %v2350_v12, 2  ;;  %v2379_v36 = vsel %vm2371_vm8, %v2362_v47, %v2378_v61 }
 0x2c3   : > { %3427 = vst [vmem:[%s4373_s28 + $0x28] sm:$0xff] %v1871_v0  ;;  %v2140_v3 = vor.u32 %v2139_v1, %v2138_v32  ;;  %v2143_v5 = vshll.u32 %v2142_v24, 23  ;;  %v5495_v28 = vsel %vm2370_vm13, %v2373_v20, %v2375_v49  ;;  %v2380_v23 = vsel %vm2370_vm13, %v2377_v4, %v2379_v36 }
 0x2c4   : > { %v2383_v2 = vsel %vm2371_vm8, %v2365_v52, %v2382_v43  ;;  %v2410_v40 = vand.u32 65535, %v2380_v23  ;;  %v2411_v33 = vshrl.u32 %v2380_v23, 16  ;;  %v2659_v56 = vsel %vm2658_vm9, %v5462_v41, 0 }
 0x2c5   : > { %v2144_v11 = vor.u32 4788187, %v2143_v5  ;;  %v2147_v19 = vcvt.s32.f32 %v2140_v3  ;;  %v2384_v60 = vsel %vm2370_vm13, %v2381_v6, %v2383_v2  ;;  %v2655_v58 = vor.u32 8388608, %v5458_v63 }
 0x2c6   : > { %v2388_v46 = vand.u32 65535, %v2384_v60  ;;  %v2389_v10 = vshrl.u32 %v2384_v60, 16  ;;  %v2413_v62 = vmul.u32 %v2411_v33, %v5451_v55  ;;  %v2414_v47 = vmul.u32 %v2410_v40, %v5454_v51 }
 0x2c7   : > { %v2145_v35 = vand.u32 2147483647, %v2144_v11  ;;  %v5504_v7 = vand.u32 3, %v2171_v18  ;;  %v2430_v31 = vmul.u32 %v5437_v45, %v5495_v28  ;;  %v2412_v30 = vmul.u32 %v2410_v40, %v5451_v55 }
 0x2c8   : > { %v2391_v12 = vmul.u32 %v2389_v10, %v5451_v55  ;;  %v2392_v39 = vmul.u32 %v2388_v46, %v5454_v51  ;;  %v2416_v41 = vshll.u32 %v2413_v62, 16  ;;  %v2661_v32 = vand.u32 31, %v2659_v56 }
 0x2c9   : > { %v2148_v25 = vmul.f32 %v2147_v19, %v2145_v35  ;;  %v2390_v44 = vmul.u32 %v2388_v46, %v5451_v55  ;;  %v2393_v14 = vmul.u32 %v2389_v10, %v5454_v51  ;;  %v2415_v52 = vmul.u32 %v2411_v33, %v5454_v51 }
 0x2ca   : > { %v2394_v27 = vshll.u32 %v2391_v12, 16  ;;  %v2396_v15 = vshll.u32 %v2392_v39, 16  ;;  %v2418_v1 = vshll.u32 %v2414_v47, 16  ;;  %vm2420_vm11 = vc.u32 %v2412_v30, %v2416_v41 }
 0x2cb   : > { %v2149_v57 = vxor.u32 2147483648, %v2148_v25  ;;  %v2421_v54 = vsel %vm2420_vm11, 1, %v3748_v9  ;;  %v2422_v3 = vadd.s32 %v2416_v41, %v2412_v30  ;;  %v5521_v53 = vshrl.u32 %v2659_v56, 5 }
 0x2cc   : > { %vm2398_vm12 = vc.u32 %v2390_v44, %v2394_v27  ;;  %v2400_v0 = vadd.s32 %v2394_v27, %v2390_v44  ;;  %v2423_v5 = vadd.s32 %v2421_v54, %v2415_v52  ;;  %v5523_v4 = vsub.s32 32, %v2661_v32 }
 0x2cd   : > { %v2150_v17 = vsel %vm2029_vm14, %v2149_v57, %v2148_v25  ;;  %v2399_v20 = vsel %vm2398_vm12, 1, %v3748_v9  ;;  %vm2424_vm14 = vc.u32 %v2422_v3, %v2418_v1  ;;  %v2395_v6 = vshrl.u32 %v2391_v12, 16 }
 0x2ce   : > { %v2153_v24 = vsel %vm5433_vm0, %v5198_v38, %v2150_v17  ;;  %v2401_v51 = vadd.s32 %v2399_v20, %v2393_v14  ;;  %vm2402_vm15 = vc.u32 %v2400_v0, %v2396_v15  ;;  %v2417_v11 = vshrl.u32 %v2413_v62, 16 }
 0x2cf   : > { %v2155_v55 = vmul.f32 %v2153_v24, %v2153_v24  ;;  %v2403_v59 = vsel %vm2402_vm15, 1, %v3748_v9  ;;  %v2425_v18 = vsel %vm2424_vm14, 1, %v3748_v9  ;;  %v2397_v23 = vshrl.u32 %v2392_v39, 16 }
 0x2d0   : > { %v2405_v43 = vadd.s32 %v2403_v59, %v2401_v51  ;;  %v2427_v2 = vadd.s32 %v2425_v18, %v2423_v5  ;;  %v2419_v60 = vshrl.u32 %v2414_v47, 16  ;;  %v2664_v40 = vshll.u32 %v3742_v22, %v2661_v32 }
 0x2d1   : > { %v2156_v49 = vmul.f32 -0.001358992, %v2155_v55  ;;  %v2163_v61 = vmul.f32 -0.00019511016, %v2155_v55  ;;  %v2665_v33 = vshrl.u32 %v3743_v13, %v5523_v4  ;;  %v2668_v25 = vshrl.u32 %v3744_v29, %v5523_v4 }
 0x2d2   : > { %v2406_v35 = vadd.s32 %v2405_v43, %v2395_v6  ;;  %v2428_v56 = vadd.s32 %v2427_v2, %v2417_v11  ;;  %v5534_v12 = vadd.s32 %v2422_v3, %v2418_v1  ;;  %v2667_v39 = vshll.u32 %v3743_v13, %v2661_v32 }
 0x2d3   : > { %v2157_v36 = vadd.f32 0.041655596, %v2156_v49  ;;  %v2164_v19 = vadd.f32 0.008332121, %v2163_v61  ;;  %v2671_v47 = vshrl.u32 %v3745_v34, %v5523_v4  ;;  %v2674_v44 = vshrl.u32 %v3746_v42, %v5523_v4 }
 0x2d4   : > { %v5532_v62 = vadd.s32 %v2406_v35, %v2397_v23  ;;  %v2429_v41 = vadd.s32 %v2428_v56, %v2419_v60  ;;  %v5543_v14 = vor.u32 %v2665_v33, %v2664_v40  ;;  %v2670_v27 = vshll.u32 %v3744_v29, %v2661_v32  ;;  %v766_v56 = vpop.f32.mrf.mxu0 }
 0x2d5   : > { %v2158_v46 = vmul.f32 %v2157_v36, %v2155_v55  ;;  %v2165_v10 = vmul.f32 %v2164_v19, %v2155_v55  ;;  %v2673_v52 = vshll.u32 %v3745_v34, %v2661_v32  ;;  %vm2173_vm1 = vcmp.lt.s32.totalorder %v5504_v7, 2 }
 0x2d6   : > { %vm2432_vm0 = vc.u32 %v5532_v62, %v5534_v12  ;;  %v2433_v1 = vadd.s32 1, %v2429_v41  ;;  %v5548_v0 = vor.u32 %v2668_v25, %v2667_v39  ;;  %v5550_v54 = vor.u32 %v2671_v47, %v2670_v27 }
 0x2d7   : > { %v2159_v57 = vadd.f32 -0.4999988, %v2158_v46  ;;  %v2166_v30 = vadd.f32 -0.16666654, %v2165_v10  ;;  %v2675_v20 = vor.u32 %v2674_v44, %v2673_v52  ;;  %v2676_v3 = vshll.u32 %v3746_v42, %v2661_v32 }
 0x2d8   : > { %v2677_v5 = vshrl.u32 %v3747_v48, %v5523_v4  ;;  %vm2174_vm2 = vcmp.eq.s32.totalorder %v5504_v7, 0  ;;  %vm2177_vm4 = vcmp.eq.s32.totalorder %v5504_v7, 2  ;;  %vm2679_vm3 = vcmp.lt.s32.totalorder %v5521_v53, 1 }
 0x2d9   : > { %v2160_v17 = vmul.f32 %v2159_v57, %v2155_v55  ;;  %v2167_v15 = vmul.f32 %v2166_v30, %v2155_v55  ;;  %v2434_v55 = vsel %vm2432_vm0, %v2433_v1, %v2429_v41  ;;  %vm2682_vm5 = vcmp.lt.s32.totalorder %v5521_v53, 4  ;;  %v885_v1 = vpop.f32.mrf.mxu2 }
 0x2da   : > { %v2435_v61 = vadd.s32 %v2434_v55, %v2430_v31  ;;  %v2678_v59 = vor.u32 %v2677_v5, %v2676_v3  ;;  %v2687_v43 = vsel %vm2679_vm3, %v5543_v14, %v5548_v0  ;;  %vm2681_vm7 = vcmp.lt.s32.totalorder %v5521_v53, 3 }
 0x2db   : > { %v2161_v51 = vadd.f32 1.0, %v2160_v17  ;;  %v2168_v49 = vadd.f32 1.0, %v2167_v15  ;;  %v2688_v18 = vsel %vm2682_vm5, %v2675_v20, 920167782  ;;  %v2691_v45 = vsel %vm2679_vm3, %v5548_v0, %v5550_v54 }
 0x2dc   : > { %v2436_v11 = vadd.s32 536870912, %v2435_v61  ;;  %vm2680_vm9 = vcmp.lt.s32.totalorder %v5521_v53, 2  ;;  %v2689_v31 = vsel %vm2681_vm7, %v5550_v54, %v2688_v18  ;;  %v5590_v2 = vshll.u32 %v2655_v58, 8 }
 0x2dd   : > { %v2169_v32 = vmul.f32 %v2168_v49, %v2153_v24  ;;  %v2178_v6 = vxor.u32 2147483648, %v2161_v51  ;;  %v2692_v24 = vsel %vm2682_vm5, %v2678_v59, 1326507024  ;;  %v2690_v19 = vsel %vm2680_vm9, %v2687_v43, %v2689_v31  ;;  %v935_v43 = vpop.f32.mrf.mxu3 }
 0x2de   : > { %v5582_v36 = vshrl.u32 %v2436_v11, 30  ;;  %v2693_v23 = vsel %vm2681_vm7, %v2675_v20, %v2692_v24  ;;  %v2721_v33 = vshrl.u32 %v2690_v19, 16  ;;  %vm2170_vm6 = vweird.f32 %v5198_v38  ;;  %v831_v38 = vpop.f32.mrf.mxu1 }
 0x2df   : > { %v2175_v28 = vxor.u32 2147483648, %v2169_v32  ;;  %v2179_v60 = vsel %vm2177_vm4, %v2178_v6, %v2169_v32  ;;  %v2694_v40 = vsel %vm2680_vm9, %v2691_v45, %v2693_v23  ;;  %v2696_v63 = vand.u32 65535, %v5590_v2 }
 0x2e0   : > { %v2438_v10 = vshll.u32 %v5582_v36, 30  ;;  %v2697_v25 = vshrl.u32 %v5590_v2, 16  ;;  %v2698_v39 = vand.u32 65535, %v2694_v40  ;;  %v2699_v47 = vshrl.u32 %v2694_v40, 16 }
 0x2e1   : > { %v2176_v35 = vsel %vm2174_vm2, %v2161_v51, %v2175_v28  ;;  %v5605_v44 = vmul.u32 %v2721_v33, %v2696_v63  ;;  %v2720_v27 = vand.u32 65535, %v2690_v19  ;;  %v767_v52 = vadd.f32 %v766_v56, %v4756_v37  ;;  %v771_v19 = vpop.f32.mrf.mxu0 }
 0x2e2   : > { %v2180_v46 = vsel %vm2173_vm1, %v2176_v35, %v2179_v60  ;;  %v2439_v57 = vsub.s32 %v2435_v61, %v2438_v10  ;;  %v2701_v30 = vmul.u32 %v2699_v47, %v2696_v63  ;;  %v2702_v41 = vmul.u32 %v2698_v39, %v2697_v25 }
 0x2e3   : > { %v2181_v58 = vsel %vm2170_vm6, nan, %v2180_v46  ;;  %v2700_v17 = vmul.u32 %v2698_v39, %v2696_v63  ;;  %v2663_v3 = vshrl.u32 %v3742_v22, %v5523_v4  ;;  %v2703_v5 = vmul.u32 %v2699_v47, %v2697_v25 }
 0x2e4   : > { %3429 = vst [vmem:[%s4373_s28 + $0x38] sm:$0xff] %v2181_v58  ;;  %vm2440_vm8 = vcmp.lt.s32.totalorder %v2439_v57, 0  ;;  %v2441_v7 = vsub.s32 0, %v2439_v57  ;;  %v2704_v15 = vshll.u32 %v2701_v30, 16  ;;  %v2706_v51 = vshll.u32 %v2702_v41, 16 }
 0x2e5   : > { %v2726_v61 = vshll.u32 %v5605_v44, 16  ;;  %v2431_v59 = vadd.s32 %v5534_v12, %v5532_v62  ;;  %v2722_v37 = vmul.u32 %v2720_v27, %v2696_v63  ;;  %v2724_v6 = vmul.u32 %v2720_v27, %v2697_v25 }
 0x2e6   : > { %v2442_v20 = vsel %vm2440_vm8, %v2441_v7, %v2439_v57  ;;  %vm2708_vm10 = vc.u32 %v2700_v17, %v2704_v15  ;;  %v2710_v55 = vadd.s32 %v2704_v15, %v2700_v17  ;;  %v2684_v4 = vsel %vm2682_vm5, %v5550_v54, 2102212464  ;;  %v837_v63 = vpop.f32.mrf.mxu1  ;;  %v889_v7 = vpop.f32.mrf.mxu2 }
 0x2e7   : > { %v2443_v49 = vclz %v2442_v20  ;;  %v2709_v32 = vsel %vm2708_vm10, 1, %v3748_v9  ;;  %v2705_v45 = vshrl.u32 %v2701_v30, 16  ;;  %v2725_v31 = vmul.u32 %v2721_v33, %v2697_v25 }
 0x2e8   : > { %v2711_v18 = vadd.s32 %v2709_v32, %v2703_v5  ;;  %vm2712_vm13 = vc.u32 %v2710_v55, %v2706_v51  ;;  %vm2730_vm11 = vc.u32 %v2722_v37, %v2726_v61  ;;  %v2732_v12 = vadd.s32 %v2726_v61, %v2722_v37 }
 0x2e9   : > { %v3571_v11 = vadd.s32 4294967294, %v2443_v49  ;;  %v2713_v28 = vsel %vm2712_vm13, 1, %v3748_v9  ;;  %v2731_v62 = vsel %vm2730_vm11, 1, %v3748_v9  ;;  %v2683_v35 = vsel %vm2679_vm3, %v2663_v3, %v5543_v14 }
 0x2ea   : > { %v2715_v24 = vadd.s32 %v2713_v28, %v2711_v18  ;;  %v2728_v60 = vshll.u32 %v2724_v6, 16  ;;  %v2733_v54 = vadd.s32 %v2731_v62, %v2725_v31  ;;  %v2685_v33 = vsel %vm2681_vm7, %v5548_v0, %v2684_v4 }
 0x2eb   : > { %vm3572_vm12 = vcmp.lt.s32.totalorder %v3571_v11, 0  ;;  %v2707_v58 = vshrl.u32 %v2702_v41, 16  ;;  %v772_v56 = vadd.f32 %v771_v19, %v4878_v8  ;;  %v832_v25 = vadd.f32 %v831_v38, %v767_v52  ;;  %v939_v38 = vpop.f32.mrf.mxu3 }
 0x2ec   : > { %v2446_v23 = vsel %vm3572_vm12, 0, %v3571_v11  ;;  %v2716_v10 = vadd.s32 %v2715_v24, %v2705_v45  ;;  %vm2734_vm15 = vc.u32 %v2732_v12, %v2728_v60  ;;  %v2727_v27 = vshrl.u32 %v5605_v44, 16 }
 0x2ed   : > { %v2447_v40 = vsub.s32 32, %v2446_v23  ;;  %v2451_v46 = vsub.s32 4294967266, %v2446_v23  ;;  %v2448_v39 = vshll.u32 %v2439_v57, %v2446_v23  ;;  %v2735_v14 = vsel %vm2734_vm15, 1, %v3748_v9 }
 0x2ee   : > { %v2737_v17 = vadd.s32 %v2735_v14, %v2733_v54  ;;  %v886_v15 = vadd.f32 %v885_v1, %v832_v25  ;;  %v838_v20 = vadd.f32 %v837_v63, %v772_v56  ;;  %v2461_v5 = vsub.s32 4, %v5582_v36 }
 0x2ef   : > { %v2449_v47 = vshrl.u32 %v2431_v59, %v2447_v40  ;;  %v2452_v30 = vadd.s32 127, %v2451_v46  ;;  %v2717_v41 = vadd.s32 %v2716_v10, %v2707_v58  ;;  %v2729_v51 = vshrl.u32 %v2724_v6, 16 }
 0x2f0   : > { %v2738_v49 = vadd.s32 %v2737_v17, %v2727_v27  ;;  %v5629_v8 = vadd.f32 %v935_v43, %v886_v15  ;;  %v890_v57 = vadd.f32 %v889_v7, %v838_v20  ;;  %vm2339_vm14 = vcmp.lt.s32.totalorder %v5413_v26, 0 }
 0x2f1   : > { %v2450_v3 = vor.u32 %v2449_v47, %v2448_v39  ;;  %v2453_v0 = vshll.u32 %v2452_v30, 23  ;;  %v2736_v55 = vadd.s32 %v2732_v12, %v2728_v60  ;;  %v2686_v44 = vsel %vm2680_vm9, %v2683_v35, %v2685_v33 }
 0x2f2   : > { %v2739_v1 = vadd.s32 %v2738_v49, %v2729_v51  ;;  %v2957_v61 = vand.u32 2147483647, %v5629_v8  ;;  %v2960_v59 = vand.u32 2139095040, %v5629_v8  ;;  %v5636_v6 = vadd.f32 %v939_v38, %v890_v57 }
 0x2f3   : > { %v2454_v52 = vor.u32 4788187, %v2453_v0  ;;  %v2457_v37 = vcvt.s32.f32 %v2450_v3  ;;  %vm2742_vm0 = vc.u32 %v2717_v41, %v2736_v55  ;;  %v2462_v43 = vsel %vm2339_vm14, %v2461_v5, %v5582_v36 }
 0x2f4   : > { %v2743_v11 = vadd.s32 1, %v2739_v1  ;;  %v2961_v4 = vshrl.u32 %v2960_v59, 23  ;;  %v2964_v53 = vand.u32 8388607, %v2957_v61  ;;  %v2740_v45 = vmul.u32 %v5590_v2, %v2686_v44 }
 0x2f5   : > { %v2455_v32 = vand.u32 2147483647, %v2454_v52  ;;  %vm2338_vm1 = vcmp.le.f32.partialorder %v2337_v50, 0.7853982  ;;  %v3270_v19 = vand.u32 2139095040, %v5636_v6  ;;  %vm2649_vm3 = vcmp.lt.s32.totalorder %v5420_v21, 0 }
 0x2f6   : > { %v2744_v28 = vsel %vm2742_vm0, %v2743_v11, %v2739_v1  ;;  %v3582_v31 = vadd.s32 4294967169, %v2961_v4  ;;  %v2464_v62 = vsel %vm2338_vm1, 0, %v2462_v43  ;;  %v2965_v23 = vor.u32 8388608, %v2964_v53 }
 0x2f7   : > { %v2458_v18 = vmul.f32 %v2457_v37, %v2455_v32  ;;  %v2745_v12 = vadd.s32 %v2744_v28, %v2740_v45  ;;  %v3267_v35 = vand.u32 2147483647, %v5636_v6  ;;  %v2481_v40 = vadd.s32 3, %v2464_v62 }
 0x2f8   : > { %v2967_v36 = vadd.s32 1, %v3582_v31  ;;  %v3271_v10 = vshrl.u32 %v3270_v19, 23  ;;  %vm5657_vm4 = vcmp.le.f32.partialorder %v2647_v16, 0.7853982  ;;  %v5661_v56 = vshll.u32 %v2965_v23, 8 }
 0x2f9   : > { %v2459_v24 = vxor.u32 2147483648, %v2458_v18  ;;  %v2746_v54 = vadd.s32 536870912, %v2745_v12  ;;  %v5665_v25 = vand.u32 8388607, %v3267_v35  ;;  %v5668_v14 = vand.u32 3, %v2481_v40 }
 0x2fa   : > { %vm2968_vm2 = vcmp.gt.s32.totalorder %v2967_v36, 0  ;;  %v2741_v7 = vadd.s32 %v2736_v55, %v2717_v41  ;;  %v5672_v3 = vadd.s32 4294967169, %v3271_v10  ;;  %v5677_v5 = vand.u32 65535, %v5661_v56 }
 0x2fb   : > { %v2460_v60 = vsel %vm2339_vm14, %v2459_v24, %v2458_v18  ;;  %v2747_v46 = vshrl.u32 %v2746_v54, 30  ;;  %v2969_v33 = vsel %vm2968_vm2, %v2967_v36, 0  ;;  %v5680_v51 = vshrl.u32 %v5661_v56, 16 }
 0x2fc   : > { %v5651_v2 = vsel %vm2338_vm1, %v5413_v26, %v2460_v60  ;;  %v2971_v58 = vand.u32 31, %v2969_v33  ;;  %v5674_v0 = vshrl.u32 %v2969_v33, 5  ;;  %v3275_v49 = vor.u32 8388608, %v5665_v25 }
 0x2fd   : > { %v2465_v50 = vmul.f32 %v5651_v2, %v5651_v2  ;;  %v2748_v30 = vshll.u32 %v2747_v46, 30  ;;  %v2771_v27 = vsub.s32 4, %v2747_v46  ;;  %vm2487_vm7 = vcmp.eq.s32.totalorder %v5668_v14, 2 }
 0x2fe   : > { %v2972_v16 = vsub.s32 32, %v2971_v58  ;;  %v2974_v55 = vshll.u32 %v3742_v22, %v2971_v58  ;;  %v2977_v1 = vshll.u32 %v3743_v13, %v2971_v58  ;;  %vm2484_vm9 = vcmp.eq.s32.totalorder %v5668_v14, 0 }
 0x2ff   : > { %v2466_v39 = vmul.f32 -0.001358992, %v2465_v50  ;;  %v2473_v47 = vmul.f32 -0.00019511016, %v2465_v50  ;;  %v5670_v20 = vsub.s32 %v2745_v12, %v2748_v30  ;;  %v5687_v52 = vsel %vm2649_vm3, %v2771_v27, %v2747_v46 }
 0x300   : > { %v2975_v44 = vshrl.u32 %v3743_v13, %v2972_v16  ;;  %v2978_v43 = vshrl.u32 %v3744_v29, %v2972_v16  ;;  %v2980_v4 = vshll.u32 %v3744_v29, %v2971_v58  ;;  %v2981_v53 = vshrl.u32 %v3745_v34, %v2972_v16 }
 0x301   : > { %v2467_v17 = vadd.f32 0.041655596, %v2466_v39  ;;  %v2474_v15 = vadd.f32 0.008332121, %v2473_v47  ;;  %vm2750_vm5 = vcmp.lt.s32.totalorder %v5670_v20, 0  ;;  %v2751_v38 = vsub.s32 0, %v5670_v20 }
 0x302   : > { %v2984_v18 = vshrl.u32 %v3746_v42, %v2972_v16  ;;  %vm2483_vm6 = vcmp.lt.s32.totalorder %v5668_v14, 2  ;;  %v2774_v31 = vsel %vm5657_vm4, 0, %v5687_v52  ;;  %v2987_v24 = vshrl.u32 %v3747_v48, %v2972_v16 }
 0x303   : > { %v2468_v57 = vmul.f32 %v2467_v17, %v2465_v50  ;;  %v2475_v41 = vmul.f32 %v2474_v15, %v2465_v50  ;;  %v2752_v37 = vsel %vm2750_vm5, %v2751_v38, %v5670_v20  ;;  %vm2480_vm8 = vweird.f32 %v5413_v26 }
 0x304   : > { %v2753_v11 = vclz %v2752_v37  ;;  %v2973_v12 = vshrl.u32 %v3742_v22, %v2972_v16  ;;  %v2983_v19 = vshll.u32 %v3745_v34, %v2971_v58  ;;  %v2986_v23 = vshll.u32 %v3746_v42, %v2971_v58 }
 0x305   : > { %v2469_v59 = vadd.f32 -0.4999988, %v2468_v57  ;;  %v2476_v32 = vadd.f32 -0.16666654, %v2475_v41  ;;  %v2976_v54 = vor.u32 %v2975_v44, %v2974_v55  ;;  %v2979_v40 = vor.u32 %v2978_v43, %v2977_v1 }
 0x306   : > { %v3577_v62 = vadd.s32 4294967294, %v2753_v11  ;;  %v2985_v46 = vor.u32 %v2984_v18, %v2983_v19  ;;  %v2988_v33 = vor.u32 %v2987_v24, %v2986_v23  ;;  %vm2989_vm13 = vcmp.lt.s32.totalorder %v5674_v0, 1 }
 0x307   : > { %v2470_v45 = vmul.f32 %v2469_v59, %v2465_v50  ;;  %v2477_v28 = vmul.f32 %v2476_v32, %v2465_v50  ;;  %v2982_v50 = vor.u32 %v2981_v53, %v2980_v4  ;;  %vm2990_vm11 = vcmp.lt.s32.totalorder %v5674_v0, 2 }
 0x308   : > { %vm3578_vm10 = vcmp.lt.s32.totalorder %v3577_v62, 0  ;;  %vm2991_vm12 = vcmp.lt.s32.totalorder %v5674_v0, 3  ;;  %vm2992_vm15 = vcmp.lt.s32.totalorder %v5674_v0, 4  ;;  %v2997_v17 = vsel %vm2989_vm13, %v2976_v54, %v2979_v40 }
 0x309   : > { %v2471_v36 = vadd.f32 1.0, %v2470_v45  ;;  %v2478_v60 = vadd.f32 1.0, %v2477_v28  ;;  %v2756_v47 = vsel %vm3578_vm10, 0, %v3577_v62  ;;  %v2998_v41 = vsel %vm2992_vm15, %v2985_v46, 920167782 }
 0x30a   : > { %v2757_v30 = vsub.s32 32, %v2756_v47  ;;  %v2761_v27 = vsub.s32 4294967266, %v2756_v47  ;;  %v2758_v16 = vshll.u32 %v5670_v20, %v2756_v47  ;;  %v2994_v52 = vsel %vm2992_vm15, %v2982_v50, 2102212464 }
 0x30b   : > { %v2479_v10 = vmul.f32 %v2478_v60, %v5651_v2  ;;  %v2488_v39 = vxor.u32 2147483648, %v2471_v36  ;;  %v2999_v55 = vsel %vm2991_vm12, %v2982_v50, %v2998_v41  ;;  %v3001_v20 = vsel %vm2989_vm13, %v2979_v40, %v2982_v50 }
 0x30c   : > { %v2759_v15 = vshrl.u32 %v2741_v7, %v2757_v30  ;;  %v2762_v57 = vadd.s32 127, %v2761_v27  ;;  %v3000_v7 = vsel %vm2990_vm11, %v2997_v17, %v2999_v55  ;;  %v3002_v37 = vsel %vm2992_vm15, %v2988_v33, 1326507024 }
 0x30d   : > { %v2485_v58 = vxor.u32 2147483648, %v2479_v10  ;;  %v2489_v2 = vsel %vm2487_vm7, %v2488_v39, %v2479_v10  ;;  %v3030_v43 = vand.u32 65535, %v3000_v7  ;;  %v3031_v11 = vshrl.u32 %v3000_v7, 16 }
 0x30e   : > { %v2760_v1 = vor.u32 %v2759_v15, %v2758_v16  ;;  %v2763_v59 = vshll.u32 %v2762_v57, 23  ;;  %v2993_v53 = vsel %vm2989_vm13, %v2973_v12, %v2976_v54  ;;  %v2995_v14 = vsel %vm2991_vm12, %v2979_v40, %v2994_v52 }
 0x30f   : > { %v2486_v38 = vsel %vm2484_vm9, %v2471_v36, %v2485_v58  ;;  %v3003_v18 = vsel %vm2991_vm12, %v2985_v46, %v3002_v37  ;;  %v3033_v26 = vmul.u32 %v3031_v11, %v5677_v5  ;;  %v3034_v28 = vmul.u32 %v3030_v43, %v5680_v51 }
 0x310   : > { %v2490_v44 = vsel %vm2483_vm6, %v2486_v38, %v2489_v2  ;;  %v2764_v4 = vor.u32 4788187, %v2763_v59  ;;  %v3004_v45 = vsel %vm2990_vm11, %v3001_v20, %v3003_v18  ;;  %v3277_v24 = vadd.s32 1, %v5672_v3 }
 0x311   : > { %v2491_v32 = vsel %vm2480_vm8, nan, %v2490_v44  ;;  %v2767_v19 = vcvt.s32.f32 %v2760_v1  ;;  %v3008_v23 = vand.u32 65535, %v3004_v45  ;;  %v3009_v36 = vshrl.u32 %v3004_v45, 16 }
 0x312   : > { %3431 = vst [vmem:[%s4373_s28 + $0x48] sm:$0xff] %v2491_v32  ;;  %v2765_v62 = vand.u32 2147483647, %v2764_v4  ;;  %v5742_v12 = vadd.s32 3, %v2774_v31  ;;  %v5746_v60 = vsel %vm2990_vm11, %v2993_v53, %v2995_v14  ;;  %v3032_v54 = vmul.u32 %v3030_v43, %v5677_v5 }
 0x313   : > { %v3036_v40 = vshll.u32 %v3033_v26, 16  ;;  %v3011_v46 = vmul.u32 %v3009_v36, %v5677_v5  ;;  %v3012_v33 = vmul.u32 %v3008_v23, %v5680_v51  ;;  %v3035_v3 = vmul.u32 %v3031_v11, %v5680_v51 }
 0x314   : > { %v2768_v50 = vmul.f32 %v2767_v19, %v2765_v62  ;;  %v3037_v10 = vshrl.u32 %v3033_v26, 16  ;;  %v3038_v39 = vshll.u32 %v3034_v28, 16  ;;  %v3010_v30 = vmul.u32 %v3008_v23, %v5677_v5 }
 0x315   : > { %vm3040_vm14 = vc.u32 %v3032_v54, %v3036_v40  ;;  %v3042_v47 = vadd.s32 %v3036_v40, %v3032_v54  ;;  %v3014_v0 = vshll.u32 %v3011_v46, 16  ;;  %vm3278_vm0 = vcmp.gt.s32.totalorder %v3277_v24, 0 }
 0x316   : > { %v2769_v31 = vxor.u32 2147483648, %v2768_v50  ;;  %v3013_v27 = vmul.u32 %v3009_v36, %v5680_v51  ;;  %v3016_v58 = vshll.u32 %v3012_v33, 16  ;;  %v3041_v16 = vsel %vm3040_vm14, 1, %v3748_v9 }
 0x317   : > { %vm3044_vm1 = vc.u32 %v3042_v47, %v3038_v39  ;;  %vm3018_vm2 = vc.u32 %v3010_v30, %v3014_v0  ;;  %v3020_v2 = vadd.s32 %v3014_v0, %v3010_v30  ;;  %v3043_v15 = vadd.s32 %v3041_v16, %v3035_v3 }
 0x318   : > { %v2770_v17 = vsel %vm2649_vm3, %v2769_v31, %v2768_v50  ;;  %v3019_v5 = vsel %vm3018_vm2, 1, %v3748_v9  ;;  %v3045_v41 = vsel %vm3044_vm1, 1, %v3748_v9  ;;  %v3279_v38 = vsel %vm3278_vm0, %v3277_v24, 0 }
 0x319   : > { %v2773_v57 = vsel %vm5657_vm4, %v5420_v21, %v2770_v17  ;;  %v3021_v52 = vadd.s32 %v3019_v5, %v3013_v27  ;;  %vm3022_vm5 = vc.u32 %v3020_v2, %v3016_v58  ;;  %v3047_v55 = vadd.s32 %v3045_v41, %v3043_v15 }
 0x31a   : > { %v2775_v51 = vmul.f32 %v2773_v57, %v2773_v57  ;;  %v3015_v20 = vshrl.u32 %v3011_v46, 16  ;;  %v3023_v44 = vsel %vm3022_vm5, 1, %v3748_v9  ;;  %v3039_v1 = vshrl.u32 %v3034_v28, 16 }
 0x31b   : > { %v3281_v59 = vand.u32 31, %v3279_v38  ;;  %v3025_v37 = vadd.s32 %v3023_v44, %v3021_v52  ;;  %v3048_v43 = vadd.s32 %v3047_v55, %v3037_v10  ;;  %v3017_v63 = vshrl.u32 %v3012_v33, 16 }
 0x31c   : > { %v2776_v7 = vmul.f32 -0.001358992, %v2775_v51  ;;  %v2783_v32 = vmul.f32 -0.00019511016, %v2775_v51  ;;  %v5763_v11 = vadd.s32 %v3042_v47, %v3038_v39  ;;  %v3050_v4 = vmul.u32 %v5661_v56, %v5746_v60 }
 0x31d   : > { %v5767_v53 = vsub.s32 32, %v3281_v59  ;;  %v3026_v45 = vadd.s32 %v3025_v37, %v3015_v20  ;;  %v3049_v26 = vadd.s32 %v3048_v43, %v3039_v1  ;;  %v5769_v24 = vshrl.u32 %v3279_v38, 5 }
 0x31e   : > { %v2777_v14 = vadd.f32 0.041655596, %v2776_v7  ;;  %v2784_v18 = vadd.f32 0.008332121, %v2783_v32  ;;  %v3284_v28 = vshll.u32 %v3742_v22, %v3281_v59  ;;  %v3287_v40 = vshll.u32 %v3743_v13, %v3281_v59 }
 0x31f   : > { %v3285_v62 = vshrl.u32 %v3743_v13, %v5767_v53  ;;  %v3288_v19 = vshrl.u32 %v3744_v29, %v5767_v53  ;;  %v5776_v54 = vadd.s32 %v3026_v45, %v3017_v63  ;;  %v3053_v56 = vadd.s32 1, %v3049_v26 }
 0x320   : > { %v2778_v23 = vmul.f32 %v2777_v14, %v2775_v51  ;;  %v2785_v36 = vmul.f32 %v2784_v18, %v2775_v51  ;;  %v3290_v50 = vshll.u32 %v3744_v29, %v3281_v59  ;;  %v3291_v46 = vshrl.u32 %v3745_v34, %v5767_v53 }
 0x321   : > { %v5778_v60 = vor.u32 %v3285_v62, %v3284_v28  ;;  %vm3052_vm4 = vc.u32 %v5776_v54, %v5763_v11  ;;  %v3293_v10 = vshll.u32 %v3745_v34, %v3281_v59  ;;  %v3294_v47 = vshrl.u32 %v3746_v42, %v5767_v53 }
 0x322   : > { %v2779_v33 = vadd.f32 -0.4999988, %v2778_v23  ;;  %v2786_v3 = vadd.f32 -0.16666654, %v2785_v36  ;;  %v3054_v39 = vsel %vm3052_vm4, %v3053_v56, %v3049_v26  ;;  %v3296_v31 = vshll.u32 %v3746_v42, %v3281_v59 }
 0x323   : > { %v3297_v13 = vshrl.u32 %v3747_v48, %v5767_v53  ;;  %v3055_v0 = vadd.s32 %v3054_v39, %v3050_v4  ;;  %v5792_v27 = vor.u32 %v3288_v19, %v3287_v40  ;;  %vm2790_vm3 = vweird.f32 %v5420_v21 }
 0x324   : > { %v2780_v29 = vmul.f32 %v2779_v33, %v2775_v51  ;;  %v2787_v30 = vmul.f32 %v2786_v3, %v2775_v51  ;;  %v2792_v58 = vand.u32 3, %v5742_v12  ;;  %v5796_v16 = vor.u32 %v3291_v46, %v3290_v50 }
 0x325   : > { %v3295_v34 = vor.u32 %v3294_v47, %v3293_v10  ;;  %v3298_v17 = vor.u32 %v3297_v13, %v3296_v31  ;;  %v3056_v5 = vadd.s32 536870912, %v3055_v0  ;;  %vm3302_vm7 = vcmp.lt.s32.totalorder %v5769_v24, 4 }
 0x326   : > { %v2781_v2 = vadd.f32 1.0, %v2780_v29  ;;  %v2788_v15 = vadd.f32 1.0, %v2787_v30  ;;  %vm3299_vm9 = vcmp.lt.s32.totalorder %v5769_v24, 1  ;;  %vm3301_vm6 = vcmp.lt.s32.totalorder %v5769_v24, 3 }
 0x327   : > { %v3308_v42 = vsel %vm3302_vm7, %v3295_v34, 920167782  ;;  %v5805_v48 = vshll.u32 %v3275_v49, 8  ;;  %v5807_v38 = vshrl.u32 %v3056_v5, 30  ;;  %v3307_v51 = vsel %vm3299_vm9, %v5778_v60, %v5792_v27 }
 0x328   : > { %v2789_v12 = vmul.f32 %v2788_v15, %v2773_v57  ;;  %v2798_v41 = vxor.u32 2147483648, %v2781_v2  ;;  %vm2793_vm8 = vcmp.lt.s32.totalorder %v2792_v58, 2  ;;  %v3309_v52 = vsel %vm3301_vm6, %v5796_v16, %v3308_v42 }
 0x329   : > { %v3311_v25 = vsel %vm3299_vm9, %v5792_v27, %v5796_v16  ;;  %v3312_v49 = vsel %vm3302_vm7, %v3298_v17, 1326507024  ;;  %vm2797_vm10 = vcmp.eq.s32.totalorder %v2792_v58, 2  ;;  %v3058_v55 = vshll.u32 %v5807_v38, 30 }
 0x32a   : > { %v2795_v57 = vxor.u32 2147483648, %v2789_v12  ;;  %vm3300_vm13 = vcmp.lt.s32.totalorder %v5769_v24, 2  ;;  %vm2794_vm11 = vcmp.eq.s32.totalorder %v2792_v58, 0  ;;  %v2799_v20 = vsel %vm2797_vm10, %v2798_v41, %v2789_v12 }
 0x32b   : > { %v3310_v44 = vsel %vm3300_vm13, %v3307_v51, %v3309_v52  ;;  %v3313_v1 = vsel %vm3301_vm6, %v3295_v34, %v3312_v49  ;;  %v3059_v7 = vsub.s32 %v3055_v0, %v3058_v55  ;;  %v3316_v37 = vand.u32 65535, %v5805_v48 }
 0x32c   : > { %v2796_v59 = vsel %vm2794_vm11, %v2781_v2, %v2795_v57  ;;  %v3314_v32 = vsel %vm3300_vm13, %v3311_v25, %v3313_v1  ;;  %v3317_v63 = vshrl.u32 %v5805_v48, 16  ;;  %v3340_v19 = vand.u32 65535, %v3310_v44 }
 0x32d   : > { %v2800_v43 = vsel %vm2793_vm8, %v2796_v59, %v2799_v20  ;;  %v3318_v4 = vand.u32 65535, %v3314_v32  ;;  %v3319_v14 = vshrl.u32 %v3314_v32, 16  ;;  %vm3060_vm12 = vcmp.lt.s32.totalorder %v3059_v7, 0 }
 0x32e   : > { %v2801_v18 = vsel %vm2790_vm3, nan, %v2800_v43  ;;  %v3061_v45 = vsub.s32 0, %v3059_v7  ;;  %v3341_v23 = vshrl.u32 %v3310_v44, 16  ;;  %v3051_v21 = vadd.s32 %v5763_v11, %v5776_v54 }
 0x32f   : > { %3433 = vst [vmem:[%s4373_s28 + $0x58] sm:$0xff] %v2801_v18  ;;  %v3321_v26 = vmul.u32 %v3319_v14, %v3316_v37  ;;  %v3322_v28 = vmul.u32 %v3318_v4, %v3317_v63  ;;  %v3320_v56 = vmul.u32 %v3318_v4, %v3316_v37  ;;  %v3323_v50 = vmul.u32 %v3319_v14, %v3317_v63 }
 0x330   : > { %v3062_v62 = vsel %vm3060_vm12, %v3061_v45, %v3059_v7  ;;  %v3343_v39 = vmul.u32 %v3341_v23, %v3316_v37  ;;  %v3344_v47 = vmul.u32 %v3340_v19, %v3317_v63  ;;  %v3342_v0 = vmul.u32 %v3340_v19, %v3316_v37 }
 0x331   : > { %v3063_v36 = vclz %v3062_v62  ;;  %v3324_v40 = vshll.u32 %v3321_v26, 16  ;;  %v3326_v33 = vshll.u32 %v3322_v28, 16  ;;  %v3325_v31 = vshrl.u32 %v3321_v26, 16 }
 0x332   : > { %v3346_v58 = vshll.u32 %v3343_v39, 16  ;;  %v3345_v15 = vmul.u32 %v3341_v23, %v3317_v63  ;;  %v3348_v42 = vshll.u32 %v3344_v47, 16  ;;  %v3283_v52 = vshrl.u32 %v3742_v22, %v5767_v53 }
 0x333   : > { %v3583_v46 = vadd.s32 4294967294, %v3063_v36  ;;  %vm3328_vm15 = vc.u32 %v3320_v56, %v3324_v40  ;;  %v3330_v3 = vadd.s32 %v3324_v40, %v3320_v56  ;;  %v3304_v25 = vsel %vm3302_vm7, %v5796_v16, 2102212464 }
 0x334   : > { %v3329_v10 = vsel %vm3328_vm15, 1, %v3748_v9  ;;  %vm3350_vm1 = vc.u32 %v3342_v0, %v3346_v58  ;;  %v3352_v11 = vadd.s32 %v3346_v58, %v3342_v0  ;;  %v3327_v20 = vshrl.u32 %v3322_v28, 16 }
 0x335   : > { %vm3584_vm14 = vcmp.lt.s32.totalorder %v3583_v46, 0  ;;  %v3331_v13 = vadd.s32 %v3329_v10, %v3323_v50  ;;  %vm3332_vm0 = vc.u32 %v3330_v3, %v3326_v33  ;;  %v3351_v51 = vsel %vm3350_vm1, 1, %v3748_v9 }
 0x336   : > { %v3066_v29 = vsel %vm3584_vm14, 0, %v3583_v46  ;;  %v3333_v30 = vsel %vm3332_vm0, 1, %v3748_v9  ;;  %v3353_v49 = vadd.s32 %v3351_v51, %v3345_v15  ;;  %vm3354_vm2 = vc.u32 %v3352_v11, %v3348_v42 }
 0x337   : > { %v3067_v34 = vsub.s32 32, %v3066_v29  ;;  %v3071_v17 = vsub.s32 4294967266, %v3066_v29  ;;  %v3335_v2 = vadd.s32 %v3333_v30, %v3331_v13  ;;  %v3068_v5 = vshll.u32 %v3059_v7, %v3066_v29 }
 0x338   : > { %v3355_v44 = vsel %vm3354_vm2, 1, %v3748_v9  ;;  %v3347_v1 = vshrl.u32 %v3343_v39, 16  ;;  %v3303_v32 = vsel %vm3299_vm9, %v3283_v52, %v5778_v60  ;;  %v3305_v22 = vsel %vm3301_vm6, %v5792_v27, %v3304_v25 }
 0x339   : > { %v3069_v54 = vshrl.u32 %v3051_v21, %v3067_v34  ;;  %v3072_v12 = vadd.s32 127, %v3071_v17  ;;  %v3336_v41 = vadd.s32 %v3335_v2, %v3325_v31  ;;  %v3357_v59 = vadd.s32 %v3355_v44, %v3353_v49 }
 0x33a   : > { %v3349_v16 = vshrl.u32 %v3344_v47, 16  ;;  %v3356_v4 = vadd.s32 %v3352_v11, %v3348_v42  ;;  %v3306_v9 = vsel %vm3300_vm13, %v3303_v32, %v3305_v22  ;;  %vm2959_vm4 = vcmp.lt.s32.totalorder %v5629_v8, 0 }
 0x33b   : > { %v3070_v57 = vor.u32 %v3069_v54, %v3068_v5  ;;  %v3073_v55 = vshll.u32 %v3072_v12, 23  ;;  %v3337_v53 = vadd.s32 %v3336_v41, %v3327_v20  ;;  %v3358_v37 = vadd.s32 %v3357_v59, %v3347_v1 }
 0x33c   : > { %v3360_v60 = vmul.u32 %v5805_v48, %v3306_v9  ;;  %v3081_v27 = vsub.s32 4, %v5807_v38  ;;  %vm5860_vm3 = vcmp.le.f32.partialorder %v2957_v61, 0.7853982  ;;  %vm3100_vm10 = vweird.f32 %v5629_v8 }
 0x33d   : > { %v3074_v7 = vor.u32 4788187, %v3073_v55  ;;  %v3077_v63 = vcvt.s32.f32 %v3070_v57  ;;  %v3359_v14 = vadd.s32 %v3358_v37, %v3349_v16  ;;  %vm3362_vm5 = vc.u32 %v3337_v53, %v3356_v4 }
 0x33e   : > { %v3082_v48 = vsel %vm2959_vm4, %v3081_v27, %v5807_v38  ;;  %v3361_v41 = vadd.s32 %v3356_v4, %v3337_v53  ;;  %vm3269_vm11 = vcmp.lt.s32.totalorder %v5636_v6, 0  ;;  %vm3268_vm12 = vcmp.le.f32.partialorder %v3267_v35, 0.7853982 }
 0x33f   : > { %v3075_v43 = vand.u32 2147483647, %v3074_v7  ;;  %v3363_v45 = vadd.s32 1, %v3359_v14  ;;  %v3084_v33 = vsel %vm5860_vm3, 0, %v3082_v48  ;;  %vm3410_vm1 = vweird.f32 %v5636_v6 }
 0x340   : > { %v3101_v31 = vadd.s32 3, %v3084_v33 }
 0x341   : > { %v3078_v18 = vmul.f32 %v3077_v63, %v3075_v43  ;;  %v3364_v28 = vsel %vm3362_vm5, %v3363_v45, %v3359_v14 }
 0x342   : > { %v3365_v19 = vadd.s32 %v3364_v28, %v3360_v60  ;;  %v3102_v15 = vand.u32 3, %v3101_v31 }
 0x343   : > { %v3079_v26 = vxor.u32 2147483648, %v3078_v18 }
 0x344   : > { %v3366_v56 = vadd.s32 536870912, %v3365_v19  ;;  %vm3104_vm6 = vcmp.eq.s32.totalorder %v3102_v15, 0  ;;  %vm3107_vm8 = vcmp.eq.s32.totalorder %v3102_v15, 2  ;;  %vm3103_vm13 = vcmp.lt.s32.totalorder %v3102_v15, 2 }
 0x345   : > { %v3080_v24 = vsel %vm2959_vm4, %v3079_v26, %v3078_v18 }
 0x346   : > { %v3083_v23 = vsel %vm5860_vm3, %v5629_v8, %v3080_v24  ;;  %v3367_v46 = vshrl.u32 %v3366_v56, 30 }
 0x347   : > { %v3085_v36 = vmul.f32 %v3083_v23, %v3083_v23 }
 0x348   : > { %v3368_v21 = vshll.u32 %v3367_v46, 30  ;;  %v3391_v43 = vsub.s32 4, %v3367_v46 }
 0x349   : > { %v3086_v40 = vmul.f32 -0.001358992, %v3085_v36  ;;  %v3093_v50 = vmul.f32 -0.00019511016, %v3085_v36 }
 0x34a   : > { %v3369_v47 = vsub.s32 %v3365_v19, %v3368_v21  ;;  %v3392_v18 = vsel %vm3269_vm11, %v3391_v43, %v3367_v46 }
 0x34b   : > { %v3087_v61 = vadd.f32 0.041655596, %v3086_v40  ;;  %v3094_v3 = vadd.f32 0.008332121, %v3093_v50  ;;  %v3394_v60 = vsel %vm3268_vm12, 0, %v3392_v18 }
 0x34c   : > { %vm3370_vm7 = vcmp.lt.s32.totalorder %v3369_v47, 0  ;;  %v3371_v30 = vsub.s32 0, %v3369_v47  ;;  %v3411_v19 = vadd.s32 3, %v3394_v60 }
 0x34d   : > { %v3088_v10 = vmul.f32 %v3087_v61, %v3085_v36  ;;  %v3095_v39 = vmul.f32 %v3094_v3, %v3085_v36 }
 0x34e   : > { %v3372_v38 = vsel %vm3370_vm7, %v3371_v30, %v3369_v47  ;;  %v3412_v48 = vand.u32 3, %v3411_v19 }
 0x34f   : > { %v3089_v13 = vadd.f32 -0.4999988, %v3088_v10  ;;  %v3096_v29 = vadd.f32 -0.16666654, %v3095_v39  ;;  %v3373_v34 = vclz %v3372_v38 }
 0x350   : > { %vm3414_vm15 = vcmp.eq.s32.totalorder %v3412_v48, 0  ;;  %vm3417_vm14 = vcmp.eq.s32.totalorder %v3412_v48, 2  ;;  %vm3413_vm0 = vcmp.lt.s32.totalorder %v3412_v48, 2 }
 0x351   : > { %v3090_v0 = vmul.f32 %v3089_v13, %v3085_v36  ;;  %v3097_v58 = vmul.f32 %v3096_v29, %v3085_v36  ;;  %v3589_v5 = vadd.s32 4294967294, %v3373_v34 }
 0x353   : > { %v3091_v17 = vadd.f32 1.0, %v3090_v0  ;;  %v3098_v2 = vadd.f32 1.0, %v3097_v58  ;;  %vm3590_vm9 = vcmp.lt.s32.totalorder %v3589_v5, 0 }
 0x354   : > { %v3376_v12 = vsel %vm3590_vm9, 0, %v3589_v5 }
 0x355   : > { %v3099_v42 = vmul.f32 %v3098_v2, %v3083_v23  ;;  %v3108_v11 = vxor.u32 2147483648, %v3091_v17  ;;  %v3377_v51 = vsub.s32 32, %v3376_v12  ;;  %v3381_v52 = vsub.s32 4294967266, %v3376_v12 }
 0x356   : > { %v3378_v55 = vshll.u32 %v3369_v47, %v3376_v12 }
 0x357   : > { %v3105_v54 = vxor.u32 2147483648, %v3099_v42  ;;  %v3109_v49 = vsel %vm3107_vm8, %v3108_v11, %v3099_v42  ;;  %v3379_v20 = vshrl.u32 %v3361_v41, %v3377_v51  ;;  %v3382_v44 = vadd.s32 127, %v3381_v52 }
 0x359   : > { %v3106_v25 = vsel %vm3104_vm6, %v3091_v17, %v3105_v54  ;;  %v3380_v59 = vor.u32 %v3379_v20, %v3378_v55  ;;  %v3383_v7 = vshll.u32 %v3382_v44, 23 }
 0x35a   : > { %v3110_v57 = vsel %vm3103_vm13, %v3106_v25, %v3109_v49 }
 0x35b   : > { %v3111_v1 = vsel %vm3100_vm10, nan, %v3110_v57  ;;  %v3384_v32 = vor.u32 4788187, %v3383_v7  ;;  %v3387_v16 = vcvt.s32.f32 %v3380_v59 }
 0x35c   : > { %3435 = vst [vmem:[%s4373_s28 + $0x68] sm:$0xff] %v3111_v1 }
 0x35d   : > { %v3385_v22 = vand.u32 2147483647, %v3384_v32 }
 0x35f   : > { %v3388_v37 = vmul.f32 %v3387_v16, %v3385_v22 }
 0x361   : > { %v3389_v53 = vxor.u32 2147483648, %v3388_v37 }
 0x363   : > { %v3390_v8 = vsel %vm3269_vm11, %v3389_v53, %v3388_v37 }
 0x364   : > { %v3393_v63 = vsel %vm3268_vm12, %v5636_v6, %v3390_v8 }
 0x365   : > { %v3395_v4 = vmul.f32 %v3393_v63, %v3393_v63 }
 0x367   : > { %v3396_v9 = vmul.f32 -0.001358992, %v3395_v4  ;;  %v3403_v14 = vmul.f32 -0.00019511016, %v3395_v4 }
 0x369   : > { %v3397_v45 = vadd.f32 0.041655596, %v3396_v9  ;;  %v3404_v26 = vadd.f32 0.008332121, %v3403_v14 }
 0x36b   : > { %v3398_v27 = vmul.f32 %v3397_v45, %v3395_v4  ;;  %v3405_v28 = vmul.f32 %v3404_v26, %v3395_v4 }
 0x36d   : > { %v3399_v62 = vadd.f32 -0.4999988, %v3398_v27  ;;  %v3406_v24 = vadd.f32 -0.16666654, %v3405_v28 }
 0x36f   : > { %v3400_v23 = vmul.f32 %v3399_v62, %v3395_v4  ;;  %v3407_v35 = vmul.f32 %v3406_v24, %v3395_v4 }
 0x371   : > { %v3401_v36 = vadd.f32 1.0, %v3400_v23  ;;  %v3408_v56 = vadd.f32 1.0, %v3407_v35 }
 0x373   : > { %v3409_v40 = vmul.f32 %v3408_v56, %v3393_v63  ;;  %v3418_v50 = vxor.u32 2147483648, %v3401_v36 }
 0x375   : > { %v3415_v46 = vxor.u32 2147483648, %v3409_v40  ;;  %v3419_v61 = vsel %vm3417_vm14, %v3418_v50, %v3409_v40 }
 0x377   : > { %v3416_v33 = vsel %vm3414_vm15, %v3401_v36, %v3415_v46 }
 0x378   : > { %v3420_v3 = vsel %vm3413_vm0, %v3416_v33, %v3419_v61 }
 0x379   : > { %v3421_v21 = vsel %vm3410_vm1, nan, %v3420_v3 }
 0x37a   : > { %3437 = vst [vmem:[%s4373_s28 + $0x78] sm:$0xff] %v3421_v21 }
 0x37b   : > { %3689 = shalt.err (!%p3686_p5)
}
 0x37c   : > { %s3749_s24 = smov 256   ;;  %s3750_s25 = smov 16  }
 0x37d   : > { %3598 = dma.vmem_to_hbm [thread:$0]  (%p3806_p4), %s3454_s5, 2048, %s3456_s6, %s3439_s12, %s3749_s24, %s3749_s24, %s3750_s25  }
 0x37e PF: > { %p3604_p6 = scmp.ge.s32.totalorder %s3740_s14, 2  ;;  %s3470_s26 = sand.u32 1, %s3720_s9  }
 0x37f   : > { %s3471_s27 = scalar_lea.sflag [#allocation3], %s3470_s26 }
 0x380   : > { %p3601_p7 = pnand %p3604_p6, %p3813_p8 }
 0x382   : > { %p3602_p9 = pneg %p3601_p7 }
 0x384   : > { %3715 = dma.done.wait (%p3602_p9), %s3471_s27, 2048  }
 0x385   : > { %3717 = vsyncadd (%p3602_p9), %s3471_s27, 4294965248  ;;  %s15_s14 = sadd.s32 1, %s3740_s14   ;;  %s5950_s9 = smov %s3724_s10 }
 0x386   : > { %p12_p10 = scmp.ge.s32.totalorder %s15_s14, 4   ;;  %s5951_s10 = smov %s3728_s11 }
 0x387   : > { %s5952_s11 = smov %s3819_s22  ;;  %s5953_s12 = smov %s3736_s13 }
 0x388   : > { %s5954_s13 = smov %s5956_s17  ;;  %14 = sbr.rel (!%p12_p10) target bundleno = 4 (0x4), region = 63 }
 0x38d   :  { %3477 = vsyncpa [#allocation3], 1 }
 0x38e   :  { %3479 = vsyncpa [#allocation3 + $0x1], 1 }

</bundles_post_ra>
